<compile_context>
chip_gen: v7x
topology: tpu7x:2x2x1
jax: 0.10.0
libtpu: 0.0.40
codegen_flags: <defaults>
</compile_context>

<pallas_src>
import functools

import jax
import jax.numpy as jnp
from jax.experimental import pallas as pl
from jax.experimental.pallas import tpu as pltpu


# ----------------------------------------------------------------------------
# Model dimensions
# ----------------------------------------------------------------------------
IMG_C, IMG_H, IMG_W = 4, 16, 16
IMG_FLAT = IMG_C * IMG_H * IMG_W          # 1024
ENC1_OUT = 8 * (IMG_H // 2) * (IMG_W // 2)   # 512  (conv1: 8ch @ 8x8)
ENC2_OUT = 16 * (IMG_H // 4) * (IMG_W // 4)  # 256  (conv2: 16ch @ 4x4)
LATENT_DIM = 32
LATENT_PAD = 128                          # lane-dense padded latent width
ACTION_DIM = 4
ACTION_PAD = 8                            # sublane-aligned padded action width
CRITIC_HIDDEN = 64
DEC_HIDDEN = 128
MAX_BM = 128                              # batch tile (rows per grid step)


# ----------------------------------------------------------------------------
# Pallas kernels
# ----------------------------------------------------------------------------
def _vae_fused_kernel(x_ref, eps_ref,
                      w1_ref, b1_ref,       # encoder conv1 as dense (1024, 512)
                      w2_ref, b2_ref,       # encoder conv2 as dense (512, 256)
                      ws_ref, bs_ref,       # fused [mu|logvar] (256, 256), lane-padded
                      wd1_ref, bd1_ref,     # decoder fc1 (128, 128), rows>=32 are zero
                      wd2_ref, bd2_ref,     # decoder fc2 (128, 1024)
                      xrec_ref, mu_ref, logvar_ref, z_ref):
    f32 = jnp.float32
    x = x_ref[...]

    # encoder (both convs expressed as exact dense matmuls), fused ReLU
    h1 = jnp.dot(x, w1_ref[...], preferred_element_type=f32) + b1_ref[...]
    h1 = jnp.maximum(h1, 0.0)
    h2 = jnp.dot(h1, w2_ref[...], preferred_element_type=f32) + b2_ref[...]
    h2 = jnp.maximum(h2, 0.0)

    # fused mu / log_var matmul; output layout [mu(32)|0(96) | logvar(32)|0(96)]
    stat = jnp.dot(h2, ws_ref[...], preferred_element_type=f32) + bs_ref[...]
    mu = stat[:, :LATENT_PAD]          # (bm, 128)  lane-aligned slice
    log_var = stat[:, LATENT_PAD:]     # (bm, 128)  lane-aligned slice

    # reparameterize fused in the epilogue (padded lanes stay exactly zero:
    # mu=0, log_var=0 -> std=1, eps_pad=0 -> z=0)
    z = mu + jnp.exp(0.5 * log_var) * eps_ref[...]

    # decoder
    d1 = jnp.dot(z, wd1_ref[...], preferred_element_type=f32) + bd1_ref[...]
    d1 = jnp.maximum(d1, 0.0)
    logits = jnp.dot(d1, wd2_ref[...], preferred_element_type=f32) + bd2_ref[...]
    # sigmoid: exp on the EUP + approximate reciprocal (EUP), keeps VPU free
    x_rec = pl.reciprocal(1.0 + jnp.exp(-logits), approx=True)

    xrec_ref[...] = x_rec
    mu_ref[...] = mu
    logvar_ref[...] = log_var
    z_ref[...] = z


def _critic_fused_kernel(z_ref, a_ref,
                         w1z_ref, w1a_ref, b1_ref,
                         w2_ref, b2_ref,
                         w3_ref, b3_ref,
                         q_ref):
    f32 = jnp.float32
    # concat(z, action) @ W1  ==  z @ W1[:32] + action @ W1[32:]  (split weights)
    h = (jnp.dot(z_ref[...], w1z_ref[...], preferred_element_type=f32)
         + jnp.dot(a_ref[...], w1a_ref[...], preferred_element_type=f32)
         + b1_ref[...])
    h = jnp.maximum(h, 0.0)
    h = jnp.dot(h, w2_ref[...], preferred_element_type=f32) + b2_ref[...]
    h = jnp.maximum(h, 0.0)
    # final layer lane-padded to 128 output columns (col 0 is the real q1)
    q_ref[...] = jnp.dot(h, w3_ref[...], preferred_element_type=f32) + b3_ref[...]


# ----------------------------------------------------------------------------
# Wrappers (jit-compiled; only layout glue lives here)
# ----------------------------------------------------------------------------
def _row_spec(bm, n):
    return pl.BlockSpec((bm, n), lambda i: (i, 0))


def _full_spec(arr):
    return pl.BlockSpec(arr.shape, lambda i: (0, 0))


def vae_forward(params, img_state, eps):
    """img_state: (B, 4, 16, 16) f32, eps: (B, 32) f32."""
    B = img_state.shape[0]
    x_flat = img_state.astype(jnp.float32).reshape(B, IMG_FLAT)
    eps_pad = jnp.pad(eps.astype(jnp.float32),
                      ((0, 0), (0, LATENT_PAD - LATENT_DIM)))

    bm = B if B <= MAX_BM else MAX_BM
    grid = (pl.cdiv(B, bm),)

    weight_args = (params["enc1_w"], params["enc1_b"],
                   params["enc2_w"], params["enc2_b"],
                   params["stat_w"], params["stat_b"],
                   params["dec1_w"], params["dec1_b"],
                   params["dec2_w"], params["dec2_b"])

    out_shapes = (jax.ShapeDtypeStruct((B, IMG_FLAT), jnp.float32),
                  jax.ShapeDtypeStruct((B, LATENT_PAD), jnp.float32),
                  jax.ShapeDtypeStruct((B, LATENT_PAD), jnp.float32),
                  jax.ShapeDtypeStruct((B, LATENT_PAD), jnp.float32))

    x_rec_flat, mu_p, logvar_p, z_p = pl.pallas_call(
        _vae_fused_kernel,
        out_shape=out_shapes,
        grid=grid,
        in_specs=[_row_spec(bm, IMG_FLAT), _row_spec(bm, LATENT_PAD)]
                 + [_full_spec(w) for w in weight_args],
        out_specs=(_row_spec(bm, IMG_FLAT), _row_spec(bm, LATENT_PAD),
                   _row_spec(bm, LATENT_PAD), _row_spec(bm, LATENT_PAD)),
        compiler_params=pltpu.CompilerParams(
            dimension_semantics=("parallel",)),
    )(x_flat, eps_pad, *weight_args)

    x_rec = x_rec_flat.reshape(B, IMG_C, IMG_H, IMG_W)
    mu = mu_p[:, :LATENT_DIM]
    log_var = logvar_p[:, :LATENT_DIM]
    z = z_p[:, :LATENT_DIM]
    return x_rec, mu, log_var, z


def critic_q1(params, z, action):
    """z: (B, 32) f32, action: (B, 4) f32 -> q1: (B, 1) f32."""
    B = z.shape[0]
    a_pad = jnp.pad(action.astype(jnp.float32),
                    ((0, 0), (0, ACTION_PAD - ACTION_DIM)))

    bm = B if B <= MAX_BM else MAX_BM
    grid = (pl.cdiv(B, bm),)

    weight_args = (params["q1_w1_z"], params["q1_w1_a"], params["q1_b1"],
                   params["q1_w2"], params["q1_b2"],
                   params["q1_w3"], params["q1_b3"])

    q_pad = pl.pallas_call(
        _critic_fused_kernel,
        out_shape=jax.ShapeDtypeStruct((B, 128), jnp.float32),
        grid=grid,
        in_specs=[_row_spec(bm, LATENT_DIM), _row_spec(bm, ACTION_PAD)]
                 + [_full_spec(w) for w in weight_args],
        out_specs=_row_spec(bm, 128),
        compiler_params=pltpu.CompilerParams(
            dimension_semantics=("parallel",)),
    )(z.astype(jnp.float32), a_pad, *weight_args)

    return q_pad[:, :1]


# ----------------------------------------------------------------------------
# Parameter construction (deterministic, synthetic)
# ----------------------------------------------------------------------------
def _conv_as_dense(w, in_shape, stride, padding):
    """Exact dense-matrix form of a Conv2d: (C*H*W, O*Ho*Wo), NCHW flattening."""
    C, H, W = in_shape
    basis = jnp.eye(C * H * W, dtype=jnp.float32).reshape(C * H * W, C, H, W)
    y = jax.lax.conv_general_dilated(
        basis, w,
        window_strides=(stride, stride),
        padding=[(padding, padding), (padding, padding)],
        dimension_numbers=("NCHW", "OIHW", "NCHW"),
        precision=jax.lax.Precision.HIGHEST)
    return y.reshape(C * H * W, -1)


def make_params(seed=0):
    keys = jax.random.split(jax.random.PRNGKey(seed), 20)

    def init(k, shape, scale=0.1):
        return scale * jax.random.normal(k, shape, dtype=jnp.float32)

    # "real" conv weights (OIHW), then lowered to dense matrices once at init.
    conv1_w = init(keys[0], (8, IMG_C, 3, 3))
    conv1_b = init(keys[1], (8,))
    conv2_w = init(keys[2], (16, 8, 3, 3))
    conv2_b = init(keys[3], (16,))

    enc1_w = _conv_as_dense(conv1_w, (IMG_C, IMG_H, IMG_W), 2, 1)        # (1024, 512)
    enc1_b = jnp.repeat(conv1_b, (IMG_H // 2) * (IMG_W // 2)).reshape(1, -1)
    enc2_w = _conv_as_dense(conv2_w, (8, IMG_H // 2, IMG_W // 2), 2, 1)  # (512, 256)
    enc2_b = jnp.repeat(conv2_b, (IMG_H // 4) * (IMG_W // 4)).reshape(1, -1)

    # fc_mu / fc_logvar fused + lane-padded: cols [0:32]=mu, [128:160]=logvar.
    fc_mu_w = init(keys[4], (ENC2_OUT, LATENT_DIM))
    fc_mu_b = init(keys[5], (LATENT_DIM,))
    fc_lv_w = init(keys[6], (ENC2_OUT, LATENT_DIM))
    fc_lv_b = init(keys[7], (LATENT_DIM,))
    stat_w = jnp.zeros((ENC2_OUT, 2 * LATENT_PAD), jnp.float32)
    stat_w = stat_w.at[:, :LATENT_DIM].set(fc_mu_w)
    stat_w = stat_w.at[:, LATENT_PAD:LATENT_PAD + LATENT_DIM].set(fc_lv_w)
    stat_b = jnp.zeros((1, 2 * LATENT_PAD), jnp.float32)
    stat_b = stat_b.at[0, :LATENT_DIM].set(fc_mu_b)
    stat_b = stat_b.at[0, LATENT_PAD:LATENT_PAD + LATENT_DIM].set(fc_lv_b)

    # decoder (dec_fc1 rows padded to match the 128-wide padded z; pad rows are 0)
    dec1_w = init(keys[8], (LATENT_DIM, DEC_HIDDEN))
    dec1_b = init(keys[9], (DEC_HIDDEN,))
    dec1_w_p = jnp.zeros((LATENT_PAD, DEC_HIDDEN), jnp.float32).at[:LATENT_DIM].set(dec1_w)
    dec2_w = init(keys[10], (DEC_HIDDEN, IMG_FLAT))
    dec2_b = init(keys[11], (IMG_FLAT,))

    # critic Q1: split the concat(z, action) weight; pad action K and output N.
    q1_w1 = init(keys[12], (LATENT_DIM + ACTION_DIM, CRITIC_HIDDEN))
    q1_b1 = init(keys[13], (CRITIC_HIDDEN,))
    q1_w2 = init(keys[14], (CRITIC_HIDDEN, CRITIC_HIDDEN))
    q1_b2 = init(keys[15], (CRITIC_HIDDEN,))
    q1_w3 = init(keys[16], (CRITIC_HIDDEN, 1))
    q1_b3 = init(keys[17], (1,))
    q1_w1_z = q1_w1[:LATENT_DIM]
    q1_w1_a = jnp.zeros((ACTION_PAD, CRITIC_HIDDEN),
                        jnp.float32).at[:ACTION_DIM].set(q1_w1[LATENT_DIM:])
    q1_w3_p = jnp.zeros((CRITIC_HIDDEN, 128), jnp.float32).at[:, :1].set(q1_w3)
    q1_b3_p = jnp.zeros((1, 128), jnp.float32).at[0, :1].set(q1_b3)

    return dict(
        enc1_w=enc1_w, enc1_b=enc1_b,
        enc2_w=enc2_w, enc2_b=enc2_b,
        stat_w=stat_w, stat_b=stat_b,
        dec1_w=dec1_w_p, dec1_b=dec1_b.reshape(1, -1),
        dec2_w=dec2_w, dec2_b=dec2_b.reshape(1, -1),
        q1_w1_z=q1_w1_z, q1_w1_a=q1_w1_a, q1_b1=q1_b1.reshape(1, -1),
        q1_w2=q1_w2, q1_b2=q1_b2.reshape(1, -1),
        q1_w3=q1_w3_p, q1_b3=q1_b3_p,
    )


# ----------------------------------------------------------------------------
# Module (mirrors the PyTorch VAE_Critic_Ensemble API)
# ----------------------------------------------------------------------------
class VAE_Critic_Ensemble:
    def __init__(self, params):
        self.p = params
        self._vae_jit = jax.jit(vae_forward)
        self._q1_jit = jax.jit(critic_q1)

    def enconde_image(self, image_state, eps):
        x_rec, mu, log_var, z = self._vae_jit(self.p, image_state, eps)
        return (x_rec, mu, log_var, z)

    def critic_function_q1(self, z, action):
        return self._q1_jit(self.p, z, action)

    def forward(self, img_state, action, eps):
        # Matches the PyTorch forward: it only runs the VAE on img_state
        # (the original returns None; we return the VAE outputs so the caller
        # can block on the computed values).
        return self._vae_jit(self.p, img_state, eps)


# ----------------------------------------------------------------------------
# Main
# ----------------------------------------------------------------------------
if __name__ == "__main__":
    B = 2
    key = jax.random.PRNGKey(0)
    k_img, k_act, k_eps = jax.random.split(key, 3)

    img_state = jax.random.uniform(k_img, (B, IMG_C, IMG_H, IMG_W),
                                   dtype=jnp.float32)
    action = jax.random.normal(k_act, (B, ACTION_DIM), dtype=jnp.float32)
    eps = jax.random.normal(k_eps, (B, LATENT_DIM), dtype=jnp.float32)

    params = make_params(seed=0)
    model = VAE_Critic_Ensemble(params)

    x_rec, mu, log_var, z = model.forward(img_state, action, eps)
    q1 = model.critic_function_q1(z, action)

    jax.block_until_ready((x_rec, mu, log_var, z, q1))

    assert x_rec.shape == (B, IMG_C, IMG_H, IMG_W)
    assert mu.shape == (B, LATENT_DIM)
    assert log_var.shape == (B, LATENT_DIM)
    assert z.shape == (B, LATENT_DIM)
    assert q1.shape == (B, 1)
    assert bool(jnp.all(jnp.isfinite(x_rec))) and bool(jnp.all(jnp.isfinite(q1)))

    print("KERNEL_OK")
</pallas_src>

<mosaic_0001>
module attributes {stable_mosaic.version = 11 : i64} {
  func.func @_vae_fused_kernel(%arg0: i32, %arg1: memref<2x1024xf32, #tpu.memory_space<vmem>>, %arg2: memref<2x128xf32, #tpu.memory_space<vmem>>, %arg3: memref<1024x512xf32, #tpu.memory_space<vmem>>, %arg4: memref<1x512xf32, #tpu.memory_space<vmem>>, %arg5: memref<512x256xf32, #tpu.memory_space<vmem>>, %arg6: memref<1x256xf32, #tpu.memory_space<vmem>>, %arg7: memref<256x256xf32, #tpu.memory_space<vmem>>, %arg8: memref<1x256xf32, #tpu.memory_space<vmem>>, %arg9: memref<128x128xf32, #tpu.memory_space<vmem>>, %arg10: memref<1x128xf32, #tpu.memory_space<vmem>>, %arg11: memref<128x1024xf32, #tpu.memory_space<vmem>>, %arg12: memref<1x1024xf32, #tpu.memory_space<vmem>>, %arg13: memref<2x1024xf32, #tpu.memory_space<vmem>>, %arg14: memref<2x128xf32, #tpu.memory_space<vmem>>, %arg15: memref<2x128xf32, #tpu.memory_space<vmem>>, %arg16: memref<2x128xf32, #tpu.memory_space<vmem>>) attributes {dimension_semantics = [#tpu.dimension_semantics<parallel>], iteration_bounds = array<i64: 1>, scalar_prefetch = 0 : i64, scratch_operands = 0 : i64, tpu.core_type = #tpu.core_type<tc>, window_params = [{transform_indices = @transform_0, window_bounds = array<i64: 2, 1024>}, {transform_indices = @transform_1, window_bounds = array<i64: 2, 128>}, {pipeline_mode = #tpu.pipeline_mode<synchronous>, transform_indices = @transform_2, window_bounds = array<i64: 1024, 512>}, {pipeline_mode = #tpu.pipeline_mode<synchronous>, transform_indices = @transform_3, window_bounds = array<i64: 1, 512>}, {pipeline_mode = #tpu.pipeline_mode<synchronous>, transform_indices = @transform_4, window_bounds = array<i64: 512, 256>}, {pipeline_mode = #tpu.pipeline_mode<synchronous>, transform_indices = @transform_5, window_bounds = array<i64: 1, 256>}, {pipeline_mode = #tpu.pipeline_mode<synchronous>, transform_indices = @transform_6, window_bounds = array<i64: 256, 256>}, {pipeline_mode = #tpu.pipeline_mode<synchronous>, transform_indices = @transform_7, window_bounds = array<i64: 1, 256>}, {pipeline_mode = #tpu.pipeline_mode<synchronous>, transform_indices = @transform_8, window_bounds = array<i64: 128, 128>}, {pipeline_mode = #tpu.pipeline_mode<synchronous>, transform_indices = @transform_9, window_bounds = array<i64: 1, 128>}, {pipeline_mode = #tpu.pipeline_mode<synchronous>, transform_indices = @transform_10, window_bounds = array<i64: 128, 1024>}, {pipeline_mode = #tpu.pipeline_mode<synchronous>, transform_indices = @transform_11, window_bounds = array<i64: 1, 1024>}, {transform_indices = @transform_12, window_bounds = array<i64: 2, 1024>}, {transform_indices = @transform_13, window_bounds = array<i64: 2, 128>}, {transform_indices = @transform_14, window_bounds = array<i64: 2, 128>}, {transform_indices = @transform_15, window_bounds = array<i64: 2, 128>}]} {
    %c0 = arith.constant 0 : index
    %c0_0 = arith.constant 0 : index
    %0 = vector.load %arg1[%c0, %c0_0] : memref<2x1024xf32, #tpu.memory_space<vmem>>, vector<2x1024xf32>
    %c0_1 = arith.constant 0 : index
    %c0_2 = arith.constant 0 : index
    %1 = vector.load %arg3[%c0_1, %c0_2] : memref<1024x512xf32, #tpu.memory_space<vmem>>, vector<1024x512xf32>
    %cst = arith.constant dense<0.000000e+00> : vector<2x512xf32>
    %2 = tpu.matmul %0, %1, %cst {dimension_numbers = #tpu.dot_dimension_numbers<[1], [0], [0], [1], [0, 0, 1, 1], [], []>} : vector<2x1024xf32>, vector<1024x512xf32>, vector<2x512xf32> -> vector<2x512xf32>
    %c0_3 = arith.constant 0 : index
    %c0_4 = arith.constant 0 : index
    %3 = vector.load %arg4[%c0_3, %c0_4] : memref<1x512xf32, #tpu.memory_space<vmem>>, vector<1x512xf32>
    %4 = vector.broadcast %3 : vector<1x512xf32> to vector<2x512xf32>
    %5 = arith.addf %2, %4 : vector<2x512xf32>
    %cst_5 = arith.constant 0.000000e+00 : f32
    %6 = vector.broadcast %cst_5 : f32 to vector<2x512xf32>
    %7 = arith.maximumf %5, %6 : vector<2x512xf32>
    %c0_6 = arith.constant 0 : index
    %c0_7 = arith.constant 0 : index
    %8 = vector.load %arg5[%c0_6, %c0_7] : memref<512x256xf32, #tpu.memory_space<vmem>>, vector<512x256xf32>
    %cst_8 = arith.constant dense<0.000000e+00> : vector<2x256xf32>
    %9 = tpu.matmul %7, %8, %cst_8 {dimension_numbers = #tpu.dot_dimension_numbers<[1], [0], [0], [1], [0, 0, 1, 1], [], []>} : vector<2x512xf32>, vector<512x256xf32>, vector<2x256xf32> -> vector<2x256xf32>
    %c0_9 = arith.constant 0 : index
    %c0_10 = arith.constant 0 : index
    %10 = vector.load %arg6[%c0_9, %c0_10] : memref<1x256xf32, #tpu.memory_space<vmem>>, vector<1x256xf32>
    %11 = vector.broadcast %10 : vector<1x256xf32> to vector<2x256xf32>
    %12 = arith.addf %9, %11 : vector<2x256xf32>
    %cst_11 = arith.constant 0.000000e+00 : f32
    %13 = vector.broadcast %cst_11 : f32 to vector<2x256xf32>
    %14 = arith.maximumf %12, %13 : vector<2x256xf32>
    %c0_12 = arith.constant 0 : index
    %c0_13 = arith.constant 0 : index
    %15 = vector.load %arg7[%c0_12, %c0_13] : memref<256x256xf32, #tpu.memory_space<vmem>>, vector<256x256xf32>
    %cst_14 = arith.constant dense<0.000000e+00> : vector<2x256xf32>
    %16 = tpu.matmul %14, %15, %cst_14 {dimension_numbers = #tpu.dot_dimension_numbers<[1], [0], [0], [1], [0, 0, 1, 1], [], []>} : vector<2x256xf32>, vector<256x256xf32>, vector<2x256xf32> -> vector<2x256xf32>
    %c0_15 = arith.constant 0 : index
    %c0_16 = arith.constant 0 : index
    %17 = vector.load %arg8[%c0_15, %c0_16] : memref<1x256xf32, #tpu.memory_space<vmem>>, vector<1x256xf32>
    %18 = vector.broadcast %17 : vector<1x256xf32> to vector<2x256xf32>
    %19 = arith.addf %16, %18 : vector<2x256xf32>
    %20 = vector.extract_strided_slice %19 {offsets = [0, 0], sizes = [2, 128], strides = [1, 1]} : vector<2x256xf32> to vector<2x128xf32>
    %21 = vector.extract_strided_slice %19 {offsets = [0, 128], sizes = [2, 128], strides = [1, 1]} : vector<2x256xf32> to vector<2x128xf32>
    %cst_17 = arith.constant 5.000000e-01 : f32
    %22 = vector.broadcast %cst_17 : f32 to vector<2x128xf32>
    %23 = arith.mulf %22, %21 : vector<2x128xf32>
    %24 = math.exp %23 : vector<2x128xf32>
    %c0_18 = arith.constant 0 : index
    %c0_19 = arith.constant 0 : index
    %25 = vector.load %arg2[%c0_18, %c0_19] : memref<2x128xf32, #tpu.memory_space<vmem>>, vector<2x128xf32>
    %26 = arith.mulf %24, %25 : vector<2x128xf32>
    %27 = arith.addf %20, %26 : vector<2x128xf32>
    %c0_20 = arith.constant 0 : index
    %c0_21 = arith.constant 0 : index
    %28 = vector.load %arg9[%c0_20, %c0_21] : memref<128x128xf32, #tpu.memory_space<vmem>>, vector<128x128xf32>
    %cst_22 = arith.constant dense<0.000000e+00> : vector<2x128xf32>
    %29 = tpu.matmul %27, %28, %cst_22 {dimension_numbers = #tpu.dot_dimension_numbers<[1], [0], [0], [1], [0, 0, 1, 1], [], []>} : vector<2x128xf32>, vector<128x128xf32>, vector<2x128xf32> -> vector<2x128xf32>
    %c0_23 = arith.constant 0 : index
    %c0_24 = arith.constant 0 : index
    %30 = vector.load %arg10[%c0_23, %c0_24] : memref<1x128xf32, #tpu.memory_space<vmem>>, vector<1x128xf32>
    %31 = vector.broadcast %30 : vector<1x128xf32> to vector<2x128xf32>
    %32 = arith.addf %29, %31 : vector<2x128xf32>
    %cst_25 = arith.constant 0.000000e+00 : f32
    %33 = vector.broadcast %cst_25 : f32 to vector<2x128xf32>
    %34 = arith.maximumf %32, %33 : vector<2x128xf32>
    %c0_26 = arith.constant 0 : index
    %c0_27 = arith.constant 0 : index
    %35 = vector.load %arg11[%c0_26, %c0_27] : memref<128x1024xf32, #tpu.memory_space<vmem>>, vector<128x1024xf32>
    %cst_28 = arith.constant dense<0.000000e+00> : vector<2x1024xf32>
    %36 = tpu.matmul %34, %35, %cst_28 {dimension_numbers = #tpu.dot_dimension_numbers<[1], [0], [0], [1], [0, 0, 1, 1], [], []>} : vector<2x128xf32>, vector<128x1024xf32>, vector<2x1024xf32> -> vector<2x1024xf32>
    %c0_29 = arith.constant 0 : index
    %c0_30 = arith.constant 0 : index
    %37 = vector.load %arg12[%c0_29, %c0_30] : memref<1x1024xf32, #tpu.memory_space<vmem>>, vector<1x1024xf32>
    %38 = vector.broadcast %37 : vector<1x1024xf32> to vector<2x1024xf32>
    %39 = arith.addf %36, %38 : vector<2x1024xf32>
    %cst_31 = arith.constant 0.000000e+00 : f32
    %40 = vector.broadcast %cst_31 : f32 to vector<2x1024xf32>
    %41 = arith.subf %40, %39 : vector<2x1024xf32>
    %42 = math.exp %41 : vector<2x1024xf32>
    %cst_32 = arith.constant 1.000000e+00 : f32
    %43 = vector.broadcast %cst_32 : f32 to vector<2x1024xf32>
    %44 = arith.addf %43, %42 : vector<2x1024xf32>
    %45 = tpu.reciprocal %44 {approx = true} : vector<2x1024xf32> -> vector<2x1024xf32>
    %c0_33 = arith.constant 0 : index
    %c0_34 = arith.constant 0 : index
    %46 = vector.load %arg13[%c0_33, %c0_34] : memref<2x1024xf32, #tpu.memory_space<vmem>>, vector<2x1024xf32>
    tpu.vector_store %arg13[%c0_33, %c0_34], %45 {strides = array<i32>} : memref<2x1024xf32, #tpu.memory_space<vmem>>, vector<2x1024xf32>,
    %c0_35 = arith.constant 0 : index
    %c0_36 = arith.constant 0 : index
    %47 = vector.load %arg14[%c0_35, %c0_36] : memref<2x128xf32, #tpu.memory_space<vmem>>, vector<2x128xf32>
    tpu.vector_store %arg14[%c0_35, %c0_36], %20 {strides = array<i32>} : memref<2x128xf32, #tpu.memory_space<vmem>>, vector<2x128xf32>,
    %c0_37 = arith.constant 0 : index
    %c0_38 = arith.constant 0 : index
    %48 = vector.load %arg15[%c0_37, %c0_38] : memref<2x128xf32, #tpu.memory_space<vmem>>, vector<2x128xf32>
    tpu.vector_store %arg15[%c0_37, %c0_38], %21 {strides = array<i32>} : memref<2x128xf32, #tpu.memory_space<vmem>>, vector<2x128xf32>,
    %c0_39 = arith.constant 0 : index
    %c0_40 = arith.constant 0 : index
    %49 = vector.load %arg16[%c0_39, %c0_40] : memref<2x128xf32, #tpu.memory_space<vmem>>, vector<2x128xf32>
    tpu.vector_store %arg16[%c0_39, %c0_40], %27 {strides = array<i32>} : memref<2x128xf32, #tpu.memory_space<vmem>>, vector<2x128xf32>,
    return
  }
  func.func @transform_0(%arg0: i32) -> (i32, i32) {
    %c0_i32 = arith.constant 0 : i32
    %c0_i32_0 = arith.constant 0 : i32
    return %arg0, %c0_i32 : i32, i32
  }
  func.func @transform_1(%arg0: i32) -> (i32, i32) {
    %c0_i32 = arith.constant 0 : i32
    %c0_i32_0 = arith.constant 0 : i32
    return %arg0, %c0_i32 : i32, i32
  }
  func.func @transform_2(%arg0: i32) -> (i32, i32) {
    %c0_i32 = arith.constant 0 : i32
    %c0_i32_0 = arith.constant 0 : i32
    %c0_i32_1 = arith.constant 0 : i32
    return %c0_i32, %c0_i32_0 : i32, i32
  }
  func.func @transform_3(%arg0: i32) -> (i32, i32) {
    %c0_i32 = arith.constant 0 : i32
    %c0_i32_0 = arith.constant 0 : i32
    %c0_i32_1 = arith.constant 0 : i32
    return %c0_i32, %c0_i32_0 : i32, i32
  }
  func.func @transform_4(%arg0: i32) -> (i32, i32) {
    %c0_i32 = arith.constant 0 : i32
    %c0_i32_0 = arith.constant 0 : i32
    %c0_i32_1 = arith.constant 0 : i32
    return %c0_i32, %c0_i32_0 : i32, i32
  }
  func.func @transform_5(%arg0: i32) -> (i32, i32) {
    %c0_i32 = arith.constant 0 : i32
    %c0_i32_0 = arith.constant 0 : i32
    %c0_i32_1 = arith.constant 0 : i32
    return %c0_i32, %c0_i32_0 : i32, i32
  }
  func.func @transform_6(%arg0: i32) -> (i32, i32) {
    %c0_i32 = arith.constant 0 : i32
    %c0_i32_0 = arith.constant 0 : i32
    %c0_i32_1 = arith.constant 0 : i32
    return %c0_i32, %c0_i32_0 : i32, i32
  }
  func.func @transform_7(%arg0: i32) -> (i32, i32) {
    %c0_i32 = arith.constant 0 : i32
    %c0_i32_0 = arith.constant 0 : i32
    %c0_i32_1 = arith.constant 0 : i32
    return %c0_i32, %c0_i32_0 : i32, i32
  }
  func.func @transform_8(%arg0: i32) -> (i32, i32) {
    %c0_i32 = arith.constant 0 : i32
    %c0_i32_0 = arith.constant 0 : i32
    %c0_i32_1 = arith.constant 0 : i32
    return %c0_i32, %c0_i32_0 : i32, i32
  }
  func.func @transform_9(%arg0: i32) -> (i32, i32) {
    %c0_i32 = arith.constant 0 : i32
    %c0_i32_0 = arith.constant 0 : i32
    %c0_i32_1 = arith.constant 0 : i32
    return %c0_i32, %c0_i32_0 : i32, i32
  }
  func.func @transform_10(%arg0: i32) -> (i32, i32) {
    %c0_i32 = arith.constant 0 : i32
    %c0_i32_0 = arith.constant 0 : i32
    %c0_i32_1 = arith.constant 0 : i32
    return %c0_i32, %c0_i32_0 : i32, i32
  }
  func.func @transform_11(%arg0: i32) -> (i32, i32) {
    %c0_i32 = arith.constant 0 : i32
    %c0_i32_0 = arith.constant 0 : i32
    %c0_i32_1 = arith.constant 0 : i32
    return %c0_i32, %c0_i32_0 : i32, i32
  }
  func.func @transform_12(%arg0: i32) -> (i32, i32) {
    %c0_i32 = arith.constant 0 : i32
    %c0_i32_0 = arith.constant 0 : i32
    return %arg0, %c0_i32 : i32, i32
  }
  func.func @transform_13(%arg0: i32) -> (i32, i32) {
    %c0_i32 = arith.constant 0 : i32
    %c0_i32_0 = arith.constant 0 : i32
    return %arg0, %c0_i32 : i32, i32
  }
  func.func @transform_14(%arg0: i32) -> (i32, i32) {
    %c0_i32 = arith.constant 0 : i32
    %c0_i32_0 = arith.constant 0 : i32
    return %arg0, %c0_i32 : i32, i32
  }
  func.func @transform_15(%arg0: i32) -> (i32, i32) {
    %c0_i32 = arith.constant 0 : i32
    %c0_i32_0 = arith.constant 0 : i32
    return %arg0, %c0_i32 : i32, i32
  }
}

</mosaic_0001>

<bundles_post_ra>
// kernel: vae_forward.1
= control target key start
LH: loop header
LB: loop body
LE: loop exit
PB: predicated region body
PF: predicated region fallthrough
CT: control target
= control target key end

     0   :  { %21 = vsyncpa [#allocation3], 0  ;;  %s4120_s0 = inlined_call_operand.vmem [shape: f32[2,1024], index: 0, kind: input, shape index: {}]   ;;  %s4121_s1 = inlined_call_operand.vmem [shape: f32[2,128], index: 1, kind: input, shape index: {}]   ;;  %s4122_s2 = inlined_call_operand.hbm [shape: f32[1024,512], index: 2, kind: input, shape index: {}]   ;;  %s4123_s3 = inlined_call_operand.hbm [shape: f32[1,512], index: 3, kind: input, shape index: {}]   ;;  %s4124_s4 = inlined_call_operand.hbm [shape: f32[512,256], index: 4, kind: input, shape index: {}]   ;;  %s4125_s5 = inlined_call_operand.hbm [shape: f32[1,256], index: 5, kind: input, shape index: {}]   ;;  %s4126_s6 = inlined_call_operand.hbm [shape: f32[256,256], index: 6, kind: input, shape index: {}]   ;;  %s4127_s7 = inlined_call_operand.hbm [shape: f32[1,256], index: 7, kind: input, shape index: {}]   ;;  %s4128_s8 = inlined_call_operand.hbm [shape: f32[128,128], index: 8, kind: input, shape index: {}]   ;;  %s4129_s9 = inlined_call_operand.hbm [shape: f32[1,128], index: 9, kind: input, shape index: {}]   ;;  %s4130_s10 = inlined_call_operand.hbm [shape: f32[128,1024], index: 10, kind: input, shape index: {}]   ;;  %s4131_s11 = inlined_call_operand.hbm [shape: f32[1,1024], index: 11, kind: input, shape index: {}]   ;;  %s4132_s12 = inlined_call_operand.vmem [shape: f32[2,1024], index: 12, kind: output, shape index: {0}]   ;;  %s4133_s13 = inlined_call_operand.hbm [shape: f32[2,128], index: 13, kind: output, shape index: {1}]   ;;  %s4134_s14 = inlined_call_operand.hbm [shape: f32[2,128], index: 14, kind: output, shape index: {2}]   ;;  %s4135_s15 = inlined_call_operand.hbm [shape: f32[2,128], index: 15, kind: output, shape index: {3}]  }
   0x1   :  { %22 = vsyncpa [#allocation6], 0 }
   0x2   :  { %23 = vsyncpa [#allocation9], 0 }
   0x3   :  { %24 = vsyncpa [#allocation12], 0 }
   0x4   :  { %25 = vsyncpa [#allocation15], 0 }
   0x5   :  { %26 = vsyncpa [#allocation18], 0 }
   0x6   :  { %27 = vsyncpa [#allocation4], 0 }
   0x7   :  { %28 = vsyncpa [#allocation21], 0  ;;  %s3742_s18 = smov [#allocation5]   ;;  %s3743_s20 = smov [#allocation8]  }
   0x8   :  { %s51_s19 = sshll.u32 %s3742_s18, 4  ;;  %s73_s21 = sshll.u32 %s3743_s20, 4  ;;  %s52_s19 = int_to_ptr.vmem [resolvable:$true] %s51_s19  ;;  %s74_s21 = int_to_ptr.vmem [resolvable:$true] %s73_s21 }
   0x9   :  { %s3440_s24 = scalar_lea.hbm %s4123_s3, 64 }
   0xa   :  { %p3441_p0 = scmp.ne.s32.totalorder %s4123_s3, %s3440_s24  ;;  %p3444_p1 = scmp.lt.u32.totalorder %s3440_s24, %s4123_s3 }
   0xc   :  { %p3446_p2 = pnand %p3444_p1, %p3441_p0 }
   0xe   :  { %3449 = shalt.err (!%p3446_p2)
}
   0xf   :  { %s3450_s29 = scalar_lea.vmem %s52_s19, 64  ;;  %p3455_p4 = scmp.lt.s32.totalorder %s52_s19, %s52_s19 }
  0x10   :  { %p3451_p3 = scmp.ne.s32.totalorder %s52_s19, %s3450_s29  ;;  %p3456_p5 = scmp.lt.s32.totalorder %s3450_s29, %s3450_s29 }
  0x12   :  { %p3457_p6 = por %p3456_p5, %p3455_p4 }
  0x14   :  { %p3458_p7 = pnand %p3457_p6, %p3451_p3 }
  0x16   :  { %3461 = shalt.err (!%p3458_p7)
}
  0x17   :  { %54 = dma.hbm_to_vmem [thread:$0]  %s4123_s3, 64, %s52_s19, [#allocation6]  }
  0x18   :  { %s3462_s20 = scalar_lea.hbm %s4125_s5, 32 }
  0x19   :  { %p3463_p8 = scmp.ne.s32.totalorder %s4125_s5, %s3462_s20  ;;  %p3466_p9 = scmp.lt.u32.totalorder %s3462_s20, %s4125_s5 }
  0x1b   :  { %p3468_p10 = pnand %p3466_p9, %p3463_p8 }
  0x1d   :  { %3471 = shalt.err (!%p3468_p10)
}
  0x1e   :  { %s3472_s26 = scalar_lea.vmem %s74_s21, 32  ;;  %p3477_p12 = scmp.lt.s32.totalorder %s74_s21, %s74_s21 }
  0x1f   :  { %p3473_p11 = scmp.ne.s32.totalorder %s74_s21, %s3472_s26  ;;  %p3478_p13 = scmp.lt.s32.totalorder %s3472_s26, %s3472_s26 }
  0x21   :  { %p3479_p0 = por %p3478_p13, %p3477_p12 }
  0x23   :  { %p3480_p1 = pnand %p3479_p0, %p3473_p11 }
  0x25   :  { %3483 = shalt.err (!%p3480_p1)
}
  0x26   :  { %76 = dma.hbm_to_vmem [thread:$0]  %s4125_s5, 32, %s74_s21, [#allocation9]  }
  0x27   :  { %s3744_s27 = smov [#allocation11]   ;;  %s3745_s29 = smov [#allocation14]  }
  0x28   :  { %s95_s28 = sshll.u32 %s3744_s27, 4  ;;  %s117_s30 = sshll.u32 %s3745_s29, 4  ;;  %s96_s28 = int_to_ptr.vmem [resolvable:$true] %s95_s28  ;;  %s118_s30 = int_to_ptr.vmem [resolvable:$true] %s117_s30 }
  0x29   :  { %s3484_s18 = scalar_lea.hbm %s4127_s7, 32 }
  0x2a   :  { %p3485_p2 = scmp.ne.s32.totalorder %s4127_s7, %s3484_s18  ;;  %p3488_p3 = scmp.lt.u32.totalorder %s3484_s18, %s4127_s7 }
  0x2c   :  { %p3490_p4 = pnand %p3488_p3, %p3485_p2 }
  0x2e   :  { %3493 = shalt.err (!%p3490_p4)
}
  0x2f   :  { %s3494_s5 = scalar_lea.vmem %s96_s28, 32  ;;  %p3499_p6 = scmp.lt.s32.totalorder %s96_s28, %s96_s28 }
  0x30   :  { %p3495_p5 = scmp.ne.s32.totalorder %s96_s28, %s3494_s5  ;;  %p3500_p7 = scmp.lt.s32.totalorder %s3494_s5, %s3494_s5 }
  0x32   :  { %p3501_p8 = por %p3500_p7, %p3499_p6 }
  0x34   :  { %p3502_p9 = pnand %p3501_p8, %p3495_p5 }
  0x36   :  { %3505 = shalt.err (!%p3502_p9)
}
  0x37   :  { %98 = dma.hbm_to_vmem [thread:$0]  %s4127_s7, 32, %s96_s28, [#allocation12]  }
  0x38   :  { %s3506_s19 = scalar_lea.hbm %s4129_s9, 16 }
  0x39   :  { %p3507_p10 = scmp.ne.s32.totalorder %s4129_s9, %s3506_s19  ;;  %p3510_p11 = scmp.lt.u32.totalorder %s3506_s19, %s4129_s9 }
  0x3b   :  { %p3512_p12 = pnand %p3510_p11, %p3507_p10 }
  0x3d   :  { %3515 = shalt.err (!%p3512_p12)
}
  0x3e   :  { %s3516_s18 = scalar_lea.vmem %s118_s30, 16  ;;  %s3520_s20 = scalar_lea.vmem %s118_s30, 32 }
  0x3f   :  { %p3517_p13 = scmp.ne.s32.totalorder %s118_s30, %s3516_s18  ;;  %p3521_p0 = scmp.lt.s32.totalorder %s118_s30, %s118_s30 }
  0x40   :  { %p3522_p1 = scmp.lt.s32.totalorder %s3520_s20, %s3516_s18 }
  0x42   :  { %p3523_p2 = por %p3522_p1, %p3521_p0 }
  0x44   :  { %p3524_p3 = pnand %p3523_p2, %p3517_p13 }
  0x46   :  { %3527 = shalt.err (!%p3524_p3)
}
  0x47   :  { %120 = dma.hbm_to_vmem [thread:$0]  %s4129_s9, 16, %s118_s30, [#allocation15]  }
  0x48   :  { %s3746_s22 = smov [#allocation2]   ;;  %s3528_s21 = scalar_lea.hbm %s4122_s2, 65536 }
  0x49   :  { %s38_s23 = sshll.u32 %s3746_s22, 4  ;;  %p3529_p4 = scmp.ne.s32.totalorder %s4122_s2, %s3528_s21  ;;  %s39_s23 = int_to_ptr.vmem [resolvable:$true] %s38_s23 }
  0x4a   :  { %p3532_p5 = scmp.lt.u32.totalorder %s3528_s21, %s4122_s2 }
  0x4c   :  { %p3534_p6 = pnand %p3532_p5, %p3529_p4 }
  0x4e   :  { %3537 = shalt.err (!%p3534_p6)
}
  0x4f   :  { %s3538_s27 = scalar_lea.vmem %s39_s23, 65536  ;;  %p3543_p8 = scmp.lt.s32.totalorder %s39_s23, %s39_s23 }
  0x50   :  { %p3539_p7 = scmp.ne.s32.totalorder %s39_s23, %s3538_s27  ;;  %p3544_p9 = scmp.lt.s32.totalorder %s3538_s27, %s3538_s27 }
  0x52   :  { %p3545_p10 = por %p3544_p9, %p3543_p8 }
  0x54   :  { %p3546_p11 = pnand %p3545_p10, %p3539_p7 }
  0x56   :  { %3549 = shalt.err (!%p3546_p11)
}
  0x57   :  { %s3747_s9 = smov 512   ;;  %s3748_s30 = smov 32  }
  0x58   :  { %44 = dma.hbm_to_vmem [thread:$0]  %s4122_s2, 65536, %s39_s23, [#allocation3], %s3747_s9, %s3747_s9, %s3748_s30  }
  0x59   :  { %s3749_s17 = smov [#allocation7]   ;;  %s3550_s28 = scalar_lea.hbm %s4124_s4, 16384 }
  0x5a   :  { %s60_s18 = sshll.u32 %s3749_s17, 4  ;;  %p3551_p12 = scmp.ne.s32.totalorder %s4124_s4, %s3550_s28  ;;  %s61_s18 = int_to_ptr.vmem [resolvable:$true] %s60_s18 }
  0x5b   :  { %p3554_p13 = scmp.lt.u32.totalorder %s3550_s28, %s4124_s4 }
  0x5d   :  { %p3556_p0 = pnand %p3554_p13, %p3551_p12 }
  0x5f   :  { %3559 = shalt.err (!%p3556_p0)
}
  0x60   :  { %s3560_s25 = scalar_lea.vmem %s61_s18, 16384  ;;  %p3565_p2 = scmp.lt.s32.totalorder %s61_s18, %s61_s18 }
  0x61   :  { %p3561_p1 = scmp.ne.s32.totalorder %s61_s18, %s3560_s25  ;;  %p3566_p3 = scmp.lt.s32.totalorder %s3560_s25, %s3560_s25 }
  0x63   :  { %p3567_p4 = por %p3566_p3, %p3565_p2 }
  0x65   :  { %p3568_p5 = pnand %p3567_p4, %p3561_p1 }
  0x67   :  { %3571 = shalt.err (!%p3568_p5)
}
  0x68   :  { %s3750_s2 = smov 256   ;;  %s3751_s23 = smov 16  }
  0x69   :  { %66 = dma.hbm_to_vmem [thread:$0]  %s4124_s4, 16384, %s61_s18, [#allocation6], %s3750_s2, %s3750_s2, %s3751_s23  }
  0x6a   :  { %s3752_s19 = smov [#allocation10]   ;;  %s3753_s9 = smov [#allocation13]  }
  0x6b   :  { %s82_s27 = sshll.u32 %s3752_s19, 4  ;;  %s104_s30 = sshll.u32 %s3753_s9, 4  ;;  %s83_s27 = int_to_ptr.vmem [resolvable:$true] %s82_s27  ;;  %s3919_s30 = int_to_ptr.vmem [resolvable:$true] %s104_s30 }
  0x6c   :  { %s3572_s17 = scalar_lea.hbm %s4126_s6, 8192 }
  0x6d   :  { %p3573_p6 = scmp.ne.s32.totalorder %s4126_s6, %s3572_s17  ;;  %p3576_p7 = scmp.lt.u32.totalorder %s3572_s17, %s4126_s6 }
  0x6f   :  { %p3578_p8 = pnand %p3576_p7, %p3573_p6 }
  0x71   :  { %3581 = shalt.err (!%p3578_p8)
}
  0x72   :  { %s3582_s4 = scalar_lea.vmem %s83_s27, 8192  ;;  %p3587_p10 = scmp.lt.s32.totalorder %s83_s27, %s83_s27 }
  0x73   :  { %p3583_p9 = scmp.ne.s32.totalorder %s83_s27, %s3582_s4  ;;  %p3588_p11 = scmp.lt.s32.totalorder %s3582_s4, %s3582_s4 }
  0x75   :  { %p3589_p12 = por %p3588_p11, %p3587_p10 }
  0x77   :  { %p3590_p13 = pnand %p3589_p12, %p3583_p9 }
  0x79   :  { %3593 = shalt.err (!%p3590_p13)
}
  0x7a   :  { %88 = dma.hbm_to_vmem [thread:$0]  %s4126_s6, 8192, %s83_s27, [#allocation9], %s3750_s2, %s3750_s2, %s3751_s23  }
  0x7b   :  { %s3594_s25 = scalar_lea.hbm %s4128_s8, 2048 }
  0x7c   :  { %p3595_p0 = scmp.ne.s32.totalorder %s4128_s8, %s3594_s25  ;;  %p3598_p1 = scmp.lt.u32.totalorder %s3594_s25, %s4128_s8 }
  0x7e   :  { %p3600_p2 = pnand %p3598_p1, %p3595_p0 }
  0x80   :  { %3603 = shalt.err (!%p3600_p2)
}
  0x81   :  { %s3604_s29 = scalar_lea.vmem %s3919_s30, 2048  ;;  %p3609_p4 = scmp.lt.s32.totalorder %s3919_s30, %s3919_s30 }
  0x82   :  { %p3605_p3 = scmp.ne.s32.totalorder %s3919_s30, %s3604_s29  ;;  %p3610_p5 = scmp.lt.s32.totalorder %s3604_s29, %s3604_s29 }
  0x84   :  { %p3611_p6 = por %p3610_p5, %p3609_p4 }
  0x86   :  { %p3612_p7 = pnand %p3611_p6, %p3605_p3 }
  0x88   :  { %3615 = shalt.err (!%p3612_p7)
}
  0x89   :  { %s3754_s6 = smov 128   ;;  %s3755_s2 = smov 8  }
  0x8a   :  { %110 = dma.hbm_to_vmem [thread:$0]  %s4128_s8, 2048, %s3919_s30, [#allocation12], %s3754_s6, %s3754_s6, %s3755_s2  }
  0x8b   :  { %s3756_s16 = smov [#allocation16]   ;;  %s3616_s28 = scalar_lea.hbm %s4130_s10, 16384 }
  0x8c   :  { %s126_s17 = sshll.u32 %s3756_s16, 4  ;;  %p3617_p8 = scmp.ne.s32.totalorder %s4130_s10, %s3616_s28  ;;  %s127_s17 = int_to_ptr.vmem [resolvable:$true] %s126_s17 }
  0x8d   :  { %p3620_p9 = scmp.lt.u32.totalorder %s3616_s28, %s4130_s10 }
  0x8f   :  { %p3622_p10 = pnand %p3620_p9, %p3617_p8 }
  0x91   :  { %3625 = shalt.err (!%p3622_p10)
}
  0x92   :  { %s3626_s5 = scalar_lea.vmem %s127_s17, 16384  ;;  %p3631_p12 = scmp.lt.s32.totalorder %s127_s17, %s127_s17 }
  0x93   :  { %p3627_p11 = scmp.ne.s32.totalorder %s127_s17, %s3626_s5  ;;  %p3632_p13 = scmp.lt.s32.totalorder %s3626_s5, %s3626_s5 }
  0x95   :  { %p3633_p0 = por %p3632_p13, %p3631_p12 }
  0x97   :  { %p3634_p1 = pnand %p3633_p0, %p3627_p11 }
  0x99   :  { %3637 = shalt.err (!%p3634_p1)
}
  0x9a   :  { %s3757_s8 = smov 1024   ;;  %s3758_s30 = smov 64  }
  0x9b   :  { %132 = dma.hbm_to_vmem [thread:$0]  %s4130_s10, 16384, %s127_s17, [#allocation15], %s3757_s8, %s3757_s8, %s3758_s30  }
  0x9c   :  { %s3759_s26 = smov [#allocation17]   ;;  %s3638_s29 = scalar_lea.hbm %s4131_s11, 128 }
  0x9d   :  { %s139_s3 = sshll.u32 %s3759_s26, 4  ;;  %p3639_p2 = scmp.ne.s32.totalorder %s4131_s11, %s3638_s29  ;;  %s140_s3 = int_to_ptr.vmem [resolvable:$true] %s139_s3 }
  0x9e   :  { %p3642_p3 = scmp.lt.u32.totalorder %s3638_s29, %s4131_s11 }
  0xa0   :  { %p3644_p4 = pnand %p3642_p3, %p3639_p2 }
  0xa2   :  { %3647 = shalt.err (!%p3644_p4)
}
  0xa3   :  { %s3648_s16 = scalar_lea.vmem %s140_s3, 128  ;;  %p3653_p6 = scmp.lt.s32.totalorder %s140_s3, %s140_s3 }
  0xa4   :  { %p3649_p5 = scmp.ne.s32.totalorder %s140_s3, %s3648_s16  ;;  %p3654_p7 = scmp.lt.s32.totalorder %s3648_s16, %s3648_s16 }
  0xa6   :  { %p3655_p8 = por %p3654_p7, %p3653_p6 }
  0xa8   :  { %p3656_p9 = pnand %p3655_p8, %p3649_p5 }
  0xaa   :  { %3659 = shalt.err (!%p3656_p9)
}
  0xab   :  { %142 = dma.hbm_to_vmem [thread:$0]  %s4131_s11, 128, %s140_s3, [#allocation18]  }
  0xac   :  { %3726 = dma.done.wait [#allocation3], 65536  }
  0xad   :  { %3727 = vsyncadd [#allocation3], 4294901760 }
  0xae   :  { %3728 = dma.done.wait [#allocation6], 16448  }
  0xaf   :  { %3729 = vsyncadd [#allocation6], 4294950848 }
  0xb0   :  { %3730 = dma.done.wait [#allocation9], 8224  }
  0xb1   :  { %3731 = vsyncadd [#allocation9], 4294959072 }
  0xb2   :  { %3732 = dma.done.wait [#allocation12], 2080  }
  0xb3   :  { %3733 = vsyncadd [#allocation12], 4294965216 }
  0xb4   :  { %3734 = dma.done.wait [#allocation15], 16400  }
  0xb5   :  { %3735 = vsyncadd [#allocation15], 4294950896 }
  0xb6   :  { %3736 = dma.done.wait [#allocation18], 128  }
  0xb7   :  { %3737 = vsyncadd [#allocation18], 4294967168  ;;  %v176_v0 = vld [vmem:[#allocation2 + $0x8] sm:$0xff]  ;;  %v178_v2 = vld [vmem:[#allocation2 + $0x18] sm:$0xff]  ;;  %vm3762_vm0 = vmmov 0   ;;  %s3765_s18 = smov [#allocation19]  }
  0xb8   :  { %v180_v1 = vld [vmem:[#allocation2 + $0x28] sm:$0xff]  ;;  %v182_v4 = vld [vmem:[#allocation2 + $0x38] sm:$0xff]  ;;  %v175_v5 = vld [vmem:[#allocation2] sm:$0xff]  ;;  %s2407_s24 = sshll.u32 %s3765_s18, 4  ;;  %s2408_s24 = int_to_ptr.vmem [resolvable:$true] %s2407_s24 }
  0xb9   :  { %v2503_v3 = vpack.c.bf16 %v180_v1, %v176_v0  ;;  %v179_v6 = vld [vmem:[#allocation2 + $0x20] sm:$0xff]  ;;  %v2759_v7 = vpack.c.bf16 %v182_v4, %v178_v2  ;;  %v177_v9 = vld [vmem:[#allocation2 + $0x10] sm:$0xff]  ;;  %v184_v11 = vld [vmem:[#allocation2 + $0x48] sm:$0xff] }
  0xba   :  { %v2505_v8 = vpack.c.bf16 %v179_v6, %v175_v5  ;;  %v181_v10 = vld [vmem:[#allocation2 + $0x30] sm:$0xff]  ;;  %v188_v13 = vld [vmem:[#allocation2 + $0x68] sm:$0xff]  ;;  %v186_v14 = vld [vmem:[#allocation2 + $0x58] sm:$0xff] }
  0xbb   :  { %2504 = vmatprep.subr.bf16.mxu0 %v2503_v3  ;;  %v2761_v12 = vpack.c.bf16 %v181_v10, %v177_v9  ;;  %v190_v15 = vld [vmem:[#allocation2 + $0x78] sm:$0xff]  ;;  %2760 = vmatprep.subr.bf16.mxu1 %v2759_v7  ;;  %v2507_v16 = vpack.c.bf16 %v188_v13, %v184_v11  ;;  %v183_v18 = vld [vmem:[#allocation2 + $0x40] sm:$0xff]  ;;  %v185_v20 = vld [vmem:[#allocation2 + $0x50] sm:$0xff] }
  0xbc   :  { %2506 = vmatpush1.bf16.msra.mxu0 %v2505_v8  ;;  %v2763_v17 = vpack.c.bf16 %v190_v15, %v186_v14  ;;  %v187_v19 = vld [vmem:[#allocation2 + $0x60] sm:$0xff]  ;;  %v189_v22 = vld [vmem:[#allocation2 + $0x70] sm:$0xff]  ;;  %v192_v23 = vld [vmem:[#allocation2 + $0x88] sm:$0xff] }
  0xbd   :  { %2762 = vmatpush1.bf16.msra.mxu1 %v2761_v12  ;;  %v2509_v21 = vpack.c.bf16 %v187_v19, %v183_v18  ;;  %v196_v24 = vld [vmem:[#allocation2 + $0xa8] sm:$0xff]  ;;  %2508 = vmatprep.subr.bf16.mxu0 %v2507_v16  ;;  %v2765_v25 = vpack.c.bf16 %v189_v22, %v185_v20  ;;  %v194_v27 = vld [vmem:[#allocation2 + $0x98] sm:$0xff]  ;;  %v191_v29 = vld [vmem:[#allocation2 + $0x80] sm:$0xff] }
  0xbe   :  { %2764 = vmatprep.subr.bf16.mxu1 %v2763_v17  ;;  %v2511_v26 = vpack.c.bf16 %v196_v24, %v192_v23  ;;  %v198_v28 = vld [vmem:[#allocation2 + $0xb8] sm:$0xff]  ;;  %v195_v31 = vld [vmem:[#allocation2 + $0xa0] sm:$0xff]  ;;  %v193_v32 = vld [vmem:[#allocation2 + $0x90] sm:$0xff] }
  0xbf   :  { %v2767_v30 = vpack.c.bf16 %v198_v28, %v194_v27  ;;  %v197_v33 = vld [vmem:[#allocation2 + $0xb0] sm:$0xff]  ;;  %v2513_v34 = vpack.c.bf16 %v195_v31, %v191_v29  ;;  %v200_v35 = vld [vmem:[#allocation2 + $0xc8] sm:$0xff]  ;;  %v202_v37 = vld [vmem:[#allocation2 + $0xd8] sm:$0xff] }
  0xc0   :  { %2510 = vmatpush1.bf16.msra.mxu0 %v2509_v21  ;;  %v204_v36 = vld [vmem:[#allocation2 + $0xe8] sm:$0xff]  ;;  %v2769_v38 = vpack.c.bf16 %v197_v33, %v193_v32  ;;  %v206_v40 = vld [vmem:[#allocation2 + $0xf8] sm:$0xff]  ;;  %v199_v41 = vld [vmem:[#allocation2 + $0xc0] sm:$0xff] }
  0xc1   :  { %2766 = vmatpush1.bf16.msra.mxu1 %v2765_v25  ;;  %2512 = vmatprep.subr.bf16.mxu0 %v2511_v26  ;;  %v2515_v39 = vpack.c.bf16 %v204_v36, %v200_v35  ;;  %v203_v42 = vld [vmem:[#allocation2 + $0xe0] sm:$0xff]  ;;  %v2771_v43 = vpack.c.bf16 %v206_v40, %v202_v37  ;;  %v201_v44 = vld [vmem:[#allocation2 + $0xd0] sm:$0xff]  ;;  %v208_v46 = vld [vmem:[#allocation2 + $0x108] sm:$0xff] }
  0xc2   :  { %2768 = vmatprep.subr.bf16.mxu1 %v2767_v30  ;;  %v205_v45 = vld [vmem:[#allocation2 + $0xf0] sm:$0xff]  ;;  %v212_v47 = vld [vmem:[#allocation2 + $0x128] sm:$0xff]  ;;  %v210_v48 = vld [vmem:[#allocation2 + $0x118] sm:$0xff]  ;;  %v2517_v50 = vpack.c.bf16 %v203_v42, %v199_v41 }
  0xc3   :  { %v214_v49 = vld [vmem:[#allocation2 + $0x138] sm:$0xff]  ;;  %v2773_v51 = vpack.c.bf16 %v205_v45, %v201_v44  ;;  %v2519_v52 = vpack.c.bf16 %v212_v47, %v208_v46  ;;  %v207_v53 = vld [vmem:[#allocation2 + $0x100] sm:$0xff]  ;;  %v209_v55 = vld [vmem:[#allocation2 + $0x110] sm:$0xff]  ;;  %v689_v46 = vlaneseq  ;;  %v3760_v47 = vmov 1983009808  }
  0xc4   :  { %2514 = vmatpush1.bf16.msra.mxu0 %v2513_v34  ;;  %v211_v54 = vld [vmem:[#allocation2 + $0x120] sm:$0xff]  ;;  %v2775_v56 = vpack.c.bf16 %v214_v49, %v210_v48  ;;  %v213_v57 = vld [vmem:[#allocation2 + $0x130] sm:$0xff]  ;;  %v216_v58 = vld [vmem:[#allocation2 + $0x148] sm:$0xff]  ;;  %v713_v48 = vunpack.c.l.s4 %v3760_v47 }
  0xc5   :  { %2770 = vmatpush1.bf16.msra.mxu1 %v2769_v38  ;;  %2516 = vmatprep.subr.bf16.mxu0 %v2515_v39  ;;  %v220_v59 = vld [vmem:[#allocation2 + $0x168] sm:$0xff]  ;;  %v218_v60 = vld [vmem:[#allocation2 + $0x158] sm:$0xff]  ;;  %v2521_v62 = vpack.c.bf16 %v211_v54, %v207_v53  ;;  %v2777_v63 = vpack.c.bf16 %v213_v57, %v209_v55  ;;  %v215_v1 = vld [vmem:[#allocation2 + $0x140] sm:$0xff] }
  0xc6   :  { %2772 = vmatprep.subr.bf16.mxu1 %v2771_v43  ;;  %v222_v61 = vld [vmem:[#allocation2 + $0x178] sm:$0xff]  ;;  %v2523_v0 = vpack.c.bf16 %v220_v59, %v216_v58  ;;  %v219_v2 = vld [vmem:[#allocation2 + $0x160] sm:$0xff]  ;;  %v217_v3 = vld [vmem:[#allocation2 + $0x150] sm:$0xff] }
  0xc7   :  { %v2779_v4 = vpack.c.bf16 %v222_v61, %v218_v60  ;;  %v221_v5 = vld [vmem:[#allocation2 + $0x170] sm:$0xff]  ;;  %v224_v6 = vld [vmem:[#allocation2 + $0x188] sm:$0xff]  ;;  %v226_v8 = vld [vmem:[#allocation2 + $0x198] sm:$0xff]  ;;  %v2525_v10 = vpack.c.bf16 %v219_v2, %v215_v1  ;;  %v3974_v61 = vshrl.u32 %v689_v46, 7 }
  0xc8   :  { %2518 = vmatpush1.bf16.msra.mxu0 %v2517_v50  ;;  %v228_v7 = vld [vmem:[#allocation2 + $0x1a8] sm:$0xff]  ;;  %v230_v9 = vld [vmem:[#allocation2 + $0x1b8] sm:$0xff]  ;;  %v2781_v11 = vpack.c.bf16 %v221_v5, %v217_v3  ;;  %v223_v13 = vld [vmem:[#allocation2 + $0x180] sm:$0xff] }
  0xc9   :  { %2774 = vmatpush1.bf16.msra.mxu1 %v2773_v51  ;;  %2520 = vmatprep.subr.bf16.mxu0 %v2519_v52  ;;  %v2527_v12 = vpack.c.bf16 %v228_v7, %v224_v6  ;;  %v227_v14 = vld [vmem:[#allocation2 + $0x1a0] sm:$0xff]  ;;  %v225_v15 = vld [vmem:[#allocation2 + $0x190] sm:$0xff]  ;;  %v2783_v16 = vpack.c.bf16 %v230_v9, %v226_v8  ;;  %v232_v18 = vld [vmem:[#allocation2 + $0x1c8] sm:$0xff] }
  0xca   :  { %2776 = vmatprep.subr.bf16.mxu1 %v2775_v56  ;;  %v229_v17 = vld [vmem:[#allocation2 + $0x1b0] sm:$0xff]  ;;  %v236_v19 = vld [vmem:[#allocation2 + $0x1e8] sm:$0xff]  ;;  %v234_v20 = vld [vmem:[#allocation2 + $0x1d8] sm:$0xff]  ;;  %v2529_v22 = vpack.c.bf16 %v227_v14, %v223_v13 }
  0xcb   :  { %v238_v21 = vld [vmem:[#allocation2 + $0x1f8] sm:$0xff]  ;;  %v2785_v23 = vpack.c.bf16 %v229_v17, %v225_v15  ;;  %v2531_v24 = vpack.c.bf16 %v236_v19, %v232_v18  ;;  %v231_v25 = vld [vmem:[#allocation2 + $0x1c0] sm:$0xff]  ;;  %v233_v27 = vld [vmem:[#allocation2 + $0x1d0] sm:$0xff] }
  0xcc   :  { %2522 = vmatpush1.bf16.msra.mxu0 %v2521_v62  ;;  %v235_v26 = vld [vmem:[#allocation2 + $0x1e0] sm:$0xff]  ;;  %v2787_v28 = vpack.c.bf16 %v238_v21, %v234_v20  ;;  %v237_v29 = vld [vmem:[#allocation2 + $0x1f0] sm:$0xff]  ;;  %v240_v30 = vld [vmem:[#allocation2 + $0x208] sm:$0xff]  ;;  %v714_v62 = vunpack.c.0.s8 %v713_v48 }
  0xcd   :  { %2778 = vmatpush1.bf16.msra.mxu1 %v2777_v63  ;;  %2524 = vmatprep.subr.bf16.mxu0 %v2523_v0  ;;  %v244_v31 = vld [vmem:[#allocation2 + $0x228] sm:$0xff]  ;;  %v242_v32 = vld [vmem:[#allocation2 + $0x218] sm:$0xff]  ;;  %v2533_v34 = vpack.c.bf16 %v235_v26, %v231_v25  ;;  %v2789_v35 = vpack.c.bf16 %v237_v29, %v233_v27  ;;  %v239_v37 = vld [vmem:[#allocation2 + $0x200] sm:$0xff] }
  0xce   :  { %2780 = vmatprep.subr.bf16.mxu1 %v2779_v4  ;;  %v246_v33 = vld [vmem:[#allocation2 + $0x238] sm:$0xff]  ;;  %v2535_v36 = vpack.c.bf16 %v244_v31, %v240_v30  ;;  %v243_v38 = vld [vmem:[#allocation2 + $0x220] sm:$0xff]  ;;  %v241_v39 = vld [vmem:[#allocation2 + $0x210] sm:$0xff] }
  0xcf   :  { %v2791_v40 = vpack.c.bf16 %v246_v33, %v242_v32  ;;  %v245_v41 = vld [vmem:[#allocation2 + $0x230] sm:$0xff]  ;;  %v248_v42 = vld [vmem:[#allocation2 + $0x248] sm:$0xff]  ;;  %v250_v44 = vld [vmem:[#allocation2 + $0x258] sm:$0xff]  ;;  %v2537_v49 = vpack.c.bf16 %v243_v38, %v239_v37 }
  0xd0   :  { %2526 = vmatpush1.bf16.msra.mxu0 %v2525_v10  ;;  %v252_v43 = vld [vmem:[#allocation2 + $0x268] sm:$0xff]  ;;  %v254_v45 = vld [vmem:[#allocation2 + $0x278] sm:$0xff]  ;;  %v2793_v50 = vpack.c.bf16 %v245_v41, %v241_v39  ;;  %v247_v52 = vld [vmem:[#allocation2 + $0x240] sm:$0xff] }
  0xd1   :  { %2782 = vmatpush1.bf16.msra.mxu1 %v2781_v11  ;;  %2528 = vmatprep.subr.bf16.mxu0 %v2527_v12  ;;  %v2539_v51 = vpack.c.bf16 %v252_v43, %v248_v42  ;;  %v251_v53 = vld [vmem:[#allocation2 + $0x260] sm:$0xff]  ;;  %v249_v54 = vld [vmem:[#allocation2 + $0x250] sm:$0xff]  ;;  %v2795_v55 = vpack.c.bf16 %v254_v45, %v250_v44  ;;  %v256_v57 = vld [vmem:[#allocation2 + $0x288] sm:$0xff]  ;;  %v3977_v11 = vsub.s32 %v714_v62, %v3974_v61 }
  0xd2   :  { %2784 = vmatprep.subr.bf16.mxu1 %v2783_v16  ;;  %v253_v56 = vld [vmem:[#allocation2 + $0x270] sm:$0xff]  ;;  %v260_v58 = vld [vmem:[#allocation2 + $0x2a8] sm:$0xff]  ;;  %v258_v59 = vld [vmem:[#allocation2 + $0x298] sm:$0xff]  ;;  %v2541_v63 = vpack.c.bf16 %v251_v53, %v247_v52 }
  0xd3   :  { %v262_v60 = vld [vmem:[#allocation2 + $0x2b8] sm:$0xff]  ;;  %v2797_v0 = vpack.c.bf16 %v253_v56, %v249_v54  ;;  %v2543_v1 = vpack.c.bf16 %v260_v58, %v256_v57  ;;  %v255_v2 = vld [vmem:[#allocation2 + $0x280] sm:$0xff]  ;;  %v257_v4 = vld [vmem:[#allocation2 + $0x290] sm:$0xff] }
  0xd4   :  { %2530 = vmatpush1.bf16.msra.mxu0 %v2529_v22  ;;  %v259_v3 = vld [vmem:[#allocation2 + $0x2a0] sm:$0xff]  ;;  %v2799_v5 = vpack.c.bf16 %v262_v60, %v258_v59  ;;  %v261_v6 = vld [vmem:[#allocation2 + $0x2b0] sm:$0xff]  ;;  %v264_v7 = vld [vmem:[#allocation2 + $0x2c8] sm:$0xff] }
  0xd5   :  { %2786 = vmatpush1.bf16.msra.mxu1 %v2785_v23  ;;  %2532 = vmatprep.subr.bf16.mxu0 %v2531_v24  ;;  %v268_v8 = vld [vmem:[#allocation2 + $0x2e8] sm:$0xff]  ;;  %v266_v9 = vld [vmem:[#allocation2 + $0x2d8] sm:$0xff]  ;;  %v2545_v12 = vpack.c.bf16 %v259_v3, %v255_v2  ;;  %v263_v13 = vld [vmem:[#allocation2 + $0x2c0] sm:$0xff]  ;;  %v2801_v14 = vpack.c.bf16 %v261_v6, %v257_v4 }
  0xd6   :  { %2788 = vmatprep.subr.bf16.mxu1 %v2787_v28  ;;  %v270_v10 = vld [vmem:[#allocation2 + $0x2f8] sm:$0xff]  ;;  %v2547_v15 = vpack.c.bf16 %v268_v8, %v264_v7  ;;  %v267_v16 = vld [vmem:[#allocation2 + $0x2e0] sm:$0xff]  ;;  %v265_v17 = vld [vmem:[#allocation2 + $0x2d0] sm:$0xff] }
  0xd7   :  { %v269_v18 = vld [vmem:[#allocation2 + $0x2f0] sm:$0xff]  ;;  %v2803_v19 = vpack.c.bf16 %v270_v10, %v266_v9  ;;  %v272_v20 = vld [vmem:[#allocation2 + $0x308] sm:$0xff]  ;;  %v3982_v22 = vld [vmem:[%s4120_s0] sm:$0xff]  ;;  %v2549_v26 = vpack.c.bf16 %v267_v16, %v263_v13 }
  0xd8   :  { %2534 = vmatpush1.bf16.msra.mxu0 %v2533_v34  ;;  %v276_v21 = vld [vmem:[#allocation2 + $0x328] sm:$0xff]  ;;  %v274_v23 = vld [vmem:[#allocation2 + $0x318] sm:$0xff]  ;;  %v3986_v25 = vrot.slane %v3982_v22, %v3977_v11  ;;  %v2805_v27 = vpack.c.bf16 %v269_v18, %v265_v17  ;;  %v271_v29 = vld [vmem:[#allocation2 + $0x300] sm:$0xff]  ;;  %v711_v8 = vcombine.high %v3982_v22, %v3982_v22 }
  0xd9   :  { %2790 = vmatpush1.bf16.msra.mxu1 %v2789_v35  ;;  %2536 = vmatprep.subr.bf16.mxu0 %v2535_v36  ;;  %v278_v24 = vld [vmem:[#allocation2 + $0x338] sm:$0xff]  ;;  %v2551_v28 = vpack.c.bf16 %v276_v21, %v272_v20  ;;  %v275_v30 = vld [vmem:[#allocation2 + $0x320] sm:$0xff]  ;;  %v273_v31 = vld [vmem:[#allocation2 + $0x310] sm:$0xff] }
  0xda   :  { %2792 = vmatprep.subr.bf16.mxu1 %v2791_v40  ;;  %v726_v32 = vcombine.high %v3986_v25, %v3986_v25  ;;  %v2807_v33 = vpack.c.bf16 %v278_v24, %v274_v23  ;;  %v277_v34 = vld [vmem:[#allocation2 + $0x330] sm:$0xff]  ;;  %v280_v35 = vld [vmem:[#allocation2 + $0x348] sm:$0xff]  ;;  %v282_v37 = vld [vmem:[#allocation2 + $0x358] sm:$0xff]  ;;  %v2553_v39 = vpack.c.bf16 %v275_v30, %v271_v29  ;;  %v3993_v22 = vrot.slane %v711_v8, %v3977_v11 }
  0xdb   :  { %v284_v36 = vld [vmem:[#allocation2 + $0x368] sm:$0xff]  ;;  %v286_v38 = vld [vmem:[#allocation2 + $0x378] sm:$0xff]  ;;  %v2809_v40 = vpack.c.bf16 %v277_v34, %v273_v31  ;;  %v279_v42 = vld [vmem:[#allocation2 + $0x340] sm:$0xff] }
  0xdc   :  { %2538 = vmatpush1.bf16.msra.mxu0 %v2537_v49  ;;  %817 = vmatprep.mubr.f32.mxu0 %v726_v32  ;;  %v2555_v41 = vpack.c.bf16 %v284_v36, %v280_v35  ;;  %v283_v43 = vld [vmem:[#allocation2 + $0x360] sm:$0xff]  ;;  %v281_v44 = vld [vmem:[#allocation2 + $0x350] sm:$0xff]  ;;  %v2811_v45 = vpack.c.bf16 %v286_v38, %v282_v37  ;;  %v288_v47 = vld [vmem:[#allocation2 + $0x388] sm:$0xff]  ;;  %v727_v38 = vcombine.high %v3993_v22, %v3993_v22 }
  0xdd   :  { %2794 = vmatpush1.bf16.msra.mxu1 %v2793_v50  ;;  %2540 = vmatprep.subr.bf16.mxu0 %v2539_v51  ;;  %v285_v46 = vld [vmem:[#allocation2 + $0x370] sm:$0xff]  ;;  %v292_v48 = vld [vmem:[#allocation2 + $0x3a8] sm:$0xff]  ;;  %v290_v49 = vld [vmem:[#allocation2 + $0x398] sm:$0xff]  ;;  %v2557_v51 = vpack.c.bf16 %v283_v43, %v279_v42 }
  0xde   :  { %2796 = vmatprep.subr.bf16.mxu1 %v2795_v55  ;;  %1101 = vmatprep.mubr.f32.mxu1 %v726_v32  ;;  %v294_v50 = vld [vmem:[#allocation2 + $0x3b8] sm:$0xff]  ;;  %v2813_v52 = vpack.c.bf16 %v285_v46, %v281_v44  ;;  %v2559_v53 = vpack.c.bf16 %v292_v48, %v288_v47  ;;  %v287_v54 = vld [vmem:[#allocation2 + $0x380] sm:$0xff]  ;;  %v289_v56 = vld [vmem:[#allocation2 + $0x390] sm:$0xff] }
  0xdf   :  { %v291_v55 = vld [vmem:[#allocation2 + $0x3a0] sm:$0xff]  ;;  %v2815_v57 = vpack.c.bf16 %v294_v50, %v290_v49  ;;  %v293_v58 = vld [vmem:[#allocation2 + $0x3b0] sm:$0xff]  ;;  %v296_v59 = vld [vmem:[#allocation2 + $0x3c8] sm:$0xff] }
  0xe0   :  { %2542 = vmatpush1.bf16.msra.mxu0 %v2541_v63  ;;  %v300_v60 = vld [vmem:[#allocation2 + $0x3e8] sm:$0xff]  ;;  %v298_v62 = vld [vmem:[#allocation2 + $0x3d8] sm:$0xff]  ;;  %v295_v3 = vld [vmem:[#allocation2 + $0x3c0] sm:$0xff] }
  0xe1   :  { %2798 = vmatpush1.bf16.msra.mxu1 %v2797_v0  ;;  %2544 = vmatprep.subr.bf16.mxu0 %v2543_v1  ;;  %v302_v63 = vld [vmem:[#allocation2 + $0x3f8] sm:$0xff]  ;;  %v2561_v0 = vpack.c.bf16 %v291_v55, %v287_v54  ;;  %v2817_v1 = vpack.c.bf16 %v293_v58, %v289_v56  ;;  %v2563_v2 = vpack.c.bf16 %v300_v60, %v296_v59  ;;  %v299_v4 = vld [vmem:[#allocation2 + $0x3e0] sm:$0xff]  ;;  %v301_v7 = vld [vmem:[#allocation2 + $0x3f0] sm:$0xff] }
  0xe2   :  { %2800 = vmatprep.subr.bf16.mxu1 %v2799_v5  ;;  %v297_v5 = vld [vmem:[#allocation2 + $0x3d0] sm:$0xff]  ;;  %v2819_v6 = vpack.c.bf16 %v302_v63, %v298_v62  ;;  %v304_v9 = vld [vmem:[#allocation2 + $0x408] sm:$0xff]  ;;  %v310_v13 = vld [vmem:[#allocation2 + $0x438] sm:$0xff] }
  0xe3   :  { %v308_v10 = vld [vmem:[#allocation2 + $0x428] sm:$0xff]  ;;  %v303_v17 = vld [vmem:[#allocation2 + $0x400] sm:$0xff]  ;;  %v309_v21 = vld [vmem:[#allocation2 + $0x430] sm:$0xff] }
  0xe4   :  { %2546 = vmatpush1.bf16.msra.mxu0 %v2545_v12  ;;  %v306_v12 = vld [vmem:[#allocation2 + $0x418] sm:$0xff]  ;;  %v2567_v16 = vpack.c.bf16 %v308_v10, %v304_v9  ;;  %v307_v18 = vld [vmem:[#allocation2 + $0x420] sm:$0xff]  ;;  %v312_v23 = vld [vmem:[#allocation2 + $0x448] sm:$0xff] }
  0xe5   :  { %2802 = vmatpush1.bf16.msra.mxu1 %v2801_v14  ;;  %2548 = vmatprep.subr.bf16.mxu0 %v2547_v15  ;;  %v2565_v14 = vpack.c.bf16 %v299_v4, %v295_v3  ;;  %v2821_v15 = vpack.c.bf16 %v301_v7, %v297_v5  ;;  %v2823_v20 = vpack.c.bf16 %v310_v13, %v306_v12  ;;  %v316_v24 = vld [vmem:[#allocation2 + $0x468] sm:$0xff]  ;;  %v311_v31 = vld [vmem:[#allocation2 + $0x440] sm:$0xff]  ;;  %v317_v35 = vld [vmem:[#allocation2 + $0x470] sm:$0xff] }
  0xe6   :  { %2804 = vmatprep.subr.bf16.mxu1 %v2803_v19  ;;  %v305_v19 = vld [vmem:[#allocation2 + $0x410] sm:$0xff]  ;;  %v2571_v30 = vpack.c.bf16 %v316_v24, %v312_v23  ;;  %v315_v32 = vld [vmem:[#allocation2 + $0x460] sm:$0xff]  ;;  %v320_v36 = vld [vmem:[#allocation2 + $0x488] sm:$0xff] }
  0xe7   :  { %v2825_v29 = vpack.c.bf16 %v309_v21, %v305_v19  ;;  %v324_v37 = vld [vmem:[#allocation2 + $0x4a8] sm:$0xff]  ;;  %v319_v44 = vld [vmem:[#allocation2 + $0x480] sm:$0xff]  ;;  %v321_v46 = vld [vmem:[#allocation2 + $0x490] sm:$0xff] }
  0xe8   :  { %2550 = vmatpush1.bf16.msra.mxu0 %v2549_v26  ;;  %v314_v26 = vld [vmem:[#allocation2 + $0x458] sm:$0xff]  ;;  %v2575_v43 = vpack.c.bf16 %v324_v37, %v320_v36  ;;  %v325_v48 = vld [vmem:[#allocation2 + $0x4b0] sm:$0xff]  ;;  %v328_v49 = vld [vmem:[#allocation2 + $0x4c8] sm:$0xff] }
  0xe9   :  { %2806 = vmatpush1.bf16.msra.mxu1 %v2805_v27  ;;  %2552 = vmatprep.subr.bf16.mxu0 %v2551_v28  ;;  %v318_v27 = vld [vmem:[#allocation2 + $0x478] sm:$0xff]  ;;  %v2569_v28 = vpack.c.bf16 %v307_v18, %v303_v17  ;;  %v332_v50 = vld [vmem:[#allocation2 + $0x4e8] sm:$0xff]  ;;  %v327_v55 = vld [vmem:[#allocation2 + $0x4c0] sm:$0xff] }
  0xea   :  { %2808 = vmatprep.subr.bf16.mxu1 %v2807_v33  ;;  %v313_v33 = vld [vmem:[#allocation2 + $0x450] sm:$0xff]  ;;  %v2827_v34 = vpack.c.bf16 %v318_v27, %v314_v26  ;;  %v2579_v54 = vpack.c.bf16 %v332_v50, %v328_v49  ;;  %v331_v56 = vld [vmem:[#allocation2 + $0x4e0] sm:$0xff]  ;;  %v336_v60 = vld [vmem:[#allocation2 + $0x508] sm:$0xff] }
  0xeb   :  { %v2829_v42 = vpack.c.bf16 %v317_v35, %v313_v33  ;;  %v333_v59 = vld [vmem:[#allocation2 + $0x4f0] sm:$0xff]  ;;  %v340_v62 = vld [vmem:[#allocation2 + $0x528] sm:$0xff]  ;;  %v338_v63 = vld [vmem:[#allocation2 + $0x518] sm:$0xff] }
  0xec   :  { %2554 = vmatpush1.bf16.msra.mxu0 %v2553_v39  ;;  %v322_v39 = vld [vmem:[#allocation2 + $0x498] sm:$0xff]  ;;  %v2583_v3 = vpack.c.bf16 %v340_v62, %v336_v60  ;;  %v335_v4 = vld [vmem:[#allocation2 + $0x500] sm:$0xff]  ;;  %v341_v8 = vld [vmem:[#allocation2 + $0x530] sm:$0xff] }
  0xed   :  { %2810 = vmatpush1.bf16.msra.mxu1 %v2809_v40  ;;  %2556 = vmatprep.subr.bf16.mxu0 %v2555_v41  ;;  %v326_v40 = vld [vmem:[#allocation2 + $0x4b8] sm:$0xff]  ;;  %v2573_v41 = vpack.c.bf16 %v315_v32, %v311_v31  ;;  %v339_v5 = vld [vmem:[#allocation2 + $0x520] sm:$0xff]  ;;  %v344_v9 = vld [vmem:[#allocation2 + $0x548] sm:$0xff] }
  0xee   :  { %2812 = vmatprep.subr.bf16.mxu1 %v2811_v45  ;;  %v323_v45 = vld [vmem:[#allocation2 + $0x4a0] sm:$0xff]  ;;  %v2831_v47 = vpack.c.bf16 %v326_v40, %v322_v39  ;;  %v348_v10 = vld [vmem:[#allocation2 + $0x568] sm:$0xff]  ;;  %v346_v12 = vld [vmem:[#allocation2 + $0x558] sm:$0xff] }
  0xef   :  { %v350_v13 = vld [vmem:[#allocation2 + $0x578] sm:$0xff]  ;;  %v343_v17 = vld [vmem:[#allocation2 + $0x540] sm:$0xff]  ;;  %v345_v19 = vld [vmem:[#allocation2 + $0x550] sm:$0xff] }
  0xf0   :  { %2558 = vmatpush1.bf16.msra.mxu0 %v2557_v51  ;;  %v330_v51 = vld [vmem:[#allocation2 + $0x4d8] sm:$0xff]  ;;  %v347_v18 = vld [vmem:[#allocation2 + $0x560] sm:$0xff]  ;;  %v349_v21 = vld [vmem:[#allocation2 + $0x570] sm:$0xff] }
  0xf1   :  { %2814 = vmatpush1.bf16.msra.mxu1 %v2813_v52  ;;  %2560 = vmatprep.subr.bf16.mxu0 %v2559_v53  ;;  %v334_v52 = vld [vmem:[#allocation2 + $0x4f8] sm:$0xff]  ;;  %v2577_v53 = vpack.c.bf16 %v323_v45, %v319_v44  ;;  %v352_v23 = vld [vmem:[#allocation2 + $0x588] sm:$0xff]  ;;  %v351_v31 = vld [vmem:[#allocation2 + $0x580] sm:$0xff] }
  0xf2   :  { %2816 = vmatprep.subr.bf16.mxu1 %v2815_v57  ;;  %v329_v57 = vld [vmem:[#allocation2 + $0x4d0] sm:$0xff]  ;;  %v2835_v58 = vpack.c.bf16 %v334_v52, %v330_v51  ;;  %v356_v24 = vld [vmem:[#allocation2 + $0x5a8] sm:$0xff]  ;;  %v354_v26 = vld [vmem:[#allocation2 + $0x598] sm:$0xff] }
  0xf3   :  { %v358_v27 = vld [vmem:[#allocation2 + $0x5b8] sm:$0xff]  ;;  %v355_v32 = vld [vmem:[#allocation2 + $0x5a0] sm:$0xff]  ;;  %v353_v33 = vld [vmem:[#allocation2 + $0x590] sm:$0xff] }
  0xf4   :  { %2562 = vmatpush1.bf16.msra.mxu0 %v2561_v0  ;;  %v342_v0 = vld [vmem:[#allocation2 + $0x538] sm:$0xff]  ;;  %v357_v35 = vld [vmem:[#allocation2 + $0x5b0] sm:$0xff]  ;;  %v360_v36 = vld [vmem:[#allocation2 + $0x5c8] sm:$0xff]  ;;  %v2593_v40 = vpack.c.bf16 %v355_v32, %v351_v31 }
  0xf5   :  { %2818 = vmatpush1.bf16.msra.mxu1 %v2817_v1  ;;  %2564 = vmatprep.subr.bf16.mxu0 %v2563_v2  ;;  %v2581_v1 = vpack.c.bf16 %v331_v56, %v327_v55  ;;  %v2837_v2 = vpack.c.bf16 %v333_v59, %v329_v57  ;;  %v2839_v7 = vpack.c.bf16 %v342_v0, %v338_v63  ;;  %v364_v37 = vld [vmem:[#allocation2 + $0x5e8] sm:$0xff]  ;;  %v366_v39 = vld [vmem:[#allocation2 + $0x5f8] sm:$0xff]  ;;  %v363_v44 = vld [vmem:[#allocation2 + $0x5e0] sm:$0xff] }
  0xf6   :  { %2820 = vmatprep.subr.bf16.mxu1 %v2819_v6  ;;  %v337_v6 = vld [vmem:[#allocation2 + $0x510] sm:$0xff]  ;;  %v372_v49 = vld [vmem:[#allocation2 + $0x628] sm:$0xff]  ;;  %v370_v50 = vld [vmem:[#allocation2 + $0x618] sm:$0xff] }
  0xf7   :  { %v361_v45 = vld [vmem:[#allocation2 + $0x5d0] sm:$0xff]  ;;  %v374_v51 = vld [vmem:[#allocation2 + $0x638] sm:$0xff]  ;;  %v371_v55 = vld [vmem:[#allocation2 + $0x620] sm:$0xff] }
  0xf8   :  { %2566 = vmatpush1.bf16.msra.mxu0 %v2565_v14  ;;  %v2585_v14 = vpack.c.bf16 %v339_v5, %v335_v4  ;;  %v369_v56 = vld [vmem:[#allocation2 + $0x610] sm:$0xff]  ;;  %v2855_v57 = vpack.c.bf16 %v374_v51, %v370_v50  ;;  %v376_v59 = vld [vmem:[#allocation2 + $0x648] sm:$0xff]  ;;  %v378_v62 = vld [vmem:[#allocation2 + $0x658] sm:$0xff] }
  0xf9   :  { %2822 = vmatpush1.bf16.msra.mxu1 %v2821_v15  ;;  %2568 = vmatprep.subr.bf16.mxu0 %v2567_v16  ;;  %v2841_v15 = vpack.c.bf16 %v341_v8, %v337_v6  ;;  %v2587_v16 = vpack.c.bf16 %v348_v10, %v344_v9  ;;  %v380_v60 = vld [vmem:[#allocation2 + $0x668] sm:$0xff]  ;;  %v382_v63 = vld [vmem:[#allocation2 + $0x678] sm:$0xff]  ;;  %v379_v4 = vld [vmem:[#allocation2 + $0x660] sm:$0xff] }
  0xfa   :  { %2824 = vmatprep.subr.bf16.mxu1 %v2823_v20  ;;  %v2843_v20 = vpack.c.bf16 %v350_v13, %v346_v12  ;;  %v377_v5 = vld [vmem:[#allocation2 + $0x650] sm:$0xff]  ;;  %v2859_v6 = vpack.c.bf16 %v382_v63, %v378_v62  ;;  %v384_v8 = vld [vmem:[#allocation2 + $0x688] sm:$0xff]  ;;  %v386_v10 = vld [vmem:[#allocation2 + $0x698] sm:$0xff] }
  0xfb   :  { %818 = vmatmul.mubr.f32.vlgmr.msra.gmra.mrb[0].mxu0 %v3986_v25  ;;  %v388_v9 = vld [vmem:[#allocation2 + $0x6a8] sm:$0xff]  ;;  %v390_v12 = vld [vmem:[#allocation2 + $0x6b8] sm:$0xff]  ;;  %v395_v31 = vld [vmem:[#allocation2 + $0x6e0] sm:$0xff] }
  0xfc   :  { %2570 = vmatpush1.bf16.msra.mxu0 %v2569_v28  ;;  %1102 = vmatmul.mubr.f32.vlgmr.msra.gmra.mrb[0].mxu1 %v3986_v25  ;;  %v2833_v25 = vpack.c.bf16 %v325_v48, %v321_v46  ;;  %v2589_v28 = vpack.c.bf16 %v347_v18, %v343_v17  ;;  %v368_v48 = vld [vmem:[#allocation2 + $0x608] sm:$0xff]  ;;  %v387_v17 = vld [vmem:[#allocation2 + $0x6a0] sm:$0xff]  ;;  %v385_v18 = vld [vmem:[#allocation2 + $0x690] sm:$0xff] }
  0xfd   :  { %2826 = vmatpush1.bf16.msra.mxu1 %v2825_v29  ;;  %2572 = vmatprep.subr.bf16.mxu0 %v2571_v30  ;;  %v2845_v29 = vpack.c.bf16 %v349_v21, %v345_v19  ;;  %v2591_v30 = vpack.c.bf16 %v356_v24, %v352_v23  ;;  %v2863_v19 = vpack.c.bf16 %v390_v12, %v386_v10  ;;  %v392_v21 = vld [vmem:[#allocation2 + $0x6c8] sm:$0xff]  ;;  %v394_v24 = vld [vmem:[#allocation2 + $0x6d8] sm:$0xff]  ;;  %v393_v32 = vld [vmem:[#allocation2 + $0x6d0] sm:$0xff] }
  0xfe   :  { %2828 = vmatprep.subr.bf16.mxu1 %v2827_v34  ;;  %888 = vmatprep.mubr.f32.mxu0 %v727_v38  ;;  %v2847_v34 = vpack.c.bf16 %v358_v27, %v354_v26  ;;  %v396_v23 = vld [vmem:[#allocation2 + $0x6e8] sm:$0xff]  ;;  %v398_v26 = vld [vmem:[#allocation2 + $0x6f8] sm:$0xff] }
  0xff   :  { %1172 = vmatprep.mubr.f32.mxu1 %v727_v38  ;;  %v362_v38 = vld [vmem:[#allocation2 + $0x5d8] sm:$0xff] }
 0x100   :  { %2574 = vmatpush1.bf16.msra.mxu0 %v2573_v41  ;;  %v2849_v41 = vpack.c.bf16 %v357_v35, %v353_v33  ;;  %v2851_v46 = vpack.c.bf16 %v366_v39, %v362_v38  ;;  %v2867_v33 = vpack.c.bf16 %v398_v26, %v394_v24  ;;  %v400_v35 = vld [vmem:[#allocation2 + $0x708] sm:$0xff]  ;;  %v406_v38 = vld [vmem:[#allocation2 + $0x738] sm:$0xff] }
 0x101   :  { %2830 = vmatpush1.bf16.msra.mxu1 %v2829_v42  ;;  %2576 = vmatprep.subr.bf16.mxu0 %v2575_v43  ;;  %v2595_v42 = vpack.c.bf16 %v364_v37, %v360_v36  ;;  %v359_v43 = vld [vmem:[#allocation2 + $0x5c0] sm:$0xff]  ;;  %v404_v36 = vld [vmem:[#allocation2 + $0x728] sm:$0xff]  ;;  %v402_v37 = vld [vmem:[#allocation2 + $0x718] sm:$0xff] }
 0x102   :  { %2832 = vmatprep.subr.bf16.mxu1 %v2831_v47  ;;  %v365_v47 = vld [vmem:[#allocation2 + $0x5f0] sm:$0xff]  ;;  %v2597_v52 = vpack.c.bf16 %v363_v44, %v359_v43  ;;  %v403_v43 = vld [vmem:[#allocation2 + $0x720] sm:$0xff]  ;;  %v414_v50 = vld [vmem:[#allocation2 + $0x778] sm:$0xff] }
 0x103   :  { %v401_v44 = vld [vmem:[#allocation2 + $0x710] sm:$0xff]  ;;  %v422_v62 = vld [vmem:[#allocation2 + $0x7b8] sm:$0xff] }
 0x104   :  { %2578 = vmatpush1.bf16.msra.mxu0 %v2577_v53  ;;  %v2853_v53 = vpack.c.bf16 %v365_v47, %v361_v45  ;;  %v2871_v45 = vpack.c.bf16 %v406_v38, %v402_v37  ;;  %v408_v47 = vld [vmem:[#allocation2 + $0x748] sm:$0xff]  ;;  %v430_v10 = vld [vmem:[#allocation2 + $0x7f8] sm:$0xff] }
 0x105   :  { %2834 = vmatpush1.bf16.msra.mxu1 %v2833_v25  ;;  %2580 = vmatprep.subr.bf16.mxu0 %v2579_v54  ;;  %v2599_v25 = vpack.c.bf16 %v372_v49, %v368_v48  ;;  %v367_v54 = vld [vmem:[#allocation2 + $0x600] sm:$0xff]  ;;  %v412_v48 = vld [vmem:[#allocation2 + $0x768] sm:$0xff]  ;;  %v410_v49 = vld [vmem:[#allocation2 + $0x758] sm:$0xff] }
 0x106   :  { %2836 = vmatprep.subr.bf16.mxu1 %v2835_v58  ;;  %v373_v58 = vld [vmem:[#allocation2 + $0x630] sm:$0xff]  ;;  %v2601_v0 = vpack.c.bf16 %v371_v55, %v367_v54  ;;  %v411_v54 = vld [vmem:[#allocation2 + $0x760] sm:$0xff]  ;;  %v438_v24 = vld [vmem:[#allocation2 + $0x838] sm:$0xff] }
 0x107   :  { %v409_v55 = vld [vmem:[#allocation2 + $0x750] sm:$0xff]  ;;  %v446_v37 = vld [vmem:[#allocation2 + $0x878] sm:$0xff] }
 0x108   :  { %2582 = vmatpush1.bf16.msra.mxu0 %v2581_v1  ;;  %v2857_v1 = vpack.c.bf16 %v373_v58, %v369_v56  ;;  %v2875_v56 = vpack.c.bf16 %v414_v50, %v410_v49  ;;  %v416_v58 = vld [vmem:[#allocation2 + $0x788] sm:$0xff]  ;;  %v450_v50 = vld [vmem:[#allocation2 + $0x898] sm:$0xff] }
 0x109   :  { %2838 = vmatpush1.bf16.msra.mxu1 %v2837_v2  ;;  %2584 = vmatprep.subr.bf16.mxu0 %v2583_v3  ;;  %v2603_v2 = vpack.c.bf16 %v380_v60, %v376_v59  ;;  %v375_v3 = vld [vmem:[#allocation2 + $0x640] sm:$0xff]  ;;  %v420_v59 = vld [vmem:[#allocation2 + $0x7a8] sm:$0xff]  ;;  %v418_v60 = vld [vmem:[#allocation2 + $0x798] sm:$0xff] }
 0x10a   :  { %2840 = vmatprep.subr.bf16.mxu1 %v2839_v7  ;;  %v381_v7 = vld [vmem:[#allocation2 + $0x670] sm:$0xff]  ;;  %v2605_v13 = vpack.c.bf16 %v379_v4, %v375_v3  ;;  %v419_v3 = vld [vmem:[#allocation2 + $0x7a0] sm:$0xff]  ;;  %v452_v49 = vld [vmem:[#allocation2 + $0x8a8] sm:$0xff] }
 0x10b   :  { %v417_v4 = vld [vmem:[#allocation2 + $0x790] sm:$0xff] }
 0x10c   :  { %2586 = vmatpush1.bf16.msra.mxu0 %v2585_v14  ;;  %v2861_v14 = vpack.c.bf16 %v381_v7, %v377_v5  ;;  %v2879_v5 = vpack.c.bf16 %v422_v62, %v418_v60  ;;  %v424_v7 = vld [vmem:[#allocation2 + $0x7c8] sm:$0xff] }
 0x10d   :  { %2842 = vmatpush1.bf16.msra.mxu1 %v2841_v15  ;;  %2588 = vmatprep.subr.bf16.mxu0 %v2587_v16  ;;  %v2607_v15 = vpack.c.bf16 %v388_v9, %v384_v8  ;;  %v383_v16 = vld [vmem:[#allocation2 + $0x680] sm:$0xff]  ;;  %v428_v8 = vld [vmem:[#allocation2 + $0x7e8] sm:$0xff]  ;;  %v426_v9 = vld [vmem:[#allocation2 + $0x7d8] sm:$0xff] }
 0x10e   :  { %2844 = vmatprep.subr.bf16.mxu1 %v2843_v20  ;;  %v389_v20 = vld [vmem:[#allocation2 + $0x6b0] sm:$0xff]  ;;  %v2609_v27 = vpack.c.bf16 %v387_v17, %v383_v16  ;;  %v427_v16 = vld [vmem:[#allocation2 + $0x7e0] sm:$0xff]  ;;  %v456_v60 = vld [vmem:[#allocation2 + $0x8c8] sm:$0xff] }
 0x10f   :  { %v425_v17 = vld [vmem:[#allocation2 + $0x7d0] sm:$0xff]  ;;  %v460_v62 = vld [vmem:[#allocation2 + $0x8e8] sm:$0xff] }
 0x110   :  { %2590 = vmatpush1.bf16.msra.mxu0 %v2589_v28  ;;  %v2865_v28 = vpack.c.bf16 %v389_v20, %v385_v18  ;;  %v2883_v18 = vpack.c.bf16 %v430_v10, %v426_v9  ;;  %v432_v20 = vld [vmem:[#allocation2 + $0x808] sm:$0xff]  ;;  %v466_v10 = vld [vmem:[#allocation2 + $0x918] sm:$0xff] }
 0x111   :  { %2846 = vmatpush1.bf16.msra.mxu1 %v2845_v29  ;;  %2592 = vmatprep.subr.bf16.mxu0 %v2591_v30  ;;  %v2611_v29 = vpack.c.bf16 %v396_v23, %v392_v21  ;;  %v391_v30 = vld [vmem:[#allocation2 + $0x6c0] sm:$0xff]  ;;  %v436_v21 = vld [vmem:[#allocation2 + $0x828] sm:$0xff]  ;;  %v434_v23 = vld [vmem:[#allocation2 + $0x818] sm:$0xff] }
 0x112   :  { %2848 = vmatprep.subr.bf16.mxu1 %v2847_v34  ;;  %v397_v34 = vld [vmem:[#allocation2 + $0x6f0] sm:$0xff]  ;;  %v2613_v39 = vpack.c.bf16 %v395_v31, %v391_v30  ;;  %v435_v30 = vld [vmem:[#allocation2 + $0x820] sm:$0xff]  ;;  %v468_v9 = vld [vmem:[#allocation2 + $0x928] sm:$0xff] }
 0x113   :  { %v433_v31 = vld [vmem:[#allocation2 + $0x810] sm:$0xff] }
 0x114   :  { %2594 = vmatpush1.bf16.msra.mxu0 %v2593_v40  ;;  %v2869_v40 = vpack.c.bf16 %v397_v34, %v393_v32  ;;  %v2887_v32 = vpack.c.bf16 %v438_v24, %v434_v23  ;;  %v440_v34 = vld [vmem:[#allocation2 + $0x848] sm:$0xff]  ;;  %v474_v24 = vld [vmem:[#allocation2 + $0x958] sm:$0xff] }
 0x115   :  { %2850 = vmatpush1.bf16.msra.mxu1 %v2849_v41  ;;  %2596 = vmatprep.subr.bf16.mxu0 %v2595_v42  ;;  %v2615_v41 = vpack.c.bf16 %v404_v36, %v400_v35  ;;  %v399_v42 = vld [vmem:[#allocation2 + $0x700] sm:$0xff]  ;;  %v444_v35 = vld [vmem:[#allocation2 + $0x868] sm:$0xff]  ;;  %v442_v36 = vld [vmem:[#allocation2 + $0x858] sm:$0xff] }
 0x116   :  { %2852 = vmatprep.subr.bf16.mxu1 %v2851_v46  ;;  %v405_v46 = vld [vmem:[#allocation2 + $0x730] sm:$0xff]  ;;  %v2617_v51 = vpack.c.bf16 %v403_v43, %v399_v42  ;;  %v439_v42 = vld [vmem:[#allocation2 + $0x840] sm:$0xff]  ;;  %v476_v23 = vld [vmem:[#allocation2 + $0x968] sm:$0xff] }
 0x117   :  { %v443_v43 = vld [vmem:[#allocation2 + $0x860] sm:$0xff] }
 0x118   :  { %2598 = vmatpush1.bf16.msra.mxu0 %v2597_v52  ;;  %v2873_v52 = vpack.c.bf16 %v405_v46, %v401_v44  ;;  %v441_v44 = vld [vmem:[#allocation2 + $0x850] sm:$0xff]  ;;  %v2891_v46 = vpack.c.bf16 %v446_v37, %v442_v36  ;;  %v484_v36 = vld [vmem:[#allocation2 + $0x9a8] sm:$0xff]  ;;  %v482_v37 = vld [vmem:[#allocation2 + $0x998] sm:$0xff] }
 0x119   :  { %2854 = vmatpush1.bf16.msra.mxu1 %v2853_v53  ;;  %2600 = vmatprep.subr.bf16.mxu0 %v2599_v25  ;;  %v2619_v53 = vpack.c.bf16 %v412_v48, %v408_v47  ;;  %v407_v25 = vld [vmem:[#allocation2 + $0x740] sm:$0xff]  ;;  %v445_v47 = vld [vmem:[#allocation2 + $0x870] sm:$0xff]  ;;  %v448_v48 = vld [vmem:[#allocation2 + $0x888] sm:$0xff] }
 0x11a   :  { %2856 = vmatprep.subr.bf16.mxu1 %v2855_v57  ;;  %v413_v57 = vld [vmem:[#allocation2 + $0x770] sm:$0xff]  ;;  %v2621_v63 = vpack.c.bf16 %v411_v54, %v407_v25  ;;  %v2893_v25 = vpack.c.bf16 %v445_v47, %v441_v44  ;;  %v2639_v54 = vpack.c.bf16 %v452_v49, %v448_v48  ;;  %v483_v44 = vld [vmem:[#allocation2 + $0x9a0] sm:$0xff]  ;;  %v488_v49 = vld [vmem:[#allocation2 + $0x9c8] sm:$0xff] }
 0x11b   :  { %v485_v48 = vld [vmem:[#allocation2 + $0x9b0] sm:$0xff] }
 0x11c   :  { %2602 = vmatpush1.bf16.msra.mxu0 %v2601_v0  ;;  %v2877_v0 = vpack.c.bf16 %v413_v57, %v409_v55  ;;  %v447_v55 = vld [vmem:[#allocation2 + $0x880] sm:$0xff]  ;;  %v449_v57 = vld [vmem:[#allocation2 + $0x890] sm:$0xff] }
 0x11d   :  { %2858 = vmatpush1.bf16.msra.mxu1 %v2857_v1  ;;  %2604 = vmatprep.subr.bf16.mxu0 %v2603_v2  ;;  %v2623_v1 = vpack.c.bf16 %v420_v59, %v416_v58  ;;  %v415_v2 = vld [vmem:[#allocation2 + $0x780] sm:$0xff]  ;;  %v453_v59 = vld [vmem:[#allocation2 + $0x8b0] sm:$0xff] }
 0x11e   :  { %2860 = vmatprep.subr.bf16.mxu1 %v2859_v6  ;;  %v421_v6 = vld [vmem:[#allocation2 + $0x7b0] sm:$0xff]  ;;  %v2625_v12 = vpack.c.bf16 %v419_v3, %v415_v2  ;;  %v2643_v2 = vpack.c.bf16 %v460_v62, %v456_v60  ;;  %v455_v3 = vld [vmem:[#allocation2 + $0x8c0] sm:$0xff]  ;;  %v496_v60 = vld [vmem:[#allocation2 + $0xa08] sm:$0xff] }
 0x11f   :  { %v500_v62 = vld [vmem:[#allocation2 + $0xa28] sm:$0xff] }
 0x120   :  { %2606 = vmatpush1.bf16.msra.mxu0 %v2605_v13  ;;  %v2881_v13 = vpack.c.bf16 %v421_v6, %v417_v4  ;;  %v459_v4 = vld [vmem:[#allocation2 + $0x8e0] sm:$0xff] }
 0x121   :  { %2862 = vmatpush1.bf16.msra.mxu1 %v2861_v14  ;;  %2608 = vmatprep.subr.bf16.mxu0 %v2607_v15  ;;  %v2627_v14 = vpack.c.bf16 %v428_v8, %v424_v7  ;;  %v423_v15 = vld [vmem:[#allocation2 + $0x7c0] sm:$0xff]  ;;  %v461_v7 = vld [vmem:[#allocation2 + $0x8f0] sm:$0xff]  ;;  %v464_v8 = vld [vmem:[#allocation2 + $0x908] sm:$0xff] }
 0x122   :  { %2864 = vmatprep.subr.bf16.mxu1 %v2863_v19  ;;  %v429_v19 = vld [vmem:[#allocation2 + $0x7f0] sm:$0xff]  ;;  %v2629_v26 = vpack.c.bf16 %v427_v16, %v423_v15  ;;  %v2647_v15 = vpack.c.bf16 %v468_v9, %v464_v8  ;;  %v463_v16 = vld [vmem:[#allocation2 + $0x900] sm:$0xff]  ;;  %v504_v8 = vld [vmem:[#allocation2 + $0xa48] sm:$0xff] }
 0x123   :  { %v508_v9 = vld [vmem:[#allocation2 + $0xa68] sm:$0xff] }
 0x124   :  { %2610 = vmatpush1.bf16.msra.mxu0 %v2609_v27  ;;  %v2885_v27 = vpack.c.bf16 %v429_v19, %v425_v17  ;;  %v467_v17 = vld [vmem:[#allocation2 + $0x920] sm:$0xff] }
 0x125   :  { %2866 = vmatpush1.bf16.msra.mxu1 %v2865_v28  ;;  %2612 = vmatprep.subr.bf16.mxu0 %v2611_v29  ;;  %v2631_v28 = vpack.c.bf16 %v436_v21, %v432_v20  ;;  %v431_v29 = vld [vmem:[#allocation2 + $0x800] sm:$0xff]  ;;  %v469_v20 = vld [vmem:[#allocation2 + $0x930] sm:$0xff]  ;;  %v472_v21 = vld [vmem:[#allocation2 + $0x948] sm:$0xff] }
 0x126   :  { %2868 = vmatprep.subr.bf16.mxu1 %v2867_v33  ;;  %v437_v33 = vld [vmem:[#allocation2 + $0x830] sm:$0xff]  ;;  %v2633_v38 = vpack.c.bf16 %v435_v30, %v431_v29  ;;  %v2651_v29 = vpack.c.bf16 %v476_v23, %v472_v21  ;;  %v471_v30 = vld [vmem:[#allocation2 + $0x940] sm:$0xff]  ;;  %v512_v21 = vld [vmem:[#allocation2 + $0xa88] sm:$0xff] }
 0x127   :  { %v516_v23 = vld [vmem:[#allocation2 + $0xaa8] sm:$0xff] }
 0x128   :  { %2614 = vmatpush1.bf16.msra.mxu0 %v2613_v39  ;;  %v4002_v39 = vld [vmem:[%s4120_s0 + $0x8] sm:$0xff] }
 0x129   :  { %2870 = vmatpush1.bf16.msra.mxu1 %v2869_v40  ;;  %2616 = vmatprep.subr.bf16.mxu0 %v2615_v41  ;;  %v2889_v40 = vpack.c.bf16 %v437_v33, %v433_v31  ;;  %v2635_v41 = vpack.c.bf16 %v444_v35, %v440_v34  ;;  %v475_v31 = vld [vmem:[#allocation2 + $0x960] sm:$0xff]  ;;  %v477_v34 = vld [vmem:[#allocation2 + $0x970] sm:$0xff]  ;;  %v480_v35 = vld [vmem:[#allocation2 + $0x988] sm:$0xff] }
 0x12a   :  { %2872 = vmatprep.subr.bf16.mxu1 %v2871_v45  ;;  %v4006_v45 = vrot.slane %v4002_v39, %v3977_v11 }
 0x12c   :  { %2618 = vmatpush1.bf16.msra.mxu0 %v2617_v51  ;;  %v454_v51 = vld [vmem:[#allocation2 + $0x8b8] sm:$0xff] }
 0x12d   :  { %2874 = vmatpush1.bf16.msra.mxu1 %v2873_v52  ;;  %2620 = vmatprep.subr.bf16.mxu0 %v2619_v53  ;;  %v743_v52 = vcombine.high %v4006_v45, %v4006_v45  ;;  %v2637_v53 = vpack.c.bf16 %v443_v43, %v439_v42  ;;  %v2895_v58 = vpack.c.bf16 %v454_v51, %v450_v50  ;;  %v479_v43 = vld [vmem:[#allocation2 + $0x980] sm:$0xff]  ;;  %v492_v50 = vld [vmem:[#allocation2 + $0x9e8] sm:$0xff]  ;;  %v490_v51 = vld [vmem:[#allocation2 + $0x9d8] sm:$0xff] }
 0x12e   :  { %2876 = vmatprep.subr.bf16.mxu1 %v2875_v56  ;;  %v451_v56 = vld [vmem:[#allocation2 + $0x8a0] sm:$0xff]  ;;  %v2655_v42 = vpack.c.bf16 %v484_v36, %v480_v35  ;;  %v520_v35 = vld [vmem:[#allocation2 + $0xac8] sm:$0xff] }
 0x12f   :  { %v524_v36 = vld [vmem:[#allocation2 + $0xae8] sm:$0xff] }
 0x130   :  { %2622 = vmatpush1.bf16.msra.mxu0 %v2621_v63  ;;  %v458_v63 = vld [vmem:[#allocation2 + $0x8d8] sm:$0xff] }
 0x131   :  { %2878 = vmatpush1.bf16.msra.mxu1 %v2877_v0  ;;  %2624 = vmatprep.subr.bf16.mxu0 %v2623_v1  ;;  %v462_v0 = vld [vmem:[#allocation2 + $0x8f8] sm:$0xff]  ;;  %v2641_v1 = vpack.c.bf16 %v451_v56, %v447_v55  ;;  %v487_v55 = vld [vmem:[#allocation2 + $0x9c0] sm:$0xff] }
 0x132   :  { %2880 = vmatprep.subr.bf16.mxu1 %v2879_v5  ;;  %v457_v5 = vld [vmem:[#allocation2 + $0x8d0] sm:$0xff]  ;;  %v2899_v6 = vpack.c.bf16 %v462_v0, %v458_v63  ;;  %v491_v56 = vld [vmem:[#allocation2 + $0x9e0] sm:$0xff]  ;;  %v498_v63 = vld [vmem:[#allocation2 + $0xa18] sm:$0xff] }
 0x133   :  { %v502_v0 = vld [vmem:[#allocation2 + $0xa38] sm:$0xff] }
 0x134   :  { %2626 = vmatpush1.bf16.msra.mxu0 %v2625_v12  ;;  %v470_v12 = vld [vmem:[#allocation2 + $0x938] sm:$0xff] }
 0x135   :  { %2882 = vmatpush1.bf16.msra.mxu1 %v2881_v13  ;;  %2628 = vmatprep.subr.bf16.mxu0 %v2627_v14  ;;  %v2645_v13 = vpack.c.bf16 %v459_v4, %v455_v3  ;;  %v2901_v14 = vpack.c.bf16 %v461_v7, %v457_v5  ;;  %v2903_v19 = vpack.c.bf16 %v470_v12, %v466_v10  ;;  %v495_v3 = vld [vmem:[#allocation2 + $0xa00] sm:$0xff]  ;;  %v497_v5 = vld [vmem:[#allocation2 + $0xa10] sm:$0xff]  ;;  %v506_v10 = vld [vmem:[#allocation2 + $0xa58] sm:$0xff] }
 0x136   :  { %2884 = vmatprep.subr.bf16.mxu1 %v2883_v18  ;;  %v465_v18 = vld [vmem:[#allocation2 + $0x910] sm:$0xff]  ;;  %v499_v4 = vld [vmem:[#allocation2 + $0xa20] sm:$0xff]  ;;  %v510_v12 = vld [vmem:[#allocation2 + $0xa78] sm:$0xff] }
 0x137   :  { %v501_v7 = vld [vmem:[#allocation2 + $0xa30] sm:$0xff] }
 0x138   :  { %2630 = vmatpush1.bf16.msra.mxu0 %v2629_v26  ;;  %v478_v26 = vld [vmem:[#allocation2 + $0x978] sm:$0xff] }
 0x139   :  { %2886 = vmatpush1.bf16.msra.mxu1 %v2885_v27  ;;  %2632 = vmatprep.subr.bf16.mxu0 %v2631_v28  ;;  %v2649_v27 = vpack.c.bf16 %v467_v17, %v463_v16  ;;  %v2905_v28 = vpack.c.bf16 %v469_v20, %v465_v18  ;;  %v2907_v33 = vpack.c.bf16 %v478_v26, %v474_v24  ;;  %v503_v16 = vld [vmem:[#allocation2 + $0xa40] sm:$0xff]  ;;  %v505_v18 = vld [vmem:[#allocation2 + $0xa50] sm:$0xff]  ;;  %v514_v24 = vld [vmem:[#allocation2 + $0xa98] sm:$0xff] }
 0x13a   :  { %2888 = vmatprep.subr.bf16.mxu1 %v2887_v32  ;;  %v473_v32 = vld [vmem:[#allocation2 + $0x950] sm:$0xff]  ;;  %v507_v17 = vld [vmem:[#allocation2 + $0xa60] sm:$0xff]  ;;  %v518_v26 = vld [vmem:[#allocation2 + $0xab8] sm:$0xff] }
 0x13b   :  { %889 = vmatmul.mubr.f32.vlgmr.msra.gmra.mrb[0].mxu0 %v3993_v22  ;;  %v509_v20 = vld [vmem:[#allocation2 + $0xa70] sm:$0xff] }
 0x13c   :  { %2634 = vmatpush1.bf16.msra.mxu0 %v2633_v38  ;;  %1173 = vmatmul.mubr.f32.vlgmr.msra.gmra.mrb[0].mxu1 %v3993_v22  ;;  %v2897_v22 = vpack.c.bf16 %v453_v59, %v449_v57  ;;  %v486_v38 = vld [vmem:[#allocation2 + $0x9b8] sm:$0xff]  ;;  %v489_v57 = vld [vmem:[#allocation2 + $0x9d0] sm:$0xff] }
 0x13d   :  { %2890 = vmatpush1.bf16.msra.mxu1 %v2889_v40  ;;  %2636 = vmatprep.subr.bf16.mxu0 %v2635_v41  ;;  %v2653_v40 = vpack.c.bf16 %v475_v31, %v471_v30  ;;  %v2909_v41 = vpack.c.bf16 %v477_v34, %v473_v32  ;;  %v2911_v47 = vpack.c.bf16 %v486_v38, %v482_v37  ;;  %v493_v59 = vld [vmem:[#allocation2 + $0x9f0] sm:$0xff]  ;;  %v511_v30 = vld [vmem:[#allocation2 + $0xa80] sm:$0xff]  ;;  %v522_v37 = vld [vmem:[#allocation2 + $0xad8] sm:$0xff] }
 0x13e   :  { %2892 = vmatprep.subr.bf16.mxu1 %v2891_v46  ;;  %959 = vmatprep.mubr.f32.mxu0 %v743_v52  ;;  %v481_v46 = vld [vmem:[#allocation2 + $0x990] sm:$0xff]  ;;  %v515_v31 = vld [vmem:[#allocation2 + $0xaa0] sm:$0xff]  ;;  %v526_v38 = vld [vmem:[#allocation2 + $0xaf8] sm:$0xff] }
 0x13f   :  { %1243 = vmatprep.mubr.f32.mxu1 %v743_v52  ;;  %v494_v52 = vld [vmem:[#allocation2 + $0x9f8] sm:$0xff]  ;;  %v513_v32 = vld [vmem:[#allocation2 + $0xa90] sm:$0xff] }
 0x140   :  { %2638 = vmatpush1.bf16.msra.mxu0 %v2637_v53  ;;  %v2657_v53 = vpack.c.bf16 %v483_v44, %v479_v43  ;;  %v517_v34 = vld [vmem:[#allocation2 + $0xab0] sm:$0xff]  ;;  %v519_v43 = vld [vmem:[#allocation2 + $0xac0] sm:$0xff] }
 0x141   :  { %2894 = vmatpush1.bf16.msra.mxu1 %v2893_v25  ;;  %2640 = vmatprep.subr.bf16.mxu0 %v2639_v54  ;;  %v2913_v25 = vpack.c.bf16 %v485_v48, %v481_v46  ;;  %v2659_v54 = vpack.c.bf16 %v492_v50, %v488_v49  ;;  %v523_v44 = vld [vmem:[#allocation2 + $0xae0] sm:$0xff]  ;;  %v521_v46 = vld [vmem:[#allocation2 + $0xad0] sm:$0xff]  ;;  %v528_v49 = vld [vmem:[#allocation2 + $0xb08] sm:$0xff] }
 0x142   :  { %2896 = vmatprep.subr.bf16.mxu1 %v2895_v58  ;;  %v2915_v58 = vpack.c.bf16 %v494_v52, %v490_v51  ;;  %v525_v48 = vld [vmem:[#allocation2 + $0xaf0] sm:$0xff]  ;;  %v532_v50 = vld [vmem:[#allocation2 + $0xb28] sm:$0xff]  ;;  %v530_v51 = vld [vmem:[#allocation2 + $0xb18] sm:$0xff] }
 0x143   :  { %v534_v52 = vld [vmem:[#allocation2 + $0xb38] sm:$0xff] }
 0x144   :  { %2642 = vmatpush1.bf16.msra.mxu0 %v2641_v1  ;;  %v2661_v1 = vpack.c.bf16 %v491_v56, %v487_v55  ;;  %v527_v55 = vld [vmem:[#allocation2 + $0xb00] sm:$0xff] }
 0x145   :  { %2898 = vmatpush1.bf16.msra.mxu1 %v2897_v22  ;;  %2644 = vmatprep.subr.bf16.mxu0 %v2643_v2  ;;  %v2917_v22 = vpack.c.bf16 %v493_v59, %v489_v57  ;;  %v2663_v2 = vpack.c.bf16 %v500_v62, %v496_v60  ;;  %v531_v56 = vld [vmem:[#allocation2 + $0xb20] sm:$0xff]  ;;  %v529_v57 = vld [vmem:[#allocation2 + $0xb10] sm:$0xff]  ;;  %v536_v60 = vld [vmem:[#allocation2 + $0xb48] sm:$0xff] }
 0x146   :  { %2900 = vmatprep.subr.bf16.mxu1 %v2899_v6  ;;  %v2919_v6 = vpack.c.bf16 %v502_v0, %v498_v63  ;;  %v533_v59 = vld [vmem:[#allocation2 + $0xb30] sm:$0xff]  ;;  %v540_v62 = vld [vmem:[#allocation2 + $0xb68] sm:$0xff]  ;;  %v538_v63 = vld [vmem:[#allocation2 + $0xb58] sm:$0xff] }
 0x147   :  { %v542_v0 = vld [vmem:[#allocation2 + $0xb78] sm:$0xff] }
 0x148   :  { %2646 = vmatpush1.bf16.msra.mxu0 %v2645_v13  ;;  %v2665_v13 = vpack.c.bf16 %v499_v4, %v495_v3  ;;  %v535_v3 = vld [vmem:[#allocation2 + $0xb40] sm:$0xff] }
 0x149   :  { %2902 = vmatpush1.bf16.msra.mxu1 %v2901_v14  ;;  %2648 = vmatprep.subr.bf16.mxu0 %v2647_v15  ;;  %v2921_v14 = vpack.c.bf16 %v501_v7, %v497_v5  ;;  %v2667_v15 = vpack.c.bf16 %v508_v9, %v504_v8  ;;  %v539_v4 = vld [vmem:[#allocation2 + $0xb60] sm:$0xff]  ;;  %v537_v5 = vld [vmem:[#allocation2 + $0xb50] sm:$0xff]  ;;  %v544_v8 = vld [vmem:[#allocation2 + $0xb88] sm:$0xff] }
 0x14a   :  { %2904 = vmatprep.subr.bf16.mxu1 %v2903_v19  ;;  %v2923_v19 = vpack.c.bf16 %v510_v12, %v506_v10  ;;  %v541_v7 = vld [vmem:[#allocation2 + $0xb70] sm:$0xff]  ;;  %v548_v9 = vld [vmem:[#allocation2 + $0xba8] sm:$0xff]  ;;  %v546_v10 = vld [vmem:[#allocation2 + $0xb98] sm:$0xff] }
 0x14b   :  { %v550_v12 = vld [vmem:[#allocation2 + $0xbb8] sm:$0xff] }
 0x14c   :  { %2650 = vmatpush1.bf16.msra.mxu0 %v2649_v27  ;;  %v2669_v27 = vpack.c.bf16 %v507_v17, %v503_v16  ;;  %v543_v16 = vld [vmem:[#allocation2 + $0xb80] sm:$0xff] }
 0x14d   :  { %2906 = vmatpush1.bf16.msra.mxu1 %v2905_v28  ;;  %2652 = vmatprep.subr.bf16.mxu0 %v2651_v29  ;;  %v2925_v28 = vpack.c.bf16 %v509_v20, %v505_v18  ;;  %v2671_v29 = vpack.c.bf16 %v516_v23, %v512_v21  ;;  %v547_v17 = vld [vmem:[#allocation2 + $0xba0] sm:$0xff]  ;;  %v545_v18 = vld [vmem:[#allocation2 + $0xb90] sm:$0xff]  ;;  %v552_v21 = vld [vmem:[#allocation2 + $0xbc8] sm:$0xff] }
 0x14e   :  { %2908 = vmatprep.subr.bf16.mxu1 %v2907_v33  ;;  %v2927_v33 = vpack.c.bf16 %v518_v26, %v514_v24  ;;  %v549_v20 = vld [vmem:[#allocation2 + $0xbb0] sm:$0xff]  ;;  %v556_v23 = vld [vmem:[#allocation2 + $0xbe8] sm:$0xff]  ;;  %v554_v24 = vld [vmem:[#allocation2 + $0xbd8] sm:$0xff] }
 0x14f   :  { %v558_v26 = vld [vmem:[#allocation2 + $0xbf8] sm:$0xff] }
 0x150   :  { %2654 = vmatpush1.bf16.msra.mxu0 %v2653_v40  ;;  %v2673_v40 = vpack.c.bf16 %v515_v31, %v511_v30  ;;  %v551_v30 = vld [vmem:[#allocation2 + $0xbc0] sm:$0xff] }
 0x151   :  { %2910 = vmatpush1.bf16.msra.mxu1 %v2909_v41  ;;  %2656 = vmatprep.subr.bf16.mxu0 %v2655_v42  ;;  %v2929_v41 = vpack.c.bf16 %v517_v34, %v513_v32  ;;  %v2675_v42 = vpack.c.bf16 %v524_v36, %v520_v35  ;;  %v555_v31 = vld [vmem:[#allocation2 + $0xbe0] sm:$0xff]  ;;  %v553_v32 = vld [vmem:[#allocation2 + $0xbd0] sm:$0xff]  ;;  %v560_v35 = vld [vmem:[#allocation2 + $0xc08] sm:$0xff] }
 0x152   :  { %2912 = vmatprep.subr.bf16.mxu1 %v2911_v47  ;;  %v2931_v47 = vpack.c.bf16 %v526_v38, %v522_v37  ;;  %v557_v34 = vld [vmem:[#allocation2 + $0xbf0] sm:$0xff]  ;;  %v564_v36 = vld [vmem:[#allocation2 + $0xc28] sm:$0xff]  ;;  %v728_v37 = vcombine.high %v4002_v39, %v4002_v39  ;;  %v562_v38 = vld [vmem:[#allocation2 + $0xc18] sm:$0xff] }
 0x153   :  { %v570_v39 = vld [vmem:[#allocation2 + $0xc58] sm:$0xff] }
 0x154   :  { %2658 = vmatpush1.bf16.msra.mxu0 %v2657_v53  ;;  %v2677_v53 = vpack.c.bf16 %v523_v44, %v519_v43  ;;  %v2695_v43 = vpack.c.bf16 %v564_v36, %v560_v35  ;;  %v559_v44 = vld [vmem:[#allocation2 + $0xc00] sm:$0xff]  ;;  %v597_v35 = vld [vmem:[#allocation2 + $0xd30] sm:$0xff]  ;;  %v600_v36 = vld [vmem:[#allocation2 + $0xd48] sm:$0xff] }
 0x155   :  { %2914 = vmatpush1.bf16.msra.mxu1 %v2913_v25  ;;  %2660 = vmatprep.subr.bf16.mxu0 %v2659_v54  ;;  %v2933_v25 = vpack.c.bf16 %v525_v48, %v521_v46  ;;  %v2679_v54 = vpack.c.bf16 %v532_v50, %v528_v49  ;;  %v563_v46 = vld [vmem:[#allocation2 + $0xc20] sm:$0xff]  ;;  %v565_v49 = vld [vmem:[#allocation2 + $0xc30] sm:$0xff]  ;;  %v568_v50 = vld [vmem:[#allocation2 + $0xc48] sm:$0xff] }
 0x156   :  { %2916 = vmatprep.subr.bf16.mxu1 %v2915_v58  ;;  %v2935_v58 = vpack.c.bf16 %v534_v52, %v530_v51  ;;  %v572_v51 = vld [vmem:[#allocation2 + $0xc68] sm:$0xff]  ;;  %v4015_v52 = vrot.slane %v728_v37, %v3977_v11 }
 0x157   :  { %v604_v37 = vld [vmem:[#allocation2 + $0xd68] sm:$0xff] }
 0x158   :  { %2662 = vmatpush1.bf16.msra.mxu0 %v2661_v1  ;;  %v2681_v1 = vpack.c.bf16 %v531_v56, %v527_v55  ;;  %v2699_v55 = vpack.c.bf16 %v572_v51, %v568_v50  ;;  %v567_v56 = vld [vmem:[#allocation2 + $0xc40] sm:$0xff]  ;;  %v608_v50 = vld [vmem:[#allocation2 + $0xd88] sm:$0xff] }
 0x159   :  { %2918 = vmatpush1.bf16.msra.mxu1 %v2917_v22  ;;  %2664 = vmatprep.subr.bf16.mxu0 %v2663_v2  ;;  %v2937_v22 = vpack.c.bf16 %v533_v59, %v529_v57  ;;  %v2683_v2 = vpack.c.bf16 %v540_v62, %v536_v60  ;;  %v571_v57 = vld [vmem:[#allocation2 + $0xc60] sm:$0xff]  ;;  %v573_v60 = vld [vmem:[#allocation2 + $0xc70] sm:$0xff]  ;;  %v576_v62 = vld [vmem:[#allocation2 + $0xc88] sm:$0xff] }
 0x15a   :  { %2920 = vmatprep.subr.bf16.mxu1 %v2919_v6  ;;  %v2939_v6 = vpack.c.bf16 %v542_v0, %v538_v63  ;;  %v580_v63 = vld [vmem:[#allocation2 + $0xca8] sm:$0xff]  ;;  %v744_v0 = vcombine.high %v4015_v52, %v4015_v52 }
 0x15b   :  { %v612_v51 = vld [vmem:[#allocation2 + $0xda8] sm:$0xff] }
 0x15c   :  { %2666 = vmatpush1.bf16.msra.mxu0 %v2665_v13  ;;  %v2685_v13 = vpack.c.bf16 %v539_v4, %v535_v3  ;;  %v2703_v4 = vpack.c.bf16 %v580_v63, %v576_v62  ;;  %v616_v62 = vld [vmem:[#allocation2 + $0xdc8] sm:$0xff] }
 0x15d   :  { %2922 = vmatpush1.bf16.msra.mxu1 %v2921_v14  ;;  %2668 = vmatprep.subr.bf16.mxu0 %v2667_v15  ;;  %v2941_v14 = vpack.c.bf16 %v541_v7, %v537_v5  ;;  %v2687_v15 = vpack.c.bf16 %v548_v9, %v544_v8  ;;  %v575_v5 = vld [vmem:[#allocation2 + $0xc80] sm:$0xff]  ;;  %v577_v7 = vld [vmem:[#allocation2 + $0xc90] sm:$0xff]  ;;  %v620_v63 = vld [vmem:[#allocation2 + $0xde8] sm:$0xff] }
 0x15e   :  { %2924 = vmatprep.subr.bf16.mxu1 %v2923_v19  ;;  %v2943_v19 = vpack.c.bf16 %v550_v12, %v546_v10  ;;  %v581_v9 = vld [vmem:[#allocation2 + $0xcb0] sm:$0xff]  ;;  %v584_v10 = vld [vmem:[#allocation2 + $0xcc8] sm:$0xff] }
 0x15f   :  { %v588_v12 = vld [vmem:[#allocation2 + $0xce8] sm:$0xff] }
 0x160   :  { %2670 = vmatpush1.bf16.msra.mxu0 %v2669_v27  ;;  %v2689_v27 = vpack.c.bf16 %v547_v17, %v543_v16  ;;  %v2707_v16 = vpack.c.bf16 %v588_v12, %v584_v10  ;;  %v583_v17 = vld [vmem:[#allocation2 + $0xcc0] sm:$0xff]  ;;  %v628_v10 = vld [vmem:[#allocation2 + $0xe28] sm:$0xff]  ;;  %v626_v12 = vld [vmem:[#allocation2 + $0xe18] sm:$0xff] }
 0x161   :  { %2926 = vmatpush1.bf16.msra.mxu1 %v2925_v28  ;;  %2672 = vmatprep.subr.bf16.mxu0 %v2671_v29  ;;  %v2945_v28 = vpack.c.bf16 %v549_v20, %v545_v18  ;;  %v2691_v29 = vpack.c.bf16 %v556_v23, %v552_v21  ;;  %v587_v18 = vld [vmem:[#allocation2 + $0xce0] sm:$0xff]  ;;  %v589_v21 = vld [vmem:[#allocation2 + $0xcf0] sm:$0xff]  ;;  %v592_v23 = vld [vmem:[#allocation2 + $0xd08] sm:$0xff] }
 0x162   :  { %2928 = vmatprep.subr.bf16.mxu1 %v2927_v33  ;;  %v2947_v33 = vpack.c.bf16 %v558_v26, %v554_v24  ;;  %v596_v24 = vld [vmem:[#allocation2 + $0xd28] sm:$0xff]  ;;  %v594_v26 = vld [vmem:[#allocation2 + $0xd18] sm:$0xff] }
 0x164   :  { %2674 = vmatpush1.bf16.msra.mxu0 %v2673_v40  ;;  %v566_v40 = vld [vmem:[#allocation2 + $0xc38] sm:$0xff] }
 0x165   :  { %2930 = vmatpush1.bf16.msra.mxu1 %v2929_v41  ;;  %2676 = vmatprep.subr.bf16.mxu0 %v2675_v42  ;;  %v2693_v41 = vpack.c.bf16 %v555_v31, %v551_v30  ;;  %v2949_v42 = vpack.c.bf16 %v557_v34, %v553_v32  ;;  %v2951_v48 = vpack.c.bf16 %v566_v40, %v562_v38  ;;  %v591_v31 = vld [vmem:[#allocation2 + $0xd00] sm:$0xff]  ;;  %v602_v38 = vld [vmem:[#allocation2 + $0xd58] sm:$0xff] }
 0x166   :  { %2932 = vmatprep.subr.bf16.mxu1 %v2931_v47  ;;  %v561_v47 = vld [vmem:[#allocation2 + $0xc10] sm:$0xff]  ;;  %v2711_v30 = vpack.c.bf16 %v596_v24, %v592_v23  ;;  %v595_v32 = vld [vmem:[#allocation2 + $0xd20] sm:$0xff]  ;;  %v606_v40 = vld [vmem:[#allocation2 + $0xd78] sm:$0xff] }
 0x167   :  { %v636_v23 = vld [vmem:[#allocation2 + $0xe68] sm:$0xff]  ;;  %v634_v24 = vld [vmem:[#allocation2 + $0xe58] sm:$0xff] }
 0x168   :  { %2678 = vmatpush1.bf16.msra.mxu0 %v2677_v53  ;;  %v574_v53 = vld [vmem:[#allocation2 + $0xc78] sm:$0xff] }
 0x169   :  { %2934 = vmatpush1.bf16.msra.mxu1 %v2933_v25  ;;  %2680 = vmatprep.subr.bf16.mxu0 %v2679_v54  ;;  %v2697_v25 = vpack.c.bf16 %v563_v46, %v559_v44  ;;  %v2953_v54 = vpack.c.bf16 %v565_v49, %v561_v47  ;;  %v2955_v59 = vpack.c.bf16 %v574_v53, %v570_v39  ;;  %v599_v44 = vld [vmem:[#allocation2 + $0xd40] sm:$0xff]  ;;  %v601_v47 = vld [vmem:[#allocation2 + $0xd50] sm:$0xff]  ;;  %v610_v39 = vld [vmem:[#allocation2 + $0xd98] sm:$0xff] }
 0x16a   :  { %2936 = vmatprep.subr.bf16.mxu1 %v2935_v58  ;;  %v569_v58 = vld [vmem:[#allocation2 + $0xc50] sm:$0xff]  ;;  %v603_v46 = vld [vmem:[#allocation2 + $0xd60] sm:$0xff]  ;;  %v614_v53 = vld [vmem:[#allocation2 + $0xdb8] sm:$0xff] }
 0x16b   :  { %v2957_v3 = vpack.c.bf16 %v573_v60, %v569_v58  ;;  %v605_v49 = vld [vmem:[#allocation2 + $0xd70] sm:$0xff] }
 0x16c   :  { %2682 = vmatpush1.bf16.msra.mxu0 %v2681_v1  ;;  %v578_v1 = vld [vmem:[#allocation2 + $0xc98] sm:$0xff]  ;;  %v609_v58 = vld [vmem:[#allocation2 + $0xd90] sm:$0xff] }
 0x16d   :  { %2938 = vmatpush1.bf16.msra.mxu1 %v2937_v22  ;;  %2684 = vmatprep.subr.bf16.mxu0 %v2683_v2  ;;  %v582_v22 = vld [vmem:[#allocation2 + $0xcb8] sm:$0xff]  ;;  %v2701_v2 = vpack.c.bf16 %v571_v57, %v567_v56  ;;  %v607_v56 = vld [vmem:[#allocation2 + $0xd80] sm:$0xff]  ;;  %v613_v60 = vld [vmem:[#allocation2 + $0xdb0] sm:$0xff] }
 0x16e   :  { %2940 = vmatprep.subr.bf16.mxu1 %v2939_v6  ;;  %v579_v6 = vld [vmem:[#allocation2 + $0xca0] sm:$0xff]  ;;  %v2959_v8 = vpack.c.bf16 %v582_v22, %v578_v1  ;;  %v622_v1 = vld [vmem:[#allocation2 + $0xdf8] sm:$0xff] }
 0x16f   :  { %v611_v57 = vld [vmem:[#allocation2 + $0xda0] sm:$0xff] }
 0x170   :  { %2686 = vmatpush1.bf16.msra.mxu0 %v2685_v13  ;;  %v586_v13 = vld [vmem:[#allocation2 + $0xcd8] sm:$0xff]  ;;  %v2721_v22 = vpack.c.bf16 %v611_v57, %v607_v56  ;;  %v651_v56 = vld [vmem:[#allocation2 + $0xee0] sm:$0xff]  ;;  %v649_v57 = vld [vmem:[#allocation2 + $0xed0] sm:$0xff] }
 0x171   :  { %2942 = vmatpush1.bf16.msra.mxu1 %v2941_v14  ;;  %2688 = vmatprep.subr.bf16.mxu0 %v2687_v15  ;;  %v590_v14 = vld [vmem:[#allocation2 + $0xcf8] sm:$0xff]  ;;  %v2705_v15 = vpack.c.bf16 %v579_v6, %v575_v5  ;;  %v619_v5 = vld [vmem:[#allocation2 + $0xde0] sm:$0xff]  ;;  %v617_v6 = vld [vmem:[#allocation2 + $0xdd0] sm:$0xff] }
 0x172   :  { %2944 = vmatprep.subr.bf16.mxu1 %v2943_v19  ;;  %v585_v19 = vld [vmem:[#allocation2 + $0xcd0] sm:$0xff]  ;;  %v2963_v20 = vpack.c.bf16 %v590_v14, %v586_v13  ;;  %v630_v13 = vld [vmem:[#allocation2 + $0xe38] sm:$0xff] }
 0x174   :  { %2690 = vmatpush1.bf16.msra.mxu0 %v2689_v27  ;;  %v598_v27 = vld [vmem:[#allocation2 + $0xd38] sm:$0xff] }
 0x175   :  { %2946 = vmatpush1.bf16.msra.mxu1 %v2945_v28  ;;  %2692 = vmatprep.subr.bf16.mxu0 %v2691_v29  ;;  %v2709_v28 = vpack.c.bf16 %v587_v18, %v583_v17  ;;  %v2965_v29 = vpack.c.bf16 %v589_v21, %v585_v19  ;;  %v2967_v34 = vpack.c.bf16 %v598_v27, %v594_v26  ;;  %v627_v17 = vld [vmem:[#allocation2 + $0xe20] sm:$0xff]  ;;  %v625_v18 = vld [vmem:[#allocation2 + $0xe10] sm:$0xff]  ;;  %v632_v21 = vld [vmem:[#allocation2 + $0xe48] sm:$0xff] }
 0x176   :  { %2948 = vmatprep.subr.bf16.mxu1 %v2947_v33  ;;  %v593_v33 = vld [vmem:[#allocation2 + $0xd10] sm:$0xff]  ;;  %v2983_v19 = vpack.c.bf16 %v630_v13, %v626_v12  ;;  %v638_v26 = vld [vmem:[#allocation2 + $0xe78] sm:$0xff] }
 0x177   :  { %v670_v12 = vld [vmem:[#allocation2 + $0xf78] sm:$0xff] }
 0x178   :  { %2694 = vmatpush1.bf16.msra.mxu0 %v2693_v41  ;;  %v2713_v41 = vpack.c.bf16 %v595_v32, %v591_v31  ;;  %v635_v31 = vld [vmem:[#allocation2 + $0xe60] sm:$0xff]  ;;  %v633_v32 = vld [vmem:[#allocation2 + $0xe50] sm:$0xff] }
 0x179   :  { %2950 = vmatpush1.bf16.msra.mxu1 %v2949_v42  ;;  %2696 = vmatprep.subr.bf16.mxu0 %v2695_v43  ;;  %v2969_v42 = vpack.c.bf16 %v597_v35, %v593_v33  ;;  %v2715_v43 = vpack.c.bf16 %v604_v37, %v600_v36  ;;  %v2987_v33 = vpack.c.bf16 %v638_v26, %v634_v24  ;;  %v640_v35 = vld [vmem:[#allocation2 + $0xe88] sm:$0xff]  ;;  %v642_v37 = vld [vmem:[#allocation2 + $0xe98] sm:$0xff] }
 0x17a   :  { %2952 = vmatprep.subr.bf16.mxu1 %v2951_v48  ;;  %v2971_v48 = vpack.c.bf16 %v606_v40, %v602_v38  ;;  %v644_v36 = vld [vmem:[#allocation2 + $0xea8] sm:$0xff]  ;;  %v646_v38 = vld [vmem:[#allocation2 + $0xeb8] sm:$0xff] }
 0x17b   :  { %960 = vmatmul.mubr.f32.vlgmr.msra.gmra.mrb[0].mxu0 %v4006_v45  ;;  %v678_v24 = vld [vmem:[#allocation2 + $0xfb8] sm:$0xff] }
 0x17c   :  { %2698 = vmatpush1.bf16.msra.mxu0 %v2697_v25  ;;  %1244 = vmatmul.mubr.f32.vlgmr.msra.gmra.mrb[0].mxu1 %v4006_v45  ;;  %v2961_v45 = vpack.c.bf16 %v581_v9, %v577_v7  ;;  %v2717_v25 = vpack.c.bf16 %v603_v46, %v599_v44  ;;  %v624_v9 = vld [vmem:[#allocation2 + $0xe08] sm:$0xff]  ;;  %v643_v44 = vld [vmem:[#allocation2 + $0xea0] sm:$0xff]  ;;  %v641_v46 = vld [vmem:[#allocation2 + $0xe90] sm:$0xff] }
 0x17d   :  { %2954 = vmatpush1.bf16.msra.mxu1 %v2953_v54  ;;  %2700 = vmatprep.subr.bf16.mxu0 %v2699_v55  ;;  %v2973_v54 = vpack.c.bf16 %v605_v49, %v601_v47  ;;  %v2719_v55 = vpack.c.bf16 %v612_v51, %v608_v50  ;;  %v2991_v47 = vpack.c.bf16 %v646_v38, %v642_v37  ;;  %v648_v49 = vld [vmem:[#allocation2 + $0xec8] sm:$0xff]  ;;  %v650_v51 = vld [vmem:[#allocation2 + $0xed8] sm:$0xff] }
 0x17e   :  { %2956 = vmatprep.subr.bf16.mxu1 %v2955_v59  ;;  %1030 = vmatprep.mubr.f32.mxu0 %v744_v0  ;;  %v2975_v59 = vpack.c.bf16 %v614_v53, %v610_v39  ;;  %v652_v50 = vld [vmem:[#allocation2 + $0xee8] sm:$0xff]  ;;  %v654_v39 = vld [vmem:[#allocation2 + $0xef8] sm:$0xff] }
 0x17f   :  { %1314 = vmatprep.mubr.f32.mxu1 %v744_v0  ;;  %v618_v0 = vld [vmem:[#allocation2 + $0xdd8] sm:$0xff] }
 0x180   :  { %2702 = vmatpush1.bf16.msra.mxu0 %v2701_v2  ;;  %v2977_v2 = vpack.c.bf16 %v613_v60, %v609_v58  ;;  %v2979_v7 = vpack.c.bf16 %v622_v1, %v618_v0  ;;  %v2995_v58 = vpack.c.bf16 %v654_v39, %v650_v51  ;;  %v656_v60 = vld [vmem:[#allocation2 + $0xf08] sm:$0xff]  ;;  %v662_v0 = vld [vmem:[#allocation2 + $0xf38] sm:$0xff] }
 0x181   :  { %2958 = vmatpush1.bf16.msra.mxu1 %v2957_v3  ;;  %2704 = vmatprep.subr.bf16.mxu0 %v2703_v4  ;;  %v2723_v3 = vpack.c.bf16 %v620_v63, %v616_v62  ;;  %v615_v4 = vld [vmem:[#allocation2 + $0xdc0] sm:$0xff]  ;;  %v660_v62 = vld [vmem:[#allocation2 + $0xf28] sm:$0xff]  ;;  %v658_v63 = vld [vmem:[#allocation2 + $0xf18] sm:$0xff] }
 0x182   :  { %2960 = vmatprep.subr.bf16.mxu1 %v2959_v8  ;;  %v621_v8 = vld [vmem:[#allocation2 + $0xdf0] sm:$0xff]  ;;  %v2725_v14 = vpack.c.bf16 %v619_v5, %v615_v4  ;;  %v659_v4 = vld [vmem:[#allocation2 + $0xf20] sm:$0xff]  ;;  %v686_v37 = vld [vmem:[#allocation2 + $0xff8] sm:$0xff] }
 0x183   :  { %v657_v5 = vld [vmem:[#allocation2 + $0xf10] sm:$0xff] }
 0x184   :  { %2706 = vmatpush1.bf16.msra.mxu0 %v2705_v15  ;;  %v2981_v15 = vpack.c.bf16 %v621_v8, %v617_v6  ;;  %v2999_v6 = vpack.c.bf16 %v662_v0, %v658_v63  ;;  %v664_v8 = vld [vmem:[#allocation2 + $0xf48] sm:$0xff] }
 0x185   :  { %2962 = vmatpush1.bf16.msra.mxu1 %v2961_v45  ;;  %2708 = vmatprep.subr.bf16.mxu0 %v2707_v16  ;;  %v2727_v45 = vpack.c.bf16 %v628_v10, %v624_v9  ;;  %v623_v16 = vld [vmem:[#allocation2 + $0xe00] sm:$0xff]  ;;  %v668_v9 = vld [vmem:[#allocation2 + $0xf68] sm:$0xff]  ;;  %v666_v10 = vld [vmem:[#allocation2 + $0xf58] sm:$0xff] }
 0x186   :  { %2964 = vmatprep.subr.bf16.mxu1 %v2963_v20  ;;  %v629_v20 = vld [vmem:[#allocation2 + $0xe30] sm:$0xff]  ;;  %v2729_v27 = vpack.c.bf16 %v627_v17, %v623_v16  ;;  %v667_v16 = vld [vmem:[#allocation2 + $0xf60] sm:$0xff] }
 0x187   :  { %v665_v17 = vld [vmem:[#allocation2 + $0xf50] sm:$0xff] }
 0x188   :  { %2710 = vmatpush1.bf16.msra.mxu0 %v2709_v28  ;;  %v2985_v28 = vpack.c.bf16 %v629_v20, %v625_v18  ;;  %v3003_v18 = vpack.c.bf16 %v670_v12, %v666_v10  ;;  %v672_v20 = vld [vmem:[#allocation2 + $0xf88] sm:$0xff] }
 0x189   :  { %2966 = vmatpush1.bf16.msra.mxu1 %v2965_v29  ;;  %2712 = vmatprep.subr.bf16.mxu0 %v2711_v30  ;;  %v2731_v29 = vpack.c.bf16 %v636_v23, %v632_v21  ;;  %v631_v30 = vld [vmem:[#allocation2 + $0xe40] sm:$0xff]  ;;  %v676_v21 = vld [vmem:[#allocation2 + $0xfa8] sm:$0xff]  ;;  %v674_v23 = vld [vmem:[#allocation2 + $0xf98] sm:$0xff] }
 0x18a   :  { %2968 = vmatprep.subr.bf16.mxu1 %v2967_v34  ;;  %v637_v34 = vld [vmem:[#allocation2 + $0xe70] sm:$0xff]  ;;  %v2733_v40 = vpack.c.bf16 %v635_v31, %v631_v30  ;;  %v675_v30 = vld [vmem:[#allocation2 + $0xfa0] sm:$0xff] }
 0x18b   :  { %v673_v31 = vld [vmem:[#allocation2 + $0xf90] sm:$0xff]  ;;  %v1341_v12 = vld [vmem:[#allocation7 + $0x80] sm:$0xff] }
 0x18c   :  { %2714 = vmatpush1.bf16.msra.mxu0 %v2713_v41  ;;  %v2989_v41 = vpack.c.bf16 %v637_v34, %v633_v32  ;;  %v3007_v32 = vpack.c.bf16 %v678_v24, %v674_v23  ;;  %v680_v34 = vld [vmem:[#allocation2 + $0xfc8] sm:$0xff] }
 0x18d   :  { %2970 = vmatpush1.bf16.msra.mxu1 %v2969_v42  ;;  %2716 = vmatprep.subr.bf16.mxu0 %v2715_v43  ;;  %v2735_v42 = vpack.c.bf16 %v644_v36, %v640_v35  ;;  %v639_v43 = vld [vmem:[#allocation2 + $0xe80] sm:$0xff]  ;;  %v684_v35 = vld [vmem:[#allocation2 + $0xfe8] sm:$0xff]  ;;  %v682_v36 = vld [vmem:[#allocation2 + $0xfd8] sm:$0xff] }
 0x18e   :  { %2972 = vmatprep.subr.bf16.mxu1 %v2971_v48  ;;  %v645_v48 = vld [vmem:[#allocation2 + $0xeb0] sm:$0xff]  ;;  %v2737_v53 = vpack.c.bf16 %v643_v44, %v639_v43  ;;  %v683_v43 = vld [vmem:[#allocation2 + $0xfe0] sm:$0xff] }
 0x18f   :  { %v681_v44 = vld [vmem:[#allocation2 + $0xfd0] sm:$0xff]  ;;  %v1349_v24 = vld [vmem:[#allocation7 + $0xc0] sm:$0xff] }
 0x190   :  { %2718 = vmatpush1.bf16.msra.mxu0 %v2717_v25  ;;  %v2993_v25 = vpack.c.bf16 %v645_v48, %v641_v46  ;;  %v3011_v46 = vpack.c.bf16 %v686_v37, %v682_v36  ;;  %v1326_v48 = vld [vmem:[#allocation7 + $0x8] sm:$0xff]  ;;  %v1357_v37 = vld [vmem:[#allocation7 + $0x100] sm:$0xff] }
 0x191   :  { %2974 = vmatpush1.bf16.msra.mxu1 %v2973_v54  ;;  %2720 = vmatprep.subr.bf16.mxu0 %v2719_v55  ;;  %v2739_v54 = vpack.c.bf16 %v652_v50, %v648_v49  ;;  %v647_v55 = vld [vmem:[#allocation2 + $0xec0] sm:$0xff] }
 0x192   :  { %2976 = vmatprep.subr.bf16.mxu1 %v2975_v59  ;;  %v653_v59 = vld [vmem:[#allocation2 + $0xef0] sm:$0xff]  ;;  %v2741_v1 = vpack.c.bf16 %v651_v56, %v647_v55  ;;  %v1328_v49 = vld [vmem:[#allocation7 + $0x18] sm:$0xff] }
 0x193   :  { %v3015_v39 = vpack.c.bf16 %v1328_v49, %v1326_v48  ;;  %v1332_v55 = vld [vmem:[#allocation7 + $0x38] sm:$0xff] }
 0x194   :  { %2722 = vmatpush1.bf16.msra.mxu0 %v2721_v22  ;;  %v2997_v22 = vpack.c.bf16 %v653_v59, %v649_v57  ;;  %v1331_v59 = vld [vmem:[#allocation7 + $0x30] sm:$0xff]  ;;  %v1368_v48 = vld [vmem:[#allocation7 + $0x158] sm:$0xff] }
 0x195   :  { %2978 = vmatpush1.bf16.msra.mxu1 %v2977_v2  ;;  %2724 = vmatprep.subr.bf16.mxu0 %v2723_v3  ;;  %v2743_v2 = vpack.c.bf16 %v660_v62, %v656_v60  ;;  %v655_v3 = vld [vmem:[#allocation2 + $0xf00] sm:$0xff]  ;;  %v1334_v60 = vld [vmem:[#allocation7 + $0x48] sm:$0xff] }
 0x196   :  { %2980 = vmatprep.subr.bf16.mxu1 %v2979_v7  ;;  %v661_v7 = vld [vmem:[#allocation2 + $0xf30] sm:$0xff]  ;;  %v2745_v13 = vpack.c.bf16 %v659_v4, %v655_v3  ;;  %v1336_v62 = vld [vmem:[#allocation7 + $0x58] sm:$0xff] }
 0x197   :  { %v3023_v0 = vpack.c.bf16 %v1336_v62, %v1334_v60  ;;  %v1340_v3 = vld [vmem:[#allocation7 + $0x78] sm:$0xff] }
 0x198   :  { %2726 = vmatpush1.bf16.msra.mxu0 %v2725_v14  ;;  %v3001_v14 = vpack.c.bf16 %v661_v7, %v657_v5  ;;  %v1339_v7 = vld [vmem:[#allocation7 + $0x70] sm:$0xff] }
 0x199   :  { %2982 = vmatpush1.bf16.msra.mxu1 %v2981_v15  ;;  %2728 = vmatprep.subr.bf16.mxu0 %v2727_v45  ;;  %v2747_v15 = vpack.c.bf16 %v668_v9, %v664_v8  ;;  %v663_v45 = vld [vmem:[#allocation2 + $0xf40] sm:$0xff]  ;;  %v1342_v8 = vld [vmem:[#allocation7 + $0x88] sm:$0xff] }
 0x19a   :  { %2984 = vmatprep.subr.bf16.mxu1 %v2983_v19  ;;  %v669_v19 = vld [vmem:[#allocation2 + $0xf70] sm:$0xff]  ;;  %v2749_v26 = vpack.c.bf16 %v667_v16, %v663_v45  ;;  %v1344_v9 = vld [vmem:[#allocation7 + $0x98] sm:$0xff] }
 0x19c   :  { %2730 = vmatpush1.bf16.msra.mxu0 %v2729_v27  ;;  %v3005_v27 = vpack.c.bf16 %v669_v19, %v665_v17  ;;  %v1345_v17 = vld [vmem:[#allocation7 + $0xa0] sm:$0xff]  ;;  %v1350_v19 = vld [vmem:[#allocation7 + $0xc8] sm:$0xff] }
 0x19d   :  { %2986 = vmatpush1.bf16.msra.mxu1 %v2985_v28  ;;  %2732 = vmatprep.subr.bf16.mxu0 %v2731_v29  ;;  %v2751_v28 = vpack.c.bf16 %v676_v21, %v672_v20  ;;  %v671_v29 = vld [vmem:[#allocation2 + $0xf80] sm:$0xff] }
 0x19e   :  { %2988 = vmatprep.subr.bf16.mxu1 %v2987_v33  ;;  %v677_v33 = vld [vmem:[#allocation2 + $0xfb0] sm:$0xff]  ;;  %v2753_v38 = vpack.c.bf16 %v675_v30, %v671_v29  ;;  %v1352_v20 = vld [vmem:[#allocation7 + $0xd8] sm:$0xff] }
 0x19f   :  { %v3039_v23 = vpack.c.bf16 %v1352_v20, %v1350_v19  ;;  %v1392_v19 = vld [vmem:[#allocation7 + $0x218] sm:$0xff] }
 0x1a0   :  { %2734 = vmatpush1.bf16.msra.mxu0 %v2733_v40  ;;  %v3009_v40 = vpack.c.bf16 %v677_v33, %v673_v31  ;;  %v1353_v31 = vld [vmem:[#allocation7 + $0xe0] sm:$0xff]  ;;  %v1358_v33 = vld [vmem:[#allocation7 + $0x108] sm:$0xff] }
 0x1a1   :  { %2990 = vmatpush1.bf16.msra.mxu1 %v2989_v41  ;;  %2736 = vmatprep.subr.bf16.mxu0 %v2735_v42  ;;  %v2755_v41 = vpack.c.bf16 %v684_v35, %v680_v34  ;;  %v679_v42 = vld [vmem:[#allocation2 + $0xfc0] sm:$0xff] }
 0x1a2   :  { %2992 = vmatprep.subr.bf16.mxu1 %v2991_v47  ;;  %v685_v47 = vld [vmem:[#allocation2 + $0xff0] sm:$0xff]  ;;  %v2757_v50 = vpack.c.bf16 %v683_v43, %v679_v42  ;;  %v1360_v34 = vld [vmem:[#allocation7 + $0x118] sm:$0xff] }
 0x1a3   :  { %v3013_v51 = vpack.c.bf16 %v685_v47, %v681_v44  ;;  %v3047_v36 = vpack.c.bf16 %v1360_v34, %v1358_v33  ;;  %v1361_v44 = vld [vmem:[#allocation7 + $0x120] sm:$0xff]  ;;  %v1366_v47 = vld [vmem:[#allocation7 + $0x148] sm:$0xff]  ;;  %v1615_v33 = vld [vmem:[#allocation10 + $0x30] sm:$0xff] }
 0x1a4   :  { %2738 = vmatpush1.bf16.msra.mxu0 %v2737_v53  ;;  %v1325_v53 = vld [vmem:[#allocation7] sm:$0xff]  ;;  %v1618_v34 = vld [vmem:[#allocation10 + $0x48] sm:$0xff] }
 0x1a5   :  { %2994 = vmatpush1.bf16.msra.mxu1 %v2993_v25  ;;  %2740 = vmatprep.subr.bf16.mxu0 %v2739_v54  ;;  %v1327_v25 = vld [vmem:[#allocation7 + $0x10] sm:$0xff]  ;;  %v1330_v54 = vld [vmem:[#allocation7 + $0x28] sm:$0xff] }
 0x1a6   :  { %2996 = vmatprep.subr.bf16.mxu1 %v2995_v58  ;;  %v3017_v56 = vpack.c.bf16 %v1327_v25, %v1325_v53  ;;  %v3019_v57 = vpack.c.bf16 %v1332_v55, %v1330_v54  ;;  %v1329_v58 = vld [vmem:[#allocation7 + $0x20] sm:$0xff]  ;;  %v1370_v53 = vld [vmem:[#allocation7 + $0x168] sm:$0xff]  ;;  %v1372_v25 = vld [vmem:[#allocation7 + $0x178] sm:$0xff] }
 0x1a7   :  { %v3021_v63 = vpack.c.bf16 %v1331_v59, %v1329_v58  ;;  %v3059_v55 = vpack.c.bf16 %v1372_v25, %v1370_v53  ;;  %v1374_v58 = vld [vmem:[#allocation7 + $0x188] sm:$0xff]  ;;  %v1376_v59 = vld [vmem:[#allocation7 + $0x198] sm:$0xff] }
 0x1a8   :  { %2742 = vmatpush1.bf16.msra.mxu0 %v2741_v1  ;;  %v1333_v1 = vld [vmem:[#allocation7 + $0x40] sm:$0xff]  ;;  %v3063_v62 = vpack.c.bf16 %v1376_v59, %v1374_v58  ;;  %v1627_v53 = vld [vmem:[#allocation10 + $0x90] sm:$0xff]  ;;  %v1630_v25 = vld [vmem:[#allocation10 + $0xa8] sm:$0xff] }
 0x1a9   :  { %2998 = vmatpush1.bf16.msra.mxu1 %v2997_v22  ;;  %2744 = vmatprep.subr.bf16.mxu0 %v2743_v2  ;;  %v1335_v22 = vld [vmem:[#allocation7 + $0x50] sm:$0xff]  ;;  %v1338_v2 = vld [vmem:[#allocation7 + $0x68] sm:$0xff] }
 0x1aa   :  { %3000 = vmatprep.subr.bf16.mxu1 %v2999_v6  ;;  %v3025_v4 = vpack.c.bf16 %v1335_v22, %v1333_v1  ;;  %v3027_v5 = vpack.c.bf16 %v1340_v3, %v1338_v2  ;;  %v1337_v6 = vld [vmem:[#allocation7 + $0x60] sm:$0xff]  ;;  %v1378_v1 = vld [vmem:[#allocation7 + $0x1a8] sm:$0xff]  ;;  %v1380_v22 = vld [vmem:[#allocation7 + $0x1b8] sm:$0xff] }
 0x1ab   :  { %v3029_v10 = vpack.c.bf16 %v1339_v7, %v1337_v6  ;;  %v3067_v3 = vpack.c.bf16 %v1380_v22, %v1378_v1  ;;  %v1382_v6 = vld [vmem:[#allocation7 + $0x1c8] sm:$0xff]  ;;  %v1384_v7 = vld [vmem:[#allocation7 + $0x1d8] sm:$0xff] }
 0x1ac   :  { %2746 = vmatpush1.bf16.msra.mxu0 %v2745_v13  ;;  %v1343_v13 = vld [vmem:[#allocation7 + $0x90] sm:$0xff] }
 0x1ad   :  { %3002 = vmatpush1.bf16.msra.mxu1 %v3001_v14  ;;  %2748 = vmatprep.subr.bf16.mxu0 %v2747_v15  ;;  %v1346_v14 = vld [vmem:[#allocation7 + $0xa8] sm:$0xff]  ;;  %v1348_v15 = vld [vmem:[#allocation7 + $0xb8] sm:$0xff]  ;;  %v3033_v45 = vpack.c.bf16 %v1343_v13, %v1341_v12 }
 0x1ae   :  { %3004 = vmatprep.subr.bf16.mxu1 %v3003_v18  ;;  %v3035_v16 = vpack.c.bf16 %v1348_v15, %v1346_v14  ;;  %v1347_v18 = vld [vmem:[#allocation7 + $0xb0] sm:$0xff]  ;;  %v1386_v13 = vld [vmem:[#allocation7 + $0x1e8] sm:$0xff]  ;;  %v1388_v14 = vld [vmem:[#allocation7 + $0x1f8] sm:$0xff] }
 0x1af   :  { %v3037_v21 = vpack.c.bf16 %v1347_v18, %v1345_v17  ;;  %v3075_v15 = vpack.c.bf16 %v1388_v14, %v1386_v13  ;;  %v1390_v18 = vld [vmem:[#allocation7 + $0x208] sm:$0xff]  ;;  %v1631_v58 = vld [vmem:[#allocation10 + $0xb0] sm:$0xff]  ;;  %v1648_v14 = vld [vmem:[#allocation10 + $0x138] sm:$0xff] }
 0x1b0   :  { %2750 = vmatpush1.bf16.msra.mxu0 %v2749_v26  ;;  %v1351_v26 = vld [vmem:[#allocation7 + $0xd0] sm:$0xff]  ;;  %v3079_v20 = vpack.c.bf16 %v1392_v19, %v1390_v18  ;;  %v1652_v19 = vld [vmem:[#allocation10 + $0x158] sm:$0xff] }
 0x1b1   :  { %3006 = vmatpush1.bf16.msra.mxu1 %v3005_v27  ;;  %2752 = vmatprep.subr.bf16.mxu0 %v2751_v28  ;;  %v1354_v27 = vld [vmem:[#allocation7 + $0xe8] sm:$0xff]  ;;  %v1356_v28 = vld [vmem:[#allocation7 + $0xf8] sm:$0xff]  ;;  %v3041_v29 = vpack.c.bf16 %v1351_v26, %v1349_v24 }
 0x1b2   :  { %3008 = vmatprep.subr.bf16.mxu1 %v3007_v32  ;;  %v3043_v30 = vpack.c.bf16 %v1356_v28, %v1354_v27  ;;  %v1355_v32 = vld [vmem:[#allocation7 + $0xf0] sm:$0xff]  ;;  %v1609_v24 = vld [vmem:[#allocation10] sm:$0xff] }
 0x1b3   :  { %v3045_v35 = vpack.c.bf16 %v1355_v32, %v1353_v31  ;;  %v1611_v27 = vld [vmem:[#allocation10 + $0x10] sm:$0xff]  ;;  %v1614_v28 = vld [vmem:[#allocation10 + $0x28] sm:$0xff]  ;;  %v1613_v32 = vld [vmem:[#allocation10 + $0x20] sm:$0xff] }
 0x1b4   :  { %2754 = vmatpush1.bf16.msra.mxu0 %v2753_v38  ;;  %v1359_v38 = vld [vmem:[#allocation7 + $0x110] sm:$0xff] }
 0x1b5   :  { %3010 = vmatpush1.bf16.msra.mxu1 %v3009_v40  ;;  %2756 = vmatprep.subr.bf16.mxu0 %v2755_v41  ;;  %v1362_v40 = vld [vmem:[#allocation7 + $0x128] sm:$0xff]  ;;  %v1364_v41 = vld [vmem:[#allocation7 + $0x138] sm:$0xff]  ;;  %v3049_v42 = vpack.c.bf16 %v1359_v38, %v1357_v37 }
 0x1b6   :  { %3012 = vmatprep.subr.bf16.mxu1 %v3011_v46  ;;  %v3051_v43 = vpack.c.bf16 %v1364_v41, %v1362_v40  ;;  %v1363_v46 = vld [vmem:[#allocation7 + $0x130] sm:$0xff]  ;;  %v1617_v38 = vld [vmem:[#allocation10 + $0x40] sm:$0xff] }
 0x1b7   :  { %v3053_v49 = vpack.c.bf16 %v1363_v46, %v1361_v44  ;;  %v1619_v40 = vld [vmem:[#allocation10 + $0x50] sm:$0xff]  ;;  %v1622_v41 = vld [vmem:[#allocation10 + $0x68] sm:$0xff]  ;;  %v1621_v46 = vld [vmem:[#allocation10 + $0x60] sm:$0xff] }
 0x1b8   :  { %2758 = vmatpush1.bf16.msra.mxu0 %v2757_v50  ;;  %v3055_v50 = vpack.c.bf16 %v1368_v48, %v1366_v47  ;;  %v1623_v47 = vld [vmem:[#allocation10 + $0x70] sm:$0xff]  ;;  %v1626_v48 = vld [vmem:[#allocation10 + $0x88] sm:$0xff] }
 0x1b9   :  { %3014 = vmatpush1.bf16.msra.mxu1 %v3013_v51  ;;  %3016 = vmatprep.subr.bf16.mxu0 %v3015_v39  ;;  %v1365_v51 = vld [vmem:[#allocation7 + $0x140] sm:$0xff]  ;;  %v1367_v39 = vld [vmem:[#allocation7 + $0x150] sm:$0xff] }
 0x1ba   :  { %v3057_v54 = vpack.c.bf16 %v1367_v39, %v1365_v51  ;;  %v1625_v39 = vld [vmem:[#allocation10 + $0x80] sm:$0xff]  ;;  %v1634_v59 = vld [vmem:[#allocation10 + $0xc8] sm:$0xff]  ;;  %v1635_v1 = vld [vmem:[#allocation10 + $0xd0] sm:$0xff] }
 0x1bb   :  { %1031 = vmatmul.mubr.f32.vlgmr.msra.gmra.mrb[0].mxu0 %v4015_v52  ;;  %v1638_v22 = vld [vmem:[#allocation10 + $0xe8] sm:$0xff] }
 0x1bc   :  { %1315 = vmatmul.mubr.f32.vlgmr.msra.gmra.mrb[0].mxu1 %v4015_v52  ;;  %3018 = vmatpush1.bf16.msra.mxu0 %v3017_v56  ;;  %v3031_v52 = vpack.c.bf16 %v1344_v9, %v1342_v8  ;;  %v1369_v56 = vld [vmem:[#allocation7 + $0x160] sm:$0xff]  ;;  %v3071_v9 = vpack.c.bf16 %v1384_v7, %v1382_v6  ;;  %v1639_v6 = vld [vmem:[#allocation10 + $0xf0] sm:$0xff]  ;;  %v1642_v7 = vld [vmem:[#allocation10 + $0x108] sm:$0xff] }
 0x1bd   :  { %3020 = vmatprep.subr.bf16.mxu0 %v3019_v57  ;;  %v1371_v57 = vld [vmem:[#allocation7 + $0x170] sm:$0xff] }
 0x1be   :  { %v3061_v60 = vpack.c.bf16 %v1371_v57, %v1369_v56  ;;  %v1629_v57 = vld [vmem:[#allocation10 + $0xa0] sm:$0xff]  ;;  %v1646_v13 = vld [vmem:[#allocation10 + $0x128] sm:$0xff] }
 0x1bf   :  { %v1650_v18 = vld [vmem:[#allocation10 + $0x148] sm:$0xff] }
 0x1c0   :  { %3022 = vmatpush1.bf16.msra.mxu0 %v3021_v63  ;;  %v1373_v63 = vld [vmem:[#allocation7 + $0x180] sm:$0xff] }
 0x1c1   :  { %3024 = vmatprep.subr.bf16.mxu0 %v3023_v0  ;;  %v1375_v0 = vld [vmem:[#allocation7 + $0x190] sm:$0xff] }
 0x1c2   :  { %v3065_v2 = vpack.c.bf16 %v1375_v0, %v1373_v63  ;;  %v1633_v0 = vld [vmem:[#allocation10 + $0xc0] sm:$0xff] }
 0x1c4   :  { %3026 = vmatpush1.bf16.msra.mxu0 %v3025_v4  ;;  %v1377_v4 = vld [vmem:[#allocation7 + $0x1a0] sm:$0xff] }
 0x1c5   :  { %3028 = vmatprep.subr.bf16.mxu0 %v3027_v5  ;;  %v1379_v5 = vld [vmem:[#allocation7 + $0x1b0] sm:$0xff] }
 0x1c6   :  { %v3069_v8 = vpack.c.bf16 %v1379_v5, %v1377_v4  ;;  %v1637_v5 = vld [vmem:[#allocation10 + $0xe0] sm:$0xff] }
 0x1c8   :  { %3030 = vmatpush1.bf16.msra.mxu0 %v3029_v10  ;;  %v1381_v10 = vld [vmem:[#allocation7 + $0x1c0] sm:$0xff] }
 0x1c9   :  { %3032 = vmatprep.subr.bf16.mxu0 %v3031_v52  ;;  %v1383_v52 = vld [vmem:[#allocation7 + $0x1d0] sm:$0xff] }
 0x1ca   :  { %v3073_v12 = vpack.c.bf16 %v1383_v52, %v1381_v10  ;;  %v1641_v52 = vld [vmem:[#allocation10 + $0x100] sm:$0xff] }
 0x1cc   :  { %3034 = vmatpush1.bf16.msra.mxu0 %v3033_v45  ;;  %v1385_v45 = vld [vmem:[#allocation7 + $0x1e0] sm:$0xff] }
 0x1cd   :  { %3036 = vmatprep.subr.bf16.mxu0 %v3035_v16  ;;  %v1387_v16 = vld [vmem:[#allocation7 + $0x1f0] sm:$0xff] }
 0x1ce   :  { %v3077_v17 = vpack.c.bf16 %v1387_v16, %v1385_v45  ;;  %v3179_v45 = vpack.c.bf16 %v1648_v14, %v1646_v13  ;;  %v1645_v16 = vld [vmem:[#allocation10 + $0x120] sm:$0xff] }
 0x1cf   :  { %v1397_v14 = vld [vmem:[#allocation7 + $0x240] sm:$0xff] }
 0x1d0   :  { %3038 = vmatpush1.bf16.msra.mxu0 %v3037_v21  ;;  %v1610_v21 = vld [vmem:[#allocation10 + $0x8] sm:$0xff] }
 0x1d1   :  { %3040 = vmatprep.subr.bf16.mxu0 %v3039_v23  ;;  %v1612_v23 = vld [vmem:[#allocation10 + $0x18] sm:$0xff] }
 0x1d2   :  { %v3143_v26 = vpack.c.bf16 %v1612_v23, %v1610_v21  ;;  %v3183_v21 = vpack.c.bf16 %v1652_v19, %v1650_v18  ;;  %v1649_v23 = vld [vmem:[#allocation10 + $0x140] sm:$0xff] }
 0x1d3   :  { %v1401_v19 = vld [vmem:[#allocation7 + $0x260] sm:$0xff] }
 0x1d4   :  { %3042 = vmatpush1.bf16.msra.mxu0 %v3041_v29  ;;  %v1616_v29 = vld [vmem:[#allocation10 + $0x38] sm:$0xff]  ;;  %3144 = vmatprep.subr.bf16.mxu1 %v3143_v26  ;;  %v1654_v26 = vld [vmem:[#allocation10 + $0x168] sm:$0xff] }
 0x1d5   :  { %3044 = vmatprep.subr.bf16.mxu0 %v3043_v30  ;;  %v3145_v30 = vpack.c.bf16 %v1611_v27, %v1609_v24  ;;  %v3147_v31 = vpack.c.bf16 %v1616_v29, %v1614_v28  ;;  %v1651_v24 = vld [vmem:[#allocation10 + $0x150] sm:$0xff]  ;;  %v1656_v27 = vld [vmem:[#allocation10 + $0x178] sm:$0xff] }
 0x1d6   :  { %v3185_v28 = vpack.c.bf16 %v1651_v24, %v1649_v23  ;;  %v3187_v29 = vpack.c.bf16 %v1656_v27, %v1654_v26  ;;  %v1408_v23 = vld [vmem:[#allocation7 + $0x298] sm:$0xff]  ;;  %v1405_v27 = vld [vmem:[#allocation7 + $0x280] sm:$0xff] }
 0x1d7   :  { %3146 = vmatpush1.bf16.msra.mxu1 %v3145_v30  ;;  %v1653_v30 = vld [vmem:[#allocation10 + $0x160] sm:$0xff] }
 0x1d8   :  { %3046 = vmatpush1.bf16.msra.mxu0 %v3045_v35  ;;  %v1620_v35 = vld [vmem:[#allocation10 + $0x58] sm:$0xff]  ;;  %3148 = vmatprep.subr.bf16.mxu1 %v3147_v31  ;;  %v1655_v31 = vld [vmem:[#allocation10 + $0x170] sm:$0xff] }
 0x1d9   :  { %3048 = vmatprep.subr.bf16.mxu0 %v3047_v36  ;;  %v3149_v36 = vpack.c.bf16 %v1615_v33, %v1613_v32  ;;  %v3151_v37 = vpack.c.bf16 %v1620_v35, %v1618_v34  ;;  %v1658_v32 = vld [vmem:[#allocation10 + $0x188] sm:$0xff]  ;;  %v1660_v33 = vld [vmem:[#allocation10 + $0x198] sm:$0xff]  ;;  %v3189_v34 = vpack.c.bf16 %v1655_v31, %v1653_v30 }
 0x1da   :  { %v3191_v35 = vpack.c.bf16 %v1660_v33, %v1658_v32  ;;  %v1412_v30 = vld [vmem:[#allocation7 + $0x2b8] sm:$0xff]  ;;  %v1409_v33 = vld [vmem:[#allocation7 + $0x2a0] sm:$0xff] }
 0x1db   :  { %3150 = vmatpush1.bf16.msra.mxu1 %v3149_v36  ;;  %v1657_v36 = vld [vmem:[#allocation10 + $0x180] sm:$0xff] }
 0x1dc   :  { %3050 = vmatpush1.bf16.msra.mxu0 %v3049_v42  ;;  %v1624_v42 = vld [vmem:[#allocation10 + $0x78] sm:$0xff]  ;;  %3152 = vmatprep.subr.bf16.mxu1 %v3151_v37  ;;  %v1659_v37 = vld [vmem:[#allocation10 + $0x190] sm:$0xff] }
 0x1dd   :  { %3052 = vmatprep.subr.bf16.mxu0 %v3051_v43  ;;  %v3153_v43 = vpack.c.bf16 %v1619_v40, %v1617_v38  ;;  %v3155_v44 = vpack.c.bf16 %v1624_v42, %v1622_v41  ;;  %v1662_v38 = vld [vmem:[#allocation10 + $0x1a8] sm:$0xff]  ;;  %v1664_v40 = vld [vmem:[#allocation10 + $0x1b8] sm:$0xff]  ;;  %v3193_v41 = vpack.c.bf16 %v1659_v37, %v1657_v36 }
 0x1de   :  { %v3195_v42 = vpack.c.bf16 %v1664_v40, %v1662_v38  ;;  %v1416_v36 = vld [vmem:[#allocation7 + $0x2d8] sm:$0xff]  ;;  %v1413_v40 = vld [vmem:[#allocation7 + $0x2c0] sm:$0xff] }
 0x1df   :  { %3154 = vmatpush1.bf16.msra.mxu1 %v3153_v43  ;;  %v1661_v43 = vld [vmem:[#allocation10 + $0x1a0] sm:$0xff] }
 0x1e0   :  { %3054 = vmatpush1.bf16.msra.mxu0 %v3053_v49  ;;  %v1628_v49 = vld [vmem:[#allocation10 + $0x98] sm:$0xff]  ;;  %3156 = vmatprep.subr.bf16.mxu1 %v3155_v44  ;;  %v1663_v44 = vld [vmem:[#allocation10 + $0x1b0] sm:$0xff] }
 0x1e1   :  { %3056 = vmatprep.subr.bf16.mxu0 %v3055_v50  ;;  %v3157_v50 = vpack.c.bf16 %v1623_v47, %v1621_v46  ;;  %v3159_v51 = vpack.c.bf16 %v1628_v49, %v1626_v48  ;;  %v4024_v46 = vsub.s32 0, %v3974_v61  ;;  %v1666_v47 = vld [vmem:[#allocation10 + $0x1c8] sm:$0xff]  ;;  %v1668_v48 = vld [vmem:[#allocation10 + $0x1d8] sm:$0xff] }
 0x1e2   :  { %v4026_v49 = vld [vmem:[#allocation5] sm:$0xf] }
 0x1e3   :  { %3158 = vmatpush1.bf16.msra.mxu1 %v3157_v50  ;;  %v4029_v50 = vsub.s32 1, %v3974_v61 }
 0x1e4   :  { %3058 = vmatpush1.bf16.msra.mxu0 %v3057_v54  ;;  %v1632_v54 = vld [vmem:[#allocation10 + $0xb8] sm:$0xff]  ;;  %3160 = vmatprep.subr.bf16.mxu1 %v3159_v51  ;;  %v703_v51 = vsub.s32 3, %v3974_v61 }
 0x1e5   :  { %3060 = vmatprep.subr.bf16.mxu0 %v3059_v55  ;;  %v3161_v55 = vpack.c.bf16 %v1627_v53, %v1625_v39  ;;  %v3163_v56 = vpack.c.bf16 %v1632_v54, %v1630_v25  ;;  %v3197_v39 = vpack.c.bf16 %v1663_v44, %v1661_v43  ;;  %v3199_v53 = vpack.c.bf16 %v1668_v48, %v1666_v47  ;;  %v1420_v43 = vld [vmem:[#allocation7 + $0x2f8] sm:$0xff]  ;;  %v1417_v48 = vld [vmem:[#allocation7 + $0x2e0] sm:$0xff] }
 0x1e6   :  { %v692_v25 = vrot.slane %v4026_v49, %v4024_v46  ;;  %v696_v54 = vrot.slane %v4026_v49, %v4029_v50 }
 0x1e7   :  { %3162 = vmatpush1.bf16.msra.mxu1 %v3161_v55  ;;  %v704_v55 = vrot.slane %v4026_v49, %v703_v51 }
 0x1e8   :  { %3062 = vmatpush1.bf16.msra.mxu0 %v3061_v60  ;;  %v1636_v60 = vld [vmem:[#allocation10 + $0xd8] sm:$0xff]  ;;  %3164 = vmatprep.subr.bf16.mxu1 %v3163_v56 }
 0x1e9   :  { %3064 = vmatprep.subr.bf16.mxu0 %v3063_v62  ;;  %v3165_v62 = vpack.c.bf16 %v1631_v58, %v1629_v57  ;;  %v3167_v63 = vpack.c.bf16 %v1636_v60, %v1634_v59  ;;  %v1389_v60 = vld [vmem:[#allocation7 + $0x200] sm:$0xff] }
 0x1eb   :  { %3166 = vmatpush1.bf16.msra.mxu1 %v3165_v62  ;;  %v1391_v62 = vld [vmem:[#allocation7 + $0x210] sm:$0xff] }
 0x1ec   :  { %3066 = vmatpush1.bf16.msra.mxu0 %v3065_v2  ;;  %v1640_v2 = vld [vmem:[#allocation10 + $0xf8] sm:$0xff]  ;;  %3168 = vmatprep.subr.bf16.mxu1 %v3167_v63 }
 0x1ed   :  { %3068 = vmatprep.subr.bf16.mxu0 %v3067_v3  ;;  %v3169_v3 = vpack.c.bf16 %v1635_v1, %v1633_v0  ;;  %v3171_v4 = vpack.c.bf16 %v1640_v2, %v1638_v22  ;;  %v1394_v1 = vld [vmem:[#allocation7 + $0x228] sm:$0xff]  ;;  %v1396_v22 = vld [vmem:[#allocation7 + $0x238] sm:$0xff] }
 0x1ef   :  { %3170 = vmatpush1.bf16.msra.mxu1 %v3169_v3 }
 0x1f0   :  { %3070 = vmatpush1.bf16.msra.mxu0 %v3069_v8  ;;  %v1644_v8 = vld [vmem:[#allocation10 + $0x118] sm:$0xff]  ;;  %3172 = vmatprep.subr.bf16.mxu1 %v3171_v4  ;;  %v3081_v4 = vpack.c.bf16 %v1391_v62, %v1389_v60 }
 0x1f1   :  { %3072 = vmatprep.subr.bf16.mxu0 %v3071_v9  ;;  %v3173_v9 = vpack.c.bf16 %v1639_v6, %v1637_v5  ;;  %v3175_v10 = vpack.c.bf16 %v1644_v8, %v1642_v7  ;;  %v3083_v6 = vpack.c.bf16 %v1396_v22, %v1394_v1  ;;  %v1393_v7 = vld [vmem:[#allocation7 + $0x220] sm:$0xff]  ;;  %v1395_v8 = vld [vmem:[#allocation7 + $0x230] sm:$0xff]  ;;  %v1428_v60 = vld [vmem:[#allocation7 + $0x338] sm:$0xff] }
 0x1f2   :  { %v1427_v1 = vld [vmem:[#allocation7 + $0x330] sm:$0xff]  ;;  %v1430_v22 = vld [vmem:[#allocation7 + $0x348] sm:$0xff] }
 0x1f3   :  { %3174 = vmatpush1.bf16.msra.mxu1 %v3173_v9 }
 0x1f4   :  { %3074 = vmatpush1.bf16.msra.mxu0 %v3073_v12  ;;  %v1643_v12 = vld [vmem:[#allocation10 + $0x110] sm:$0xff]  ;;  %3176 = vmatprep.subr.bf16.mxu1 %v3175_v10  ;;  %v1398_v10 = vld [vmem:[#allocation7 + $0x248] sm:$0xff] }
 0x1f5   :  { %3076 = vmatprep.subr.bf16.mxu0 %v3075_v15  ;;  %v3177_v15 = vpack.c.bf16 %v1643_v12, %v1641_v52  ;;  %v1400_v52 = vld [vmem:[#allocation7 + $0x258] sm:$0xff]  ;;  %v3085_v12 = vpack.c.bf16 %v1395_v8, %v1393_v7  ;;  %v1434_v7 = vld [vmem:[#allocation7 + $0x368] sm:$0xff] }
 0x1f6   :  { %v3087_v13 = vpack.c.bf16 %v1400_v52, %v1398_v10  ;;  %v1436_v8 = vld [vmem:[#allocation7 + $0x378] sm:$0xff]  ;;  %v1433_v52 = vld [vmem:[#allocation7 + $0x360] sm:$0xff] }
 0x1f7   :  { %3178 = vmatpush1.bf16.msra.mxu1 %v3177_v15  ;;  %v1399_v15 = vld [vmem:[#allocation7 + $0x250] sm:$0xff]  ;;  %v3123_v10 = vpack.c.bf16 %v1436_v8, %v1434_v7  ;;  %v1766_v8 = vld [vmem:[#allocation13 + $0x20] sm:$0xff] }
 0x1f8   :  { %3078 = vmatpush1.bf16.msra.mxu0 %v3077_v17  ;;  %v1647_v17 = vld [vmem:[#allocation10 + $0x130] sm:$0xff]  ;;  %3180 = vmatprep.subr.bf16.mxu1 %v3179_v45  ;;  %v1402_v45 = vld [vmem:[#allocation7 + $0x268] sm:$0xff] }
 0x1f9   :  { %3080 = vmatprep.subr.bf16.mxu0 %v3079_v20  ;;  %v3181_v20 = vpack.c.bf16 %v1647_v17, %v1645_v16  ;;  %v1404_v16 = vld [vmem:[#allocation7 + $0x278] sm:$0xff]  ;;  %v3089_v17 = vpack.c.bf16 %v1399_v15, %v1397_v14 }
 0x1fa   :  { %v3091_v18 = vpack.c.bf16 %v1404_v16, %v1402_v45  ;;  %v1440_v14 = vld [vmem:[#allocation7 + $0x398] sm:$0xff]  ;;  %v1437_v16 = vld [vmem:[#allocation7 + $0x380] sm:$0xff] }
 0x1fb   :  { %3182 = vmatpush1.bf16.msra.mxu1 %v3181_v20  ;;  %v1403_v20 = vld [vmem:[#allocation7 + $0x270] sm:$0xff] }
 0x1fc   :  { %3184 = vmatprep.subr.bf16.mxu1 %v3183_v21  ;;  %v1406_v21 = vld [vmem:[#allocation7 + $0x288] sm:$0xff]  ;;  %v3093_v24 = vpack.c.bf16 %v1403_v20, %v1401_v19  ;;  %v1444_v19 = vld [vmem:[#allocation7 + $0x3b8] sm:$0xff] }
 0x1fd   :  { %v3095_v26 = vpack.c.bf16 %v1408_v23, %v1406_v21  ;;  %v1441_v23 = vld [vmem:[#allocation7 + $0x3a0] sm:$0xff] }
 0x1ff   :  { %3186 = vmatpush1.bf16.msra.mxu1 %v3185_v28  ;;  %v1407_v28 = vld [vmem:[#allocation7 + $0x290] sm:$0xff] }
 0x200   :  { %3188 = vmatprep.subr.bf16.mxu1 %v3187_v29  ;;  %v1410_v29 = vld [vmem:[#allocation7 + $0x2a8] sm:$0xff]  ;;  %v3097_v31 = vpack.c.bf16 %v1407_v28, %v1405_v27  ;;  %v1448_v27 = vld [vmem:[#allocation7 + $0x3d8] sm:$0xff] }
 0x201   :  { %v3099_v32 = vpack.c.bf16 %v1412_v30, %v1410_v29  ;;  %v699_v29 = vsub.s32 2, %v3974_v61 }
 0x203   :  { %3190 = vmatpush1.bf16.msra.mxu1 %v3189_v34  ;;  %v1411_v34 = vld [vmem:[#allocation7 + $0x2b0] sm:$0xff] }
 0x204   :  { %3192 = vmatprep.subr.bf16.mxu1 %v3191_v35  ;;  %v1414_v35 = vld [vmem:[#allocation7 + $0x2c8] sm:$0xff]  ;;  %v3101_v37 = vpack.c.bf16 %v1411_v34, %v1409_v33  ;;  %v1452_v34 = vld [vmem:[#allocation7 + $0x3f8] sm:$0xff] }
 0x205   :  { %v3103_v38 = vpack.c.bf16 %v1416_v36, %v1414_v35  ;;  %v1450_v33 = vld [vmem:[#allocation7 + $0x3e8] sm:$0xff]  ;;  %v700_v36 = vrot.slane %v4026_v49, %v699_v29 }
 0x206   :  { %v1669_v49 = vld [vmem:[#allocation10 + $0x1e0] sm:$0xff] }
 0x207   :  { %3194 = vmatpush1.bf16.msra.mxu1 %v3193_v41  ;;  %v1415_v41 = vld [vmem:[#allocation7 + $0x2d0] sm:$0xff] }
 0x208   :  { %3196 = vmatprep.subr.bf16.mxu1 %v3195_v42  ;;  %v1418_v42 = vld [vmem:[#allocation7 + $0x2e8] sm:$0xff]  ;;  %v3105_v44 = vpack.c.bf16 %v1415_v41, %v1413_v40  ;;  %v1451_v40 = vld [vmem:[#allocation7 + $0x3f0] sm:$0xff] }
 0x209   :  { %v3107_v47 = vpack.c.bf16 %v1420_v43, %v1418_v42 }
 0x20b   :  { %3198 = vmatpush1.bf16.msra.mxu1 %v3197_v39  ;;  %v1419_v39 = vld [vmem:[#allocation7 + $0x2f0] sm:$0xff] }
 0x20c   :  { %3200 = vmatprep.subr.bf16.mxu1 %v3199_v53  ;;  %v1422_v53 = vld [vmem:[#allocation7 + $0x308] sm:$0xff] }
 0x28e   :  { %v1032_v56 = vpop.f32.mrb[0].mxu0 }
 0x28f   :  { %v3359_v57 = vadd.f32 %v1032_v56, %v692_v25  ;;  %v4039_v58 = vpop.f32.mrb[0].mxu1  ;;  %v1034_v59 = vpop.f32.mrb[1].mxu0  ;;  %v1424_v25 = vld [vmem:[#allocation7 + $0x318] sm:$0xff]  ;;  %v1421_v56 = vld [vmem:[#allocation7 + $0x300] sm:$0xff] }
 0x290   :  { %v3360_v63 = vadd.f32 %v1034_v59, %v696_v54  ;;  %v1318_v0 = vpop.f32.mrb[1].mxu1  ;;  %v3109_v54 = vpack.c.bf16 %v1419_v39, %v1417_v48  ;;  %v1426_v59 = vld [vmem:[#allocation7 + $0x328] sm:$0xff]  ;;  %v3361_v42 = vadd.f32 %v4039_v58, %v700_v36  ;;  %v1866_v36 = vld [vmem:[#allocation16 + $0x50] sm:$0xff] }
 0x291   :  { %v3362_v2 = vadd.f32 %v1318_v0, %v704_v55  ;;  %v1321_v5 = vmax.f32 %v3359_v57, 0.0  ;;  %v3111_v55 = vpack.c.bf16 %v1424_v25, %v1422_v53  ;;  %v1423_v57 = vld [vmem:[#allocation7 + $0x310] sm:$0xff]  ;;  %v1425_v0 = vld [vmem:[#allocation7 + $0x320] sm:$0xff] }
 0x292   :  { %v1322_v3 = vmax.f32 %v3360_v63, 0.0  ;;  %v3113_v62 = vpack.c.bf16 %v1423_v57, %v1421_v56  ;;  %v3115_v63 = vpack.c.bf16 %v1428_v60, %v1426_v59  ;;  %v1323_v43 = vmax.f32 %v3361_v42, 0.0  ;;  %v1670_v39 = vld [vmem:[#allocation10 + $0x1e8] sm:$0xff]  ;;  %v1672_v53 = vld [vmem:[#allocation10 + $0x1f8] sm:$0xff] }
 0x293   :  { %v1324_v9 = vmax.f32 %v3362_v2, 0.0  ;;  %v1432_v2 = vld [vmem:[#allocation7 + $0x358] sm:$0xff]  ;;  %v3203_v25 = vpack.c.bf16 %v1672_v53, %v1670_v39  ;;  %v3761_v56 = vmov 0.0|0.0   ;;  %v1453_v57 = vld [vmem:[#allocation8] sm:$0x3] }
 0x294   :  { %1529 = vmatprep.mubr.f32.mxu0 %v1322_v3  ;;  %v3117_v3 = vpack.c.bf16 %v1427_v1, %v1425_v0  ;;  %v1458_v58 = vrot.slane %v1453_v57, %v4024_v46  ;;  %v1462_v59 = vrot.slane %v1453_v57, %v4029_v50  ;;  %v1762_v0 = vld [vmem:[#allocation13] sm:$0xff]  ;;  %v1763_v1 = vld [vmem:[#allocation13 + $0x8] sm:$0xff]  ;;  %v1874_v42 = vld [vmem:[#allocation16 + $0x90] sm:$0xff] }
 0x295   :  { %1530 = vmatmul.mubr.f32.vlgmr.msra.gmra.mrb[2].mxu0 %v1321_v5  ;;  %v1429_v5 = vld [vmem:[#allocation7 + $0x340] sm:$0xff]  ;;  %v1890_v53 = vld [vmem:[#allocation16 + $0x110] sm:$0xff] }
 0x296   :  { %3082 = vmatpush1.bf16.msra.mxu0 %v3081_v4  ;;  %1600 = vmatprep.mubr.f32.mxu0 %v1324_v9  ;;  %v3119_v4 = vpack.c.bf16 %v1432_v2, %v1430_v22  ;;  %v1906_v57 = vld [vmem:[#allocation16 + $0x190] sm:$0xff] }
 0x297   :  { %3084 = vmatprep.subr.bf16.mxu0 %v3083_v6  ;;  %v1431_v6 = vld [vmem:[#allocation7 + $0x350] sm:$0xff] }
 0x298   :  { %v3121_v9 = vpack.c.bf16 %v1431_v6, %v1429_v5  ;;  %v1764_v5 = vld [vmem:[#allocation13 + $0x10] sm:$0xff]  ;;  %v1765_v6 = vld [vmem:[#allocation13 + $0x18] sm:$0xff] }
 0x299   :  { %v3211_v7 = vpack.c.bf16 %v1765_v6, %v1764_v5  ;;  %v1938_v5 = vld [vmem:[#allocation16 + $0x290] sm:$0xff] }
 0x29a   :  { %3086 = vmatpush1.bf16.msra.mxu0 %v3085_v12  ;;  %v1435_v12 = vld [vmem:[#allocation7 + $0x370] sm:$0xff] }
 0x29b   :  { %3088 = vmatprep.subr.bf16.mxu0 %v3087_v13  ;;  %v1438_v13 = vld [vmem:[#allocation7 + $0x388] sm:$0xff]  ;;  %v3125_v15 = vpack.c.bf16 %v1435_v12, %v1433_v52  ;;  %v1768_v52 = vld [vmem:[#allocation13 + $0x30] sm:$0xff]  ;;  %v1769_v12 = vld [vmem:[#allocation13 + $0x38] sm:$0xff] }
 0x29c   :  { %v3127_v45 = vpack.c.bf16 %v1440_v14, %v1438_v13  ;;  %v3217_v13 = vpack.c.bf16 %v1769_v12, %v1768_v52  ;;  %v1770_v14 = vld [vmem:[#allocation13 + $0x40] sm:$0xff]  ;;  %v1946_v6 = vld [vmem:[#allocation16 + $0x2d0] sm:$0xff] }
 0x29d   :  { %v1954_v52 = vld [vmem:[#allocation16 + $0x310] sm:$0xff] }
 0x29e   :  { %3090 = vmatpush1.bf16.msra.mxu0 %v3089_v17  ;;  %v1439_v17 = vld [vmem:[#allocation7 + $0x390] sm:$0xff] }
 0x29f   :  { %3092 = vmatprep.subr.bf16.mxu0 %v3091_v18  ;;  %v1442_v18 = vld [vmem:[#allocation7 + $0x3a8] sm:$0xff]  ;;  %v3129_v20 = vpack.c.bf16 %v1439_v17, %v1437_v16  ;;  %v1772_v16 = vld [vmem:[#allocation13 + $0x50] sm:$0xff]  ;;  %v1773_v17 = vld [vmem:[#allocation13 + $0x58] sm:$0xff] }
 0x2a0   :  { %v3131_v21 = vpack.c.bf16 %v1444_v19, %v1442_v18  ;;  %v3223_v18 = vpack.c.bf16 %v1773_v17, %v1772_v16  ;;  %v1774_v19 = vld [vmem:[#allocation13 + $0x60] sm:$0xff]  ;;  %v1962_v12 = vld [vmem:[#allocation16 + $0x350] sm:$0xff] }
 0x2a2   :  { %3094 = vmatpush1.bf16.msra.mxu0 %v3093_v24  ;;  %v1443_v24 = vld [vmem:[#allocation7 + $0x3b0] sm:$0xff] }
 0x2a3   :  { %3096 = vmatprep.subr.bf16.mxu0 %v3095_v26  ;;  %v1446_v26 = vld [vmem:[#allocation7 + $0x3c8] sm:$0xff]  ;;  %v3133_v28 = vpack.c.bf16 %v1443_v24, %v1441_v23  ;;  %v1776_v24 = vld [vmem:[#allocation13 + $0x70] sm:$0xff] }
 0x2a4   :  { %v3135_v30 = vpack.c.bf16 %v1448_v27, %v1446_v26  ;;  %v1777_v26 = vld [vmem:[#allocation13 + $0x78] sm:$0xff] }
 0x2a5   :  { %v3229_v27 = vpack.c.bf16 %v1777_v26, %v1776_v24  ;;  %v1759_v24 = vld [vmem:[%s4121_s1] sm:$0x3]  ;;  %v1856_v26 = vld [vmem:[#allocation16] sm:$0xff]  ;;  %s3764_s1 = smov [#allocation20]  }
 0x2a6   :  { %3098 = vmatpush1.bf16.msra.mxu0 %v3097_v31  ;;  %v1445_v31 = vld [vmem:[#allocation7 + $0x3c0] sm:$0xff]  ;;  %s2417_s4 = sshll.u32 %s3764_s1, 4  ;;  %s2418_s4 = int_to_ptr.vmem [resolvable:$true] %s2417_s4 }
 0x2a7   :  { %3100 = vmatprep.subr.bf16.mxu0 %v3099_v32  ;;  %v1447_v32 = vld [vmem:[#allocation7 + $0x3d0] sm:$0xff]  ;;  %s3660_s5 = scalar_lea.vmem %s2418_s4, 32  ;;  %p3665_p11 = scmp.lt.s32.totalorder %s2418_s4, %s2418_s4 }
 0x2a8   :  { %v3137_v35 = vpack.c.bf16 %v1447_v32, %v1445_v31  ;;  %v1859_v31 = vld [vmem:[#allocation16 + $0x18] sm:$0xff]  ;;  %p3661_p10 = scmp.ne.s32.totalorder %s2418_s4, %s3660_s5  ;;  %p3666_p12 = scmp.lt.s32.totalorder %s3660_s5, %s3660_s5 }
 0x2aa   :  { %3102 = vmatpush1.bf16.msra.mxu0 %v3101_v37  ;;  %v3139_v37 = vpack.c.bf16 %v1452_v34, %v1450_v33  ;;  %v1867_v33 = vld [vmem:[#allocation16 + $0x58] sm:$0xff]  ;;  %p3667_p13 = por %p3666_p12, %p3665_p11 }
 0x2ab   :  { %3104 = vmatprep.subr.bf16.mxu0 %v3103_v38  ;;  %v1449_v38 = vld [vmem:[#allocation7 + $0x3e0] sm:$0xff]  ;;  %v3263_v34 = vpack.c.bf16 %v1867_v33, %v1859_v31  ;;  %v1881_v31 = vld [vmem:[#allocation16 + $0xc8] sm:$0xff] }
 0x2ac   :  { %v3141_v41 = vpack.c.bf16 %v1451_v40, %v1449_v38  ;;  %v1875_v38 = vld [vmem:[#allocation16 + $0x98] sm:$0xff]  ;;  %p3668_p0 = pnand %p3667_p13, %p3661_p10 }
 0x2ad   :  { %v1883_v40 = vld [vmem:[#allocation16 + $0xd8] sm:$0xff] }
 0x2ae   :  { %3106 = vmatpush1.bf16.msra.mxu0 %v3105_v44  ;;  %v1665_v44 = vld [vmem:[#allocation10 + $0x1c0] sm:$0xff] }
 0x2af   :  { %3108 = vmatprep.subr.bf16.mxu0 %v3107_v47  ;;  %v1667_v47 = vld [vmem:[#allocation10 + $0x1d0] sm:$0xff] }
 0x2b0   :  { %v3201_v48 = vpack.c.bf16 %v1667_v47, %v1665_v44  ;;  %v1891_v47 = vld [vmem:[#allocation16 + $0x118] sm:$0xff] }
 0x2b2   :  { %3110 = vmatpush1.bf16.msra.mxu0 %v3109_v54  ;;  %3202 = vmatpush1.bf16.msra.mxu1 %v3201_v48  ;;  %v1671_v54 = vld [vmem:[#allocation10 + $0x1f0] sm:$0xff]  ;;  %v1899_v48 = vld [vmem:[#allocation16 + $0x158] sm:$0xff] }
 0x2b3   :  { %3112 = vmatprep.subr.bf16.mxu0 %v3111_v55  ;;  %v3205_v55 = vpack.c.bf16 %v1671_v54, %v1669_v49  ;;  %3204 = vmatprep.subr.bf16.mxu1 %v3203_v25  ;;  %v3271_v39 = vpack.c.bf16 %v1899_v48, %v1891_v47  ;;  %v1898_v25 = vld [vmem:[#allocation16 + $0x150] sm:$0xff]  ;;  %v1907_v54 = vld [vmem:[#allocation16 + $0x198] sm:$0xff]  ;;  %v1905_v47 = vld [vmem:[#allocation16 + $0x188] sm:$0xff] }
 0x2b4   :  { %v3273_v49 = vpack.c.bf16 %v1898_v25, %v1890_v53  ;;  %v1913_v48 = vld [vmem:[#allocation16 + $0x1c8] sm:$0xff]  ;;  %v1904_v25 = vld [vmem:[#allocation16 + $0x180] sm:$0xff] }
 0x2b5   :  { %v3243_v53 = vpack.c.bf16 %v1913_v48, %v1905_v47  ;;  %v1876_v47 = vld [vmem:[#allocation16 + $0xa0] sm:$0xff] }
 0x2b6   :  { %3114 = vmatpush1.bf16.msra.mxu0 %v3113_v62  ;;  %3206 = vmatpush1.bf16.msra.mxu1 %v3205_v55  ;;  %v1915_v55 = vld [vmem:[#allocation16 + $0x1d8] sm:$0xff]  ;;  %v1884_v48 = vld [vmem:[#allocation16 + $0xe0] sm:$0xff] }
 0x2b7   :  { %3116 = vmatprep.subr.bf16.mxu0 %v3115_v63  ;;  %3207 = vmatprep.subr.bf16.mxu1 %v3761_v56 }
 0x2ba   :  { %3118 = vmatpush1.bf16.msra.mxu0 %v3117_v3  ;;  %v3208_v3 = vpack.c.bf16 %v1763_v1, %v1762_v0  ;;  %v1922_v0 = vld [vmem:[#allocation16 + $0x210] sm:$0xff] }
 0x2bb   :  { %3120 = vmatprep.subr.bf16.mxu0 %v3119_v4  ;;  %v1930_v1 = vld [vmem:[#allocation16 + $0x250] sm:$0xff] }
 0x2be   :  { %3122 = vmatpush1.bf16.msra.mxu0 %v3121_v9  ;;  %v1767_v9 = vld [vmem:[#allocation13 + $0x28] sm:$0xff] }
 0x2bf   :  { %3124 = vmatprep.subr.bf16.mxu0 %v3123_v10  ;;  %v3214_v10 = vpack.c.bf16 %v1767_v9, %v1766_v8  ;;  %v1955_v8 = vld [vmem:[#allocation16 + $0x318] sm:$0xff] }
 0x2c0   :  { %v1963_v9 = vld [vmem:[#allocation16 + $0x358] sm:$0xff] }
 0x2c2   :  { %3126 = vmatpush1.bf16.msra.mxu0 %v3125_v15  ;;  %v1771_v15 = vld [vmem:[#allocation13 + $0x48] sm:$0xff] }
 0x2c3   :  { %3128 = vmatprep.subr.bf16.mxu0 %v3127_v45  ;;  %v3220_v45 = vpack.c.bf16 %v1771_v15, %v1770_v14  ;;  %v1673_v14 = vld [vmem:[#allocation11] sm:$0x3] }
 0x2c4   :  { %v1678_v15 = vrot.slane %v1673_v14, %v4024_v46 }
 0x2c6   :  { %3130 = vmatpush1.bf16.msra.mxu0 %v3129_v20  ;;  %v1775_v20 = vld [vmem:[#allocation13 + $0x68] sm:$0xff] }
 0x2c7   :  { %3132 = vmatprep.subr.bf16.mxu0 %v3131_v21  ;;  %v3763_v21 = vmov 0.0   ;;  %v3226_v23 = vpack.c.bf16 %v1775_v20, %v1774_v19 }
 0x2ca   :  { %3134 = vmatpush1.bf16.msra.mxu0 %v3133_v28  ;;  %v1857_v28 = vld [vmem:[#allocation16 + $0x8] sm:$0xff] }
 0x2cb   :  { %3136 = vmatprep.subr.bf16.mxu0 %v3135_v30  ;;  %v1865_v30 = vld [vmem:[#allocation16 + $0x48] sm:$0xff] }
 0x2cc   :  { %v3231_v32 = vpack.c.bf16 %v1865_v30, %v1857_v28  ;;  %v1873_v30 = vld [vmem:[#allocation16 + $0x88] sm:$0xff] }
 0x2ce   :  { %3138 = vmatpush1.bf16.msra.mxu0 %v3137_v35  ;;  %v1858_v35 = vld [vmem:[#allocation16 + $0x10] sm:$0xff] }
 0x2cf   :  { %3140 = vmatprep.subr.bf16.mxu0 %v3139_v37  ;;  %v3265_v37 = vpack.c.bf16 %v1866_v36, %v1858_v35  ;;  %v3235_v35 = vpack.c.bf16 %v1881_v31, %v1873_v30  ;;  %v1872_v36 = vld [vmem:[#allocation16 + $0x80] sm:$0xff]  ;;  %v2450_v30 = vld [vmem:[#allocation14] ss:$0 sm:$0xff] }
 0x2d0   :  { %v1860_v31 = vld [vmem:[#allocation16 + $0x20] sm:$0xff] }
 0x2d2   :  { %3142 = vmatpush1.bf16.msra.mxu0 %v3141_v41  ;;  %v3267_v41 = vpack.c.bf16 %v1883_v40, %v1875_v38  ;;  %v1889_v38 = vld [vmem:[#allocation16 + $0x108] sm:$0xff] }
 0x2d3   :  { %3264 = vmatprep.subr.bf16.mxu0 %v3263_v34  ;;  %v1897_v40 = vld [vmem:[#allocation16 + $0x148] sm:$0xff] }
 0x2d5   :  { %1601 = vmatmul.mubr.f32.vlgmr.msra.gmra.mrb[2].mxu0 %v1323_v43  ;;  %v1882_v43 = vld [vmem:[#allocation16 + $0xd0] sm:$0xff] }
 0x2d6   :  { %2161 = vmatprep.mubr.f32.mxu0 %v3763_v21  ;;  %3266 = vmatpush1.bf16.msra.mxu0 %v3265_v37  ;;  %v3269_v44 = vpack.c.bf16 %v1882_v43, %v1874_v42  ;;  %v1880_v37 = vld [vmem:[#allocation16 + $0xc0] sm:$0xff]  ;;  %v3239_v42 = vpack.c.bf16 %v1897_v40, %v1889_v38  ;;  %v1879_v38 = vld [vmem:[#allocation16 + $0xb8] sm:$0xff] }
 0x2d7   :  { %3268 = vmatprep.subr.bf16.mxu0 %v3267_v41  ;;  %v3237_v41 = vpack.c.bf16 %v1880_v37, %v1872_v36  ;;  %v1888_v43 = vld [vmem:[#allocation16 + $0x100] sm:$0xff]  ;;  %v1885_v37 = vld [vmem:[#allocation16 + $0xe8] sm:$0xff]  ;;  %v1887_v40 = vld [vmem:[#allocation16 + $0xf8] sm:$0xff] }
 0x2da   :  { %3270 = vmatpush1.bf16.msra.mxu0 %v3269_v44  ;;  %v1896_v44 = vld [vmem:[#allocation16 + $0x140] sm:$0xff] }
 0x2db   :  { %3272 = vmatprep.subr.bf16.mxu0 %v3271_v39  ;;  %v3241_v39 = vpack.c.bf16 %v1896_v44, %v1888_v43 }
 0x2de   :  { %3274 = vmatpush1.bf16.msra.mxu0 %v3273_v49  ;;  %v1912_v49 = vld [vmem:[#allocation16 + $0x1c0] sm:$0xff] }
 0x3a8   :  { %v1602_v60 = vpop.f32.mrb[2].mxu0 }
 0x3a9   :  { %v3363_v62 = vadd.f32 %v1602_v60, %v1458_v58  ;;  %v1604_v63 = vpop.f32.mrb[3].mxu0  ;;  %v1914_v58 = vld [vmem:[#allocation16 + $0x1d0] sm:$0xff]  ;;  %v1923_v60 = vld [vmem:[#allocation16 + $0x218] sm:$0xff] }
 0x3aa   :  { %v3364_v22 = vadd.f32 %v1604_v63, %v1462_v59  ;;  %v3277_v59 = vpack.c.bf16 %v1914_v58, %v1906_v57  ;;  %v1920_v58 = vld [vmem:[#allocation16 + $0x200] sm:$0xff] }
 0x3ab   :  { %v1607_v4 = vmax.f32 %v3363_v62, 0.0  ;;  %v1931_v62 = vld [vmem:[#allocation16 + $0x258] sm:$0xff] }
 0x3ac   :  { %v1608_v2 = vmax.f32 %v3364_v22, 0.0  ;;  %v3279_v63 = vpack.c.bf16 %v1931_v62, %v1923_v60  ;;  %v3281_v22 = vpack.c.bf16 %v1930_v1, %v1922_v0  ;;  %v1937_v60 = vld [vmem:[#allocation16 + $0x288] sm:$0xff]  ;;  %v1936_v1 = vld [vmem:[#allocation16 + $0x280] sm:$0xff] }
 0x3ad   :  { %v1945_v62 = vld [vmem:[#allocation16 + $0x2c8] sm:$0xff] }
 0x3ae   :  { %1749 = vmatprep.mubr.f32.mxu1 %v1608_v2  ;;  %v1939_v2 = vld [vmem:[#allocation16 + $0x298] sm:$0xff]  ;;  %v3251_v0 = vpack.c.bf16 %v1945_v62, %v1937_v60  ;;  %v1892_v62 = vld [vmem:[#allocation16 + $0x120] sm:$0xff] }
 0x3af   :  { %1750 = vmatmul.mubr.f32.vlgmr.msra.gmra.mrb[2].mxu1 %v1607_v4 }
 0x3b0   :  { %3209 = vmatpush3.bf16.msra.mxu1 %v3208_v3  ;;  %2500 = vmatprep.mubr.msk.f32.mxu1 %vm3762_vm0, %v3763_v21  ;;  %v1947_v3 = vld [vmem:[#allocation16 + $0x2d8] sm:$0xff] }
 0x3b1   :  { %3210 = vmatprep.subr.bf16.mxu1 %v3761_v56  ;;  %v3283_v4 = vpack.c.bf16 %v1947_v3, %v1939_v2  ;;  %v1953_v2 = vld [vmem:[#allocation16 + $0x308] sm:$0xff] }
 0x3b2   :  { %v1961_v3 = vld [vmem:[#allocation16 + $0x348] sm:$0xff] }
 0x3b4   :  { %3212 = vmatpush3.bf16.msra.mxu1 %v3211_v7  ;;  %v3285_v7 = vpack.c.bf16 %v1946_v6, %v1938_v5  ;;  %v3255_v5 = vpack.c.bf16 %v1961_v3, %v1953_v2  ;;  %v1952_v6 = vld [vmem:[#allocation16 + $0x300] sm:$0xff]  ;;  %v1902_v2 = vld [vmem:[#allocation16 + $0x170] sm:$0xff]  ;;  %v1909_v3 = vld [vmem:[#allocation16 + $0x1a8] sm:$0xff] }
 0x3b5   :  { %3213 = vmatprep.subr.bf16.mxu1 %v3761_v56 }
 0x3b8   :  { %3215 = vmatpush3.bf16.msra.mxu1 %v3214_v10  ;;  %v3287_v10 = vpack.c.bf16 %v1963_v9, %v1955_v8  ;;  %v1969_v9 = vld [vmem:[#allocation16 + $0x388] sm:$0xff] }
 0x3b9   :  { %3216 = vmatprep.subr.bf16.mxu1 %v3761_v56 }
 0x3bc   :  { %3218 = vmatpush3.bf16.msra.mxu1 %v3217_v13  ;;  %v3289_v13 = vpack.c.bf16 %v1962_v12, %v1954_v52  ;;  %v1971_v52 = vld [vmem:[#allocation16 + $0x398] sm:$0xff] }
 0x3bd   :  { %3219 = vmatprep.subr.bf16.mxu1 %v3761_v56 }
 0x3c0   :  { %3221 = vmatpush3.bf16.msra.mxu1 %v3220_v45  ;;  %v1682_v45 = vrot.slane %v1673_v14, %v4029_v50  ;;  %v1968_v14 = vld [vmem:[#allocation16 + $0x380] sm:$0xff] }
 0x3c1   :  { %3222 = vmatprep.subr.bf16.mxu1 %v3761_v56 }
 0x3c4   :  { %3224 = vmatpush3.bf16.msra.mxu1 %v3223_v18 }
 0x3c5   :  { %3225 = vmatprep.subr.bf16.mxu1 %v3761_v56 }
 0x3c8   :  { %3227 = vmatpush3.bf16.msra.mxu1 %v3226_v23 }
 0x3c9   :  { %3228 = vmatprep.subr.bf16.mxu1 %v3761_v56  ;;  %v3275_v56 = vpack.c.bf16 %v1915_v55, %v1907_v54  ;;  %v1921_v54 = vld [vmem:[#allocation16 + $0x208] sm:$0xff] }
 0x3ca   :  { %v1929_v55 = vld [vmem:[#allocation16 + $0x248] sm:$0xff] }
 0x3cb   :  { %3276 = vmatprep.subr.bf16.mxu0 %v3275_v56  ;;  %v3245_v56 = vpack.c.bf16 %v1912_v49, %v1904_v25  ;;  %v3247_v57 = vpack.c.bf16 %v1929_v55, %v1921_v54  ;;  %v3331_v25 = vpack.c.bf16 %v1887_v40, %v1879_v38  ;;  %v1878_v49 = vld [vmem:[#allocation16 + $0xb0] sm:$0xff]  ;;  %v1893_v55 = vld [vmem:[#allocation16 + $0x128] sm:$0xff] }
 0x3cc   :  { %3230 = vmatpush3.bf16.msra.mxu1 %v3229_v27  ;;  %3278 = vmatpush1.bf16.msra.mxu0 %v3277_v59  ;;  %v1864_v27 = vld [vmem:[#allocation16 + $0x40] sm:$0xff]  ;;  %v1886_v54 = vld [vmem:[#allocation16 + $0xf0] sm:$0xff] }
 0x3cd   :  { %3232 = vmatprep.subr.bf16.mxu1 %v3231_v32  ;;  %3280 = vmatprep.subr.bf16.mxu0 %v3279_v63  ;;  %v3233_v33 = vpack.c.bf16 %v1864_v27, %v1856_v26  ;;  %v1928_v59 = vld [vmem:[#allocation16 + $0x240] sm:$0xff]  ;;  %v1871_v27 = vld [vmem:[#allocation16 + $0x78] sm:$0xff]  ;;  %v3333_v60 = vpack.c.bf16 %v1886_v54, %v1878_v49  ;;  %v1942_v40 = vld [vmem:[#allocation16 + $0x2b0] sm:$0xff] }
 0x3ce   :  { %v3249_v63 = vpack.c.bf16 %v1928_v59, %v1920_v58  ;;  %v1903_v58 = vld [vmem:[#allocation16 + $0x178] sm:$0xff]  ;;  %v3301_v59 = vpack.c.bf16 %v1884_v48, %v1876_v47  ;;  %v1964_v49 = vld [vmem:[#allocation16 + $0x360] sm:$0xff] }
 0x3cf   :  { %v1967_v47 = vld [vmem:[#allocation16 + $0x378] sm:$0xff] }
 0x3d0   :  { %3282 = vmatpush1.bf16.msra.mxu0 %v3281_v22  ;;  %v1944_v22 = vld [vmem:[#allocation16 + $0x2c0] sm:$0xff] }
 0x3d1   :  { %3284 = vmatprep.subr.bf16.mxu0 %v3283_v4  ;;  %v3253_v4 = vpack.c.bf16 %v1944_v22, %v1936_v1  ;;  %v1894_v22 = vld [vmem:[#allocation16 + $0x130] sm:$0xff] }
 0x3d4   :  { %3286 = vmatpush1.bf16.msra.mxu0 %v3285_v7  ;;  %v1960_v7 = vld [vmem:[#allocation16 + $0x340] sm:$0xff] }
 0x3d5   :  { %3288 = vmatprep.subr.bf16.mxu0 %v3287_v10  ;;  %v3257_v8 = vpack.c.bf16 %v1960_v7, %v1952_v6  ;;  %v1977_v10 = vld [vmem:[#allocation16 + $0x3c8] sm:$0xff]  ;;  %v1919_v6 = vld [vmem:[#allocation16 + $0x1f8] sm:$0xff] }
 0x3d6   :  { %v3259_v12 = vpack.c.bf16 %v1977_v10, %v1969_v9  ;;  %v1908_v9 = vld [vmem:[#allocation16 + $0x1a0] sm:$0xff] }
 0x3d7   :  { %v1916_v10 = vld [vmem:[#allocation16 + $0x1e0] sm:$0xff] }
 0x3d8   :  { %3290 = vmatpush1.bf16.msra.mxu0 %v3289_v13  ;;  %v1979_v13 = vld [vmem:[#allocation16 + $0x3d8] sm:$0xff] }
 0x482   :  { %v1751_v16 = vpop.f32.mrb[2].mxu1 }
 0x483   :  { %v1752_v17 = vadd.f32 %v1751_v16, %v1678_v15  ;;  %v1753_v18 = vpop.f32.mrb[3].mxu1  ;;  %v1976_v15 = vld [vmem:[#allocation16 + $0x3c0] sm:$0xff] }
 0x484   :  { %v1754_v19 = vadd.f32 %v1753_v18, %v1682_v45  ;;  %v3291_v45 = vpack.c.bf16 %v1979_v13, %v1971_v52  ;;  %v3261_v16 = vpack.c.bf16 %v1976_v15, %v1968_v14  ;;  %v1978_v18 = vld [vmem:[#allocation16 + $0x3d0] sm:$0xff]  ;;  %v1925_v15 = vld [vmem:[#allocation16 + $0x228] sm:$0xff] }
 0x485   :  { %2396 = vst [vmem:[#allocation19] sm:$0x3] %v1752_v17  ;;  %v1910_v13 = vld [vmem:[#allocation16 + $0x1b0] sm:$0xff] }
 0x486   :  { %v1756_v20 = vmul.f32 0.5, %v1754_v19  ;;  %2397 = vst [vmem:[#allocation20] sm:$0x3] %v1754_v19  ;;  %3292 = vmatprep.subr.bf16.mxu0 %v3291_v45  ;;  %v1918_v14 = vld [vmem:[#allocation16 + $0x1f0] sm:$0xff]  ;;  %v1933_v45 = vld [vmem:[#allocation16 + $0x268] sm:$0xff] }
 0x488   :  { %v1757_v23 = vmul.f32 1.442695, %v1756_v20  ;;  %v1861_v20 = vld [vmem:[#allocation16 + $0x28] sm:$0xff] }
 0x48a   :  { %3406 = vpow2.f32 %v1757_v23  ;;  %v1869_v23 = vld [vmem:[#allocation16 + $0x68] sm:$0xff] }
 0x48b   :  { %v3295_v26 = vpack.c.bf16 %v1869_v23, %v1861_v20  ;;  %v1932_v20 = vld [vmem:[#allocation16 + $0x260] sm:$0xff]  ;;  %v3311_v23 = vpack.c.bf16 %v1933_v45, %v1925_v15 }
 0x494   :  { %v3407_v28 = vpop.eup %3406 }
 0x495   :  { %v1760_v32 = vmul.f32 %v3407_v28, %v1759_v24  ;;  %v1863_v24 = vld [vmem:[#allocation16 + $0x38] sm:$0xff] }
 0x496   :  { %v3327_v28 = vpack.c.bf16 %v1871_v27, %v1863_v24  ;;  %v1934_v27 = vld [vmem:[#allocation16 + $0x270] sm:$0xff] }
 0x497   :  { %v1761_v34 = vadd.f32 %v1760_v32, %v1752_v17  ;;  %v1970_v17 = vld [vmem:[#allocation16 + $0x390] sm:$0xff]  ;;  %v1868_v32 = vld [vmem:[#allocation16 + $0x60] sm:$0xff] }
 0x498   :  { %v3293_v19 = vpack.c.bf16 %v1978_v18, %v1970_v17  ;;  %v3297_v43 = vpack.c.bf16 %v1868_v32, %v1860_v31  ;;  %v1935_v17 = vld [vmem:[#allocation16 + $0x278] sm:$0xff]  ;;  %v3309_v18 = vpack.c.bf16 %v1916_v10, %v1908_v9 }
 0x499   :  { %2501 = vmatmul.mubr.f32.vlgmr.msra.gmra.mrb[4].mxu1 %v1761_v34  ;;  %2398 = vst [vmem:[#allocation22] sm:$0x3] %v1761_v34  ;;  %v1870_v34 = vld [vmem:[#allocation16 + $0x70] sm:$0xff]  ;;  %v1943_v31 = vld [vmem:[#allocation16 + $0x2b8] sm:$0xff] }
 0x49a   :  { %3234 = vmatpush1.bf16.msra.mxu1 %v3233_v33  ;;  %2090 = vmatprep.mubr.f32.mxu1 %v3763_v21  ;;  %v1862_v33 = vld [vmem:[#allocation16 + $0x30] sm:$0xff]  ;;  %v1951_v32 = vld [vmem:[#allocation16 + $0x2f8] sm:$0xff] }
 0x49b   :  { %3236 = vmatprep.subr.bf16.mxu1 %v3235_v35  ;;  %3294 = vmatpush1.bf16.msra.mxu0 %v3293_v19  ;;  %v1877_v35 = vld [vmem:[#allocation16 + $0xa8] sm:$0xff]  ;;  %v3329_v44 = vpack.c.bf16 %v1870_v34, %v1862_v33  ;;  %v1924_v19 = vld [vmem:[#allocation16 + $0x220] sm:$0xff]  ;;  %v3347_v38 = vpack.c.bf16 %v1951_v32, %v1943_v31 }
 0x49c   :  { %3328 = vmatprep.subr.bf16.mxu0 %v3327_v28  ;;  %v1941_v28 = vld [vmem:[#allocation16 + $0x2a8] sm:$0xff]  ;;  %v3313_v33 = vpack.c.bf16 %v1932_v20, %v1924_v19 }
 0x49e   :  { %3238 = vmatpush1.bf16.msra.mxu1 %v3237_v41 }
 0x49f   :  { %3240 = vmatprep.subr.bf16.mxu1 %v3239_v42 }
 0x4a2   :  { %3242 = vmatpush1.bf16.msra.mxu1 %v3241_v39 }
 0x4a3   :  { %3244 = vmatprep.subr.bf16.mxu1 %v3243_v53  ;;  %v3299_v53 = vpack.c.bf16 %v1885_v37, %v1877_v35  ;;  %v1940_v35 = vld [vmem:[#allocation16 + $0x2a0] sm:$0xff] }
 0x4a6   :  { %3246 = vmatpush1.bf16.msra.mxu1 %v3245_v56  ;;  %v1901_v56 = vld [vmem:[#allocation16 + $0x168] sm:$0xff] }
 0x4a7   :  { %3248 = vmatprep.subr.bf16.mxu1 %v3247_v57  ;;  %v1895_v57 = vld [vmem:[#allocation16 + $0x138] sm:$0xff] }
 0x4a8   :  { %v3335_v1 = vpack.c.bf16 %v1903_v58, %v1895_v57  ;;  %v1966_v57 = vld [vmem:[#allocation16 + $0x370] sm:$0xff]  ;;  %v1973_v58 = vld [vmem:[#allocation16 + $0x3a8] sm:$0xff] }
 0x4aa   :  { %3250 = vmatpush1.bf16.msra.mxu1 %v3249_v63  ;;  %v1900_v63 = vld [vmem:[#allocation16 + $0x160] sm:$0xff] }
 0x4ab   :  { %3252 = vmatprep.subr.bf16.mxu1 %v3251_v0  ;;  %v3303_v0 = vpack.c.bf16 %v1901_v56, %v1893_v55  ;;  %v3305_v7 = vpack.c.bf16 %v1900_v63, %v1892_v62  ;;  %v1958_v56 = vld [vmem:[#allocation16 + $0x330] sm:$0xff]  ;;  %v1983_v62 = vld [vmem:[#allocation16 + $0x3f8] sm:$0xff] }
 0x4ae   :  { %3254 = vmatpush1.bf16.msra.mxu1 %v3253_v4  ;;  %v1917_v4 = vld [vmem:[#allocation16 + $0x1e8] sm:$0xff] }
 0x4af   :  { %3256 = vmatprep.subr.bf16.mxu1 %v3255_v5  ;;  %v1911_v5 = vld [vmem:[#allocation16 + $0x1b8] sm:$0xff]  ;;  %v3307_v52 = vpack.c.bf16 %v1917_v4, %v1909_v3  ;;  %v1980_v3 = vld [vmem:[#allocation16 + $0x3e0] sm:$0xff]  ;;  %v1974_v4 = vld [vmem:[#allocation16 + $0x3b0] sm:$0xff] }
 0x4b2   :  { %3258 = vmatpush1.bf16.msra.mxu1 %v3257_v8  ;;  %v3337_v8 = vpack.c.bf16 %v1902_v2, %v1894_v22 }
 0x4b3   :  { %3260 = vmatprep.subr.bf16.mxu1 %v3259_v12  ;;  %v3339_v12 = vpack.c.bf16 %v1919_v6, %v1911_v5  ;;  %v1982_v5 = vld [vmem:[#allocation16 + $0x3f0] sm:$0xff] }
 0x4b6   :  { %3262 = vmatpush1.bf16.msra.mxu1 %v3261_v16  ;;  %v1927_v16 = vld [vmem:[#allocation16 + $0x238] sm:$0xff] }
 0x4b7   :  { %3296 = vmatprep.subr.bf16.mxu1 %v3295_v26  ;;  %v3343_v24 = vpack.c.bf16 %v1935_v17, %v1927_v16  ;;  %v1926_v26 = vld [vmem:[#allocation16 + $0x230] sm:$0xff] }
 0x4b8   :  { %v3345_v34 = vpack.c.bf16 %v1934_v27, %v1926_v26 }
 0x56c   :  { %v1851_v36 = vpop.f32.mrb[4].mxu1 }
 0x56d   :  { %v1852_v41 = vadd.f32 %v2450_v30, %v1851_v36  ;;  %v2502_v42 = vpop.f32.mrb[5].mxu1  ;;  %v1949_v30 = vld [vmem:[#allocation16 + $0x2e8] sm:$0xff]  ;;  %v1948_v36 = vld [vmem:[#allocation16 + $0x2e0] sm:$0xff] }
 0x56e   :  { %v3315_v37 = vpack.c.bf16 %v1949_v30, %v1941_v28  ;;  %v1957_v42 = vld [vmem:[#allocation16 + $0x328] sm:$0xff]  ;;  %v3317_v48 = vpack.c.bf16 %v1948_v36, %v1940_v35 }
 0x56f   :  { %v4056_v39 = vmax.f32 %v1852_v41, 0.0  ;;  %v1950_v41 = vld [vmem:[#allocation16 + $0x2f0] sm:$0xff] }
 0x571   :  { %2091 = vmatmul.mubr.f32.vlgmr.msra.gmra.mrb[6].mxu1 %v4056_v39  ;;  %2162 = vmatmul.mubr.f32.vlgmr.msra.gmra.mrb[4].mxu0 %v4056_v39 }
 0x572   :  { %3298 = vmatpush1.bf16.msra.mxu1 %v3297_v43  ;;  %3330 = vmatpush1.bf16.msra.mxu0 %v3329_v44  ;;  %v1965_v43 = vld [vmem:[#allocation16 + $0x368] sm:$0xff]  ;;  %v1959_v44 = vld [vmem:[#allocation16 + $0x338] sm:$0xff] }
 0x573   :  { %3300 = vmatprep.subr.bf16.mxu1 %v3299_v53  ;;  %3332 = vmatprep.subr.bf16.mxu0 %v3331_v25  ;;  %v3349_v53 = vpack.c.bf16 %v1950_v41, %v1942_v40  ;;  %v1956_v25 = vld [vmem:[#allocation16 + $0x320] sm:$0xff]  ;;  %v3319_v54 = vpack.c.bf16 %v1965_v43, %v1957_v42  ;;  %v3351_v55 = vpack.c.bf16 %v1967_v47, %v1959_v44 }
 0x574   :  { %2232 = vmatprep.mubr.f32.mxu1 %v3763_v21  ;;  %2303 = vmatprep.mubr.f32.mxu0 %v3763_v21  ;;  %v3341_v21 = vpack.c.bf16 %v1918_v14, %v1910_v13  ;;  %v3321_v63 = vpack.c.bf16 %v1964_v49, %v1956_v25 }
 0x576   :  { %3302 = vmatpush1.bf16.msra.mxu1 %v3301_v59  ;;  %3334 = vmatpush1.bf16.msra.mxu0 %v3333_v60  ;;  %v1981_v59 = vld [vmem:[#allocation16 + $0x3e8] sm:$0xff]  ;;  %v1975_v60 = vld [vmem:[#allocation16 + $0x3b8] sm:$0xff] }
 0x577   :  { %3304 = vmatprep.subr.bf16.mxu1 %v3303_v0  ;;  %3336 = vmatprep.subr.bf16.mxu0 %v3335_v1  ;;  %v3353_v0 = vpack.c.bf16 %v1966_v57, %v1958_v56  ;;  %v1972_v1 = vld [vmem:[#allocation16 + $0x3a0] sm:$0xff]  ;;  %v3323_v22 = vpack.c.bf16 %v1981_v59, %v1973_v58  ;;  %v3355_v2 = vpack.c.bf16 %v1983_v62, %v1975_v60 }
 0x578   :  { %v3325_v6 = vpack.c.bf16 %v1980_v3, %v1972_v1 }
 0x57a   :  { %3306 = vmatpush1.bf16.msra.mxu1 %v3305_v7  ;;  %3338 = vmatpush1.bf16.msra.mxu0 %v3337_v8  ;;  %v3357_v7 = vpack.c.bf16 %v1982_v5, %v1974_v4 }
 0x57b   :  { %3308 = vmatprep.subr.bf16.mxu1 %v3307_v52  ;;  %3340 = vmatprep.subr.bf16.mxu0 %v3339_v12 }
 0x57e   :  { %3310 = vmatpush1.bf16.msra.mxu1 %v3309_v18  ;;  %3342 = vmatpush1.bf16.msra.mxu0 %v3341_v21 }
 0x57f   :  { %3312 = vmatprep.subr.bf16.mxu1 %v3311_v23  ;;  %3344 = vmatprep.subr.bf16.mxu0 %v3343_v24 }
 0x582   :  { %3314 = vmatpush1.bf16.msra.mxu1 %v3313_v33  ;;  %3346 = vmatpush1.bf16.msra.mxu0 %v3345_v34 }
 0x583   :  { %3316 = vmatprep.subr.bf16.mxu1 %v3315_v37  ;;  %3348 = vmatprep.subr.bf16.mxu0 %v3347_v38 }
 0x586   :  { %3318 = vmatpush1.bf16.msra.mxu1 %v3317_v48  ;;  %3350 = vmatpush1.bf16.msra.mxu0 %v3349_v53 }
 0x587   :  { %3320 = vmatprep.subr.bf16.mxu1 %v3319_v54  ;;  %3352 = vmatprep.subr.bf16.mxu0 %v3351_v55 }
 0x58a   :  { %3322 = vmatpush1.bf16.msra.mxu1 %v3321_v63  ;;  %3354 = vmatpush1.bf16.msra.mxu0 %v3353_v0 }
 0x58b   :  { %3324 = vmatprep.subr.bf16.mxu1 %v3323_v22  ;;  %3356 = vmatprep.subr.bf16.mxu0 %v3355_v2 }
 0x58e   :  { %3326 = vmatpush1.bf16.msra.mxu1 %v3325_v6  ;;  %3358 = vmatpush1.bf16.msra.mxu0 %v3357_v7 }
 0x591   :  { %2233 = vmatmul.mubr.f32.vlgmr.msra.gmra.mrb[8].mxu1 %v4056_v39  ;;  %2304 = vmatmul.mubr.f32.vlgmr.msra.gmra.mrb[6].mxu0 %v4056_v39 }
 0x592   :  { %3671 = shalt.err (!%p3668_p0)
}
 0x593   :  { %s3672_s21 = scalar_lea.hbm %s4134_s14, 32 }
 0x594   :  { %p3673_p1 = scmp.ne.s32.totalorder %s4134_s14, %s3672_s21  ;;  %p3676_p2 = scmp.lt.u32.totalorder %s3672_s21, %s4134_s14 }
 0x596   :  { %p3678_p3 = pnand %p3676_p2, %p3673_p1 }
 0x598   :  { %3681 = shalt.err (!%p3678_p3)
}
 0x599   :  { %2420 = dma.vmem_to_hbm [thread:$0]  %s2418_s4, 32, %s4134_s14, [#allocation21]  }
 0x59a   :  { %s3682_s6 = scalar_lea.vmem %s2408_s24, 32  ;;  %p3687_p5 = scmp.lt.s32.totalorder %s2408_s24, %s2408_s24 }
 0x59b   :  { %p3683_p4 = scmp.ne.s32.totalorder %s2408_s24, %s3682_s6  ;;  %p3688_p6 = scmp.lt.s32.totalorder %s3682_s6, %s3682_s6 }
 0x59d   :  { %p3689_p7 = por %p3688_p6, %p3687_p5 }
 0x59f   :  { %p3690_p8 = pnand %p3689_p7, %p3683_p4 }
 0x5a1   :  { %3693 = shalt.err (!%p3690_p8)
}
 0x5a2   :  { %s3694_s27 = scalar_lea.hbm %s4133_s13, 32 }
 0x5a3   :  { %p3695_p9 = scmp.ne.s32.totalorder %s4133_s13, %s3694_s27  ;;  %p3698_p10 = scmp.lt.u32.totalorder %s3694_s27, %s4133_s13 }
 0x5a5   :  { %p3700_p11 = pnand %p3698_p10, %p3695_p9 }
 0x5a7   :  { %3703 = shalt.err (!%p3700_p11)
}
 0x5a8   :  { %2410 = dma.vmem_to_hbm [thread:$0]  %s2408_s24, 32, %s4133_s13, [#allocation4]  }
 0x5a9   :  { %s3766_s7 = smov [#allocation22]  }
 0x5aa   :  { %s2427_s28 = sshll.u32 %s3766_s7, 4  ;;  %s2428_s28 = int_to_ptr.vmem [resolvable:$true] %s2427_s28 }
 0x5ab   :  { %s3704_s0 = scalar_lea.vmem %s2428_s28, 32  ;;  %p3709_p13 = scmp.lt.s32.totalorder %s2428_s28, %s2428_s28 }
 0x5ac   :  { %p3705_p12 = scmp.ne.s32.totalorder %s2428_s28, %s3704_s0  ;;  %p3710_p0 = scmp.lt.s32.totalorder %s3704_s0, %s3704_s0 }
 0x5ae   :  { %p3711_p1 = por %p3710_p0, %p3709_p13 }
 0x5b0   :  { %p3712_p2 = pnand %p3711_p1, %p3705_p12 }
 0x5b2   :  { %3715 = shalt.err (!%p3712_p2)
}
 0x5b3   :  { %s3716_s4 = scalar_lea.hbm %s4135_s15, 32 }
 0x5b4   :  { %p3717_p3 = scmp.ne.s32.totalorder %s4135_s15, %s3716_s4  ;;  %p3720_p4 = scmp.lt.u32.totalorder %s3716_s4, %s4135_s15 }
 0x5b6   :  { %p3722_p5 = pnand %p3720_p4, %p3717_p3 }
 0x5b8   :  { %3725 = shalt.err (!%p3722_p5)
}
 0x5b9   :  { %2430 = dma.vmem_to_hbm [thread:$0]  %s2428_s28, 32, %s4135_s15, [#allocation21]   ;;  %v1984_v39 = vld [vmem:[#allocation17] sm:$0xff]  ;;  %v2004_v34 = vsub.s32 4, %v3974_v61  ;;  %v2012_v35 = vsub.s32 6, %v3974_v61  ;;  %v2008_v36 = vsub.s32 5, %v3974_v61 }
 0x5ba   :  { %v1989_v8 = vrot.slane %v1984_v39, %v4024_v46  ;;  %v1997_v9 = vrot.slane %v1984_v39, %v699_v29  ;;  %v1993_v10 = vrot.slane %v1984_v39, %v4029_v50  ;;  %v2001_v52 = vrot.slane %v1984_v39, %v703_v51 }
 0x5bb   :  { %v2016_v37 = vsub.s32 7, %v3974_v61  ;;  %v2005_v38 = vrot.slane %v1984_v39, %v2004_v34  ;;  %v2013_v40 = vrot.slane %v1984_v39, %v2012_v35  ;;  %v2009_v42 = vrot.slane %v1984_v39, %v2008_v36 }
 0x5bd   :  { %v2017_v43 = vrot.slane %v1984_v39, %v2016_v37 }
 0x644   :  { %v2092_v12 = vpop.f32.mrb[6].mxu1  ;;  %v2163_v13 = vpop.f32.mrb[4].mxu0 }
 0x645   :  { %v2093_v14 = vadd.f32 %v2092_v12, %v1989_v8  ;;  %v2164_v15 = vadd.f32 %v2163_v13, %v1997_v9  ;;  %v2094_v45 = vpop.f32.mrb[7].mxu1  ;;  %v2165_v16 = vpop.f32.mrb[5].mxu0 }
 0x646   :  { %v2095_v17 = vadd.f32 %v2094_v45, %v1993_v10  ;;  %v2166_v18 = vadd.f32 %v2165_v16, %v2001_v52 }
 0x647   :  { %v2310_v21 = vsub.f32 0.0, %v2093_v14  ;;  %v2312_v19 = vsub.f32 0.0, %v2164_v15 }
 0x648   :  { %v2311_v20 = vsub.f32 0.0, %v2095_v17  ;;  %v2313_v46 = vsub.f32 0.0, %v2166_v18 }
 0x649   :  { %v2318_v23 = vmul.f32 1.442695, %v2310_v21  ;;  %v2322_v24 = vmul.f32 1.442695, %v2312_v19 }
 0x64a   :  { %v2320_v29 = vmul.f32 1.442695, %v2311_v20  ;;  %v2324_v26 = vmul.f32 1.442695, %v2313_v46 }
 0x64b   :  { %3408 = vpow2.f32 %v2318_v23 }
 0x64c   :  { %3410 = vpow2.f32 %v2322_v24 }
 0x64d   :  { %3412 = vpow2.f32 %v2320_v29 }
 0x64e   :  { %3414 = vpow2.f32 %v2324_v26 }
 0x655   :  { %v3409_v50 = vpop.eup %3408 }
 0x656   :  { %v3411_v51 = vpop.eup %3410  ;;  %v2334_v27 = vadd.f32 1.0, %v3409_v50 }
 0x657   :  { %v3413_v28 = vpop.eup %3412  ;;  %v2336_v30 = vadd.f32 1.0, %v3411_v51 }
 0x658   :  { %v3415_v31 = vpop.eup %3414  ;;  %3416 = vrcp.f32 %v2334_v27  ;;  %v2335_v32 = vadd.f32 1.0, %v3413_v28 }
 0x659   :  { %3418 = vrcp.f32 %v2336_v30  ;;  %v2337_v33 = vadd.f32 1.0, %v3415_v31 }
 0x65a   :  { %3420 = vrcp.f32 %v2335_v32 }
 0x65b   :  { %3422 = vrcp.f32 %v2337_v33 }
 0x662   :  { %v3417_v41 = vpop.eup %3416 }
 0x663   :  { %v3419_v44 = vpop.eup %3418 }
 0x664   :  { %v3421_v47 = vpop.eup %3420  ;;  %v2234_v48 = vpop.f32.mrb[8].mxu1 }
 0x665   :  { %v2305_v53 = vpop.f32.mrb[6].mxu0  ;;  %v3423_v25 = vpop.eup %3422  ;;  %v2358_v49 = vcombine.low %v3417_v41, %v3421_v47  ;;  %v2235_v54 = vadd.f32 %v2234_v48, %v2005_v38 }
 0x666   :  { %v2306_v55 = vadd.f32 %v2305_v53, %v2013_v40  ;;  %v2236_v56 = vpop.f32.mrb[9].mxu1  ;;  %v2307_v57 = vpop.f32.mrb[7].mxu0  ;;  %v2359_v58 = vcombine.low %v3419_v44, %v3423_v25 }
 0x667   :  { %v2237_v59 = vadd.f32 %v2236_v56, %v2009_v42  ;;  %v2308_v60 = vadd.f32 %v2307_v57, %v2017_v43  ;;  %v2366_v61 = vrot.slane %v2358_v49, %v3977_v11  ;;  %v2314_v62 = vsub.f32 0.0, %v2235_v54 }
 0x668   :  { %v2316_v63 = vsub.f32 0.0, %v2306_v55  ;;  %v2373_v0 = vrot.slane %v2359_v58, %v3977_v11 }
 0x669   :  { %v2315_v1 = vsub.f32 0.0, %v2237_v59  ;;  %v2317_v22 = vsub.f32 0.0, %v2308_v60  ;;  %v2326_v2 = vmul.f32 1.442695, %v2314_v62 }
 0x66a   :  { %v2330_v3 = vmul.f32 1.442695, %v2316_v63  ;;  %v2374_v4 = vcombine.low %v2366_v61, %v2373_v0 }
 0x66b   :  { %v2328_v5 = vmul.f32 1.442695, %v2315_v1  ;;  %v2332_v6 = vmul.f32 1.442695, %v2317_v22  ;;  %3424 = vpow2.f32 %v2326_v2 }
 0x66c   :  { %2394 = vst [vmem:[%s4132_s12] sm:$0xff] %v2374_v4  ;;  %3426 = vpow2.f32 %v2330_v3 }
 0x66d   :  { %3428 = vpow2.f32 %v2328_v5 }
 0x66e   :  { %3430 = vpow2.f32 %v2332_v6 }
 0x675   :  { %v3425_v7 = vpop.eup %3424 }
 0x676   :  { %v3427_v39 = vpop.eup %3426  ;;  %v2338_v8 = vadd.f32 1.0, %v3425_v7 }
 0x677   :  { %v3429_v9 = vpop.eup %3428  ;;  %v2340_v10 = vadd.f32 1.0, %v3427_v39 }
 0x678   :  { %v3431_v52 = vpop.eup %3430  ;;  %3432 = vrcp.f32 %v2338_v8  ;;  %v2339_v12 = vadd.f32 1.0, %v3429_v9 }
 0x679   :  { %3434 = vrcp.f32 %v2340_v10  ;;  %v2341_v13 = vadd.f32 1.0, %v3431_v52 }
 0x67a   :  { %3436 = vrcp.f32 %v2339_v12 }
 0x67b   :  { %3438 = vrcp.f32 %v2341_v13 }
 0x682   :  { %v3433_v14 = vpop.eup %3432 }
 0x683   :  { %v3435_v15 = vpop.eup %3434 }
 0x684   :  { %v3437_v45 = vpop.eup %3436 }
 0x685   :  { %v3439_v16 = vpop.eup %3438  ;;  %v2375_v17 = vcombine.low %v3433_v14, %v3437_v45 }
 0x686   :  { %v2376_v18 = vcombine.low %v3435_v15, %v3439_v16 }
 0x687   :  { %v2383_v21 = vrot.slane %v2375_v17, %v3977_v11 }
 0x688   :  { %v2390_v19 = vrot.slane %v2376_v18, %v3977_v11 }
 0x68a   :  { %v2391_v20 = vcombine.low %v2383_v21, %v2390_v19 }
 0x68c   :  { %2395 = vst [vmem:[%s4132_s12 + $0x8] sm:$0xff] %v2391_v20 }
 0x68d   :  { %3738 = dma.done.wait [#allocation4], 32  }
 0x68e   :  { %3739 = vsyncadd [#allocation4], 4294967264 }
 0x68f   :  { %3740 = dma.done.wait [#allocation21], 64  }
 0x690   :  { %3741 = vsyncadd [#allocation21], 4294967232 }
 0x691   :  { %2442 = vsyncpa [#allocation3], 1 }
 0x692   :  { %2443 = vsyncpa [#allocation6], 1 }
 0x693   :  { %2444 = vsyncpa [#allocation9], 1 }
 0x694   :  { %2445 = vsyncpa [#allocation12], 1 }
 0x695   :  { %2446 = vsyncpa [#allocation15], 1 }
 0x696   :  { %2447 = vsyncpa [#allocation18], 1 }
 0x697   :  { %2448 = vsyncpa [#allocation4], 1 }
 0x698   :  { %2449 = vsyncpa [#allocation21], 1 }

</bundles_post_ra>
